<compile_context>
chip_gen: v5e
topology: v5e:2x2
jax: 0.10.0
libtpu: 0.0.40
codegen_flags: <defaults>
</compile_context>

<pallas_src>
import numpy as np
import jax
import jax.numpy as jnp
from jax.experimental import pallas as pl
from jax.experimental.pallas import tpu as pltpu


_VMEM_LIMIT = 32 * 1024 * 1024  # safe scoped-VMEM budget on v5e / v6e / v7x


# ----------------------------------------------------------------------------
# Bilinear (scale_factor=2, align_corners=True) interpolation operators
# ----------------------------------------------------------------------------
def _bilinear_matrix_np(size_in: int) -> np.ndarray:
    """(2*size_in, size_in) matrix U with up(x) = U @ x (1-D bilinear)."""
    size_out = 2 * size_in
    if size_in == 1:
        return np.ones((size_out, 1), np.float32)
    i = np.arange(size_out, dtype=np.float64)
    src = i * (size_in - 1) / (size_out - 1)          # align_corners=True mapping
    lo = np.clip(np.floor(src).astype(np.int64), 0, size_in - 2)
    frac = src - lo
    u = np.zeros((size_out, size_in), np.float64)
    u[np.arange(size_out), lo] += 1.0 - frac
    u[np.arange(size_out), lo + 1] += frac
    return u.astype(np.float32)


def _kron_upsample_matrix_np(h: int, w: int) -> np.ndarray:
    """(h*w, 4*h*w) matrix K with  up2x(X).ravel() = X.ravel() @ K  (row-major)."""
    uh = _bilinear_matrix_np(h)                       # (2h, h)
    uw = _bilinear_matrix_np(w)                       # (2w, w)
    return np.ascontiguousarray(np.kron(uh, uw).T.astype(np.float32))


# ----------------------------------------------------------------------------
# Fused decoder kernel (one grid step = one sample x one output-channel group)
# ----------------------------------------------------------------------------
def _decoder_kernel(x4_ref, x3_ref, x2_ref, x1_ref,
                    w1_ref, b1_ref, w2_ref, b2_ref, w3_ref, b3_ref,
                    k1_ref, uh2_ref, uw2t_ref, uh3_ref, uw3t_ref,
                    uh4_ref, uw4t_ref, out_ref):
    f32 = jnp.float32
    cg = out_ref.shape[0]                               # channels in this group
    hb, wb = uh2_ref.shape[1], uw2t_ref.shape[0]        # x3-level spatial
    hc, wc = uh3_ref.shape[1], uw3t_ref.shape[0]        # x2-level spatial

    # ---- Fold the three 1x1 convs for this group's output channels ---------
    # (1x1 conv commutes with per-channel bilinear upsampling; interpolation
    #  weights sum to 1, so biases commute as well.)
    w3g = w3_ref[...]                                                   # (cg, C2)
    b3g = b3_ref[...]                                                   # (cg, 1)
    w32g = jnp.dot(w3g, w2_ref[...], preferred_element_type=f32)        # (cg, C3)
    b32g = jnp.dot(w3g, b2_ref[...], preferred_element_type=f32)        # (cg, 1)
    w321g = jnp.dot(w32g, w1_ref[...], preferred_element_type=f32)      # (cg, C4)
    b321g = jnp.dot(w32g, b1_ref[...], preferred_element_type=f32)      # (cg, 1)

    # ---- Channel mixing: lane-dense 2-D matmuls over flattened spatial -----
    t1 = jnp.dot(w321g, x4_ref[...], preferred_element_type=f32) + b321g  # (cg, ha*wa)
    s3 = jnp.dot(w32g, x3_ref[...], preferred_element_type=f32) + b32g    # (cg, hb*wb)
    s2 = jnp.dot(w3g, x2_ref[...], preferred_element_type=f32) + b3g      # (cg, hc*wc)

    # ---- Stage-A 2x upsample via Kronecker matrix (stays flat & lane-dense) -
    t2 = jnp.dot(t1, k1_ref[...], preferred_element_type=f32) + s3        # (cg, hb*wb)

    t2 = t2.reshape(cg, hb, wb)
    s2 = s2.reshape(cg, hc, wc)

    uh2, uw2t = uh2_ref[...], uw2t_ref[...]
    uh3, uw3t = uh3_ref[...], uw3t_ref[...]
    uh4, uw4t = uh4_ref[...], uw4t_ref[...]

    # ---- Remaining upsamples: separable per-channel 2-D dots (unrolled) ----
    for j in range(cg):
        v = t2[j]                                                          # (hb, wb)
        v = jnp.dot(uh2, jnp.dot(v, uw2t, preferred_element_type=f32),
                    preferred_element_type=f32)                            # (hc, wc)
        v = v + s2[j]
        v = jnp.dot(uh3, jnp.dot(v, uw3t, preferred_element_type=f32),
                    preferred_element_type=f32)                            # (hd, wd)
        v = v + x1_ref[j]
        v = jnp.dot(uh4, jnp.dot(v, uw4t, preferred_element_type=f32),
                    preferred_element_type=f32)                            # (2hd, 2wd)
        out_ref[j] = v


# ----------------------------------------------------------------------------
# Wrapper: one pallas_call for the whole decoder
# ----------------------------------------------------------------------------
def decoder_forward(params, x1, x2, x3, x4):
    n, c4, ha, wa = x4.shape
    _, c3, hb, wb = x3.shape
    _, c2, hc, wc = x2.shape
    _, c1, hd, wd = x1.shape
    w1, b1 = params["w1"], params["b1"]
    w2, b2 = params["w2"], params["b2"]
    w3, b3 = params["w3"], params["b3"]
    cout = w3.shape[0]

    # Shape sanity (matches BaseDecoder.forward).
    assert w1.shape == (c3, c4) and w2.shape == (c2, c3) and w3.shape == (c1, c2)
    assert (hb, wb) == (2 * ha, 2 * wa)
    assert (hc, wc) == (2 * hb, 2 * wb)
    assert (hd, wd) == (2 * hc, 2 * wc)

    # Output-channel groups: keep weight row-blocks a multiple of 8 sublanes.
    cg = 8 if (cout % 8 == 0 and cout > 8) else cout
    groups = cout // cg
    grid = (n, groups)

    # Interpolation operators (constants under jit).
    k1 = jnp.asarray(_kron_upsample_matrix_np(ha, wa))          # (ha*wa, 4*ha*wa)
    uh2 = jnp.asarray(_bilinear_matrix_np(hb))                  # (2hb, hb)
    uw2t = jnp.asarray(np.ascontiguousarray(_bilinear_matrix_np(wb).T))
    uh3 = jnp.asarray(_bilinear_matrix_np(hc))
    uw3t = jnp.asarray(np.ascontiguousarray(_bilinear_matrix_np(wc).T))
    uh4 = jnp.asarray(_bilinear_matrix_np(hd))
    uw4t = jnp.asarray(np.ascontiguousarray(_bilinear_matrix_np(wd).T))

    # Lane-dense flattened views (contiguous -> free reshapes, no data movement).
    x4f = x4.reshape(n, c4, ha * wa)
    x3f = x3.reshape(n, c3, hb * wb)
    x2f = x2.reshape(n, c2, hc * wc)

    const2 = lambda i, g: (0, 0)
    in_specs = [
        pl.BlockSpec((None, c4, ha * wa), lambda i, g: (i, 0, 0)),   # x4 (flat)
        pl.BlockSpec((None, c3, hb * wb), lambda i, g: (i, 0, 0)),   # x3 (flat)
        pl.BlockSpec((None, c2, hc * wc), lambda i, g: (i, 0, 0)),   # x2 (flat)
        pl.BlockSpec((None, cg, hd, wd), lambda i, g: (i, g, 0, 0)), # x1 (4-D)
        pl.BlockSpec((c3, c4), const2),                              # w1 (full)
        pl.BlockSpec((c3, 1), const2),                               # b1
        pl.BlockSpec((c2, c3), const2),                              # w2 (full)
        pl.BlockSpec((c2, 1), const2),                               # b2
        pl.BlockSpec((cg, c2), lambda i, g: (g, 0)),                 # w3 rows/group
        pl.BlockSpec((cg, 1), lambda i, g: (g, 0)),                  # b3 rows/group
        pl.BlockSpec((ha * wa, 4 * ha * wa), const2),                # K (stage A)
        pl.BlockSpec((2 * hb, hb), const2),                          # uh2
        pl.BlockSpec((wb, 2 * wb), const2),                          # uw2^T
        pl.BlockSpec((2 * hc, hc), const2),                          # uh3
        pl.BlockSpec((wc, 2 * wc), const2),                          # uw3^T
        pl.BlockSpec((2 * hd, hd), const2),                          # uh4
        pl.BlockSpec((wd, 2 * wd), const2),                          # uw4^T
    ]
    out_spec = pl.BlockSpec((None, cg, 2 * hd, 2 * wd), lambda i, g: (i, g, 0, 0))

    return pl.pallas_call(
        _decoder_kernel,
        out_shape=jax.ShapeDtypeStruct((n, cout, 2 * hd, 2 * wd), jnp.float32),
        grid=grid,
        in_specs=in_specs,
        out_specs=out_spec,
        compiler_params=pltpu.CompilerParams(
            dimension_semantics=("parallel", "parallel"),
            vmem_limit_bytes=_VMEM_LIMIT),
    )(x4f, x3f, x2f, x1,
      w1, b1.reshape(c3, 1), w2, b2.reshape(c2, 1), w3, b3.reshape(cout, 1),
      k1, uh2, uw2t, uh3, uw3t, uh4, uw4t)


# ----------------------------------------------------------------------------
# Parameters (deterministic init, PyTorch Conv2d default U(-1/sqrt(fan_in), .))
# Weights stored as (Cout, Cin)  == PyTorch (Cout, Cin, 1, 1) squeezed.
# ----------------------------------------------------------------------------
def init_params(key):
    ks = jax.random.split(key, 8)

    def conv_init(kw, kb, cin, cout):
        bound = 1.0 / np.sqrt(cin)  # 1x1 kernel -> fan_in = cin
        w = jax.random.uniform(kw, (cout, cin), jnp.float32, -bound, bound)
        b = jax.random.uniform(kb, (cout,), jnp.float32, -bound, bound)
        return w, b

    w1, b1 = conv_init(ks[0], ks[1], 128, 64)   # conv_up1
    w2, b2 = conv_init(ks[2], ks[3], 64, 32)    # conv_up2
    w3, b3 = conv_init(ks[4], ks[5], 32, 16)    # conv_up3
    w4, b4 = conv_init(ks[6], ks[7], 16, 16)    # conv_up4 (unused in forward)
    return dict(w1=w1, b1=b1, w2=w2, b2=b2, w3=w3, b3=b3, w4=w4, b4=b4)


# ----------------------------------------------------------------------------
# Faithful per-stage pure-JAX reference (matches the PyTorch forward)
# ----------------------------------------------------------------------------
def _ref_upsample(x):
    _, _, h, w = x.shape
    uh = jnp.asarray(_bilinear_matrix_np(h), jnp.float32)
    uw = jnp.asarray(_bilinear_matrix_np(w), jnp.float32)
    return jnp.einsum("ph,nchw,qw->ncpq", uh, x, uw,
                      precision=jax.lax.Precision.HIGHEST)


def _ref_conv(x, w, b):
    return jnp.einsum("oc,nchw->nohw", w, x,
                      precision=jax.lax.Precision.HIGHEST) + b[None, :, None, None]


def decoder_reference(params, x1, x2, x3, x4):
    a = _ref_upsample(_ref_conv(x4, params["w1"], params["b1"]))
    b = _ref_upsample(_ref_conv(x3 + a, params["w2"], params["b2"]))
    c = _ref_upsample(_ref_conv(x2 + b, params["w3"], params["b3"]))
    return _ref_upsample(x1 + c)


# ----------------------------------------------------------------------------
if __name__ == "__main__":
    key = jax.random.PRNGKey(0)
    kp, k1, k2, k3, k4 = jax.random.split(key, 5)
    params = init_params(kp)

    # Small shapes consistent with the module's channel pyramid (NCHW).
    x1 = jax.random.normal(k1, (2, 16, 64, 64), jnp.float32)
    x2 = jax.random.normal(k2, (2, 32, 32, 32), jnp.float32)
    x3 = jax.random.normal(k3, (2, 64, 16, 16), jnp.float32)
    x4 = jax.random.normal(k4, (2, 128, 8, 8), jnp.float32)

    fwd = jax.jit(decoder_forward)
    out = jax.block_until_ready(fwd(params, x1, x2, x3, x4))

    ref = jax.block_until_ready(decoder_reference(params, x1, x2, x3, x4))
    assert out.shape == (2, 16, 128, 128), out.shape
    assert np.allclose(np.asarray(out), np.asarray(ref), atol=2e-2, rtol=2e-2), (
        "max abs diff %g" % float(np.max(np.abs(np.asarray(out) - np.asarray(ref)))))

    print("KERNEL_OK")
</pallas_src>

<mosaic_0001>
module attributes {stable_mosaic.version = 11 : i64} {
  func.func @_decoder_kernel(%arg0: i32, %arg1: i32, %arg2: memref<1x128x64xf32, #tpu.memory_space<vmem>>, %arg3: memref<1x64x256xf32, #tpu.memory_space<vmem>>, %arg4: memref<1x32x1024xf32, #tpu.memory_space<vmem>>, %arg5: memref<1x8x64x64xf32, #tpu.memory_space<vmem>>, %arg6: memref<64x128xf32, #tpu.memory_space<vmem>>, %arg7: memref<64x1xf32, #tpu.memory_space<vmem>>, %arg8: memref<32x64xf32, #tpu.memory_space<vmem>>, %arg9: memref<32x1xf32, #tpu.memory_space<vmem>>, %arg10: memref<8x32xf32, #tpu.memory_space<vmem>>, %arg11: memref<8x1xf32, #tpu.memory_space<vmem>>, %arg12: memref<64x256xf32, #tpu.memory_space<vmem>>, %arg13: memref<32x16xf32, #tpu.memory_space<vmem>>, %arg14: memref<16x32xf32, #tpu.memory_space<vmem>>, %arg15: memref<64x32xf32, #tpu.memory_space<vmem>>, %arg16: memref<32x64xf32, #tpu.memory_space<vmem>>, %arg17: memref<128x64xf32, #tpu.memory_space<vmem>>, %arg18: memref<64x128xf32, #tpu.memory_space<vmem>>, %arg19: memref<1x8x128x128xf32, #tpu.memory_space<vmem>>) attributes {dimension_semantics = [#tpu.dimension_semantics<parallel>, #tpu.dimension_semantics<parallel>], iteration_bounds = array<i64: 2, 2>, scalar_prefetch = 0 : i64, scratch_operands = 0 : i64, tpu.core_type = #tpu.core_type<tc>, window_params = [{transform_indices = @transform_0, window_bounds = array<i64: 1, 128, 64>}, {transform_indices = @transform_1, window_bounds = array<i64: 1, 64, 256>}, {transform_indices = @transform_2, window_bounds = array<i64: 1, 32, 1024>}, {transform_indices = @transform_3, window_bounds = array<i64: 1, 8, 64, 64>}, {pipeline_mode = #tpu.pipeline_mode<synchronous>, transform_indices = @transform_4, window_bounds = array<i64: 64, 128>}, {pipeline_mode = #tpu.pipeline_mode<synchronous>, transform_indices = @transform_5, window_bounds = array<i64: 64, 1>}, {pipeline_mode = #tpu.pipeline_mode<synchronous>, transform_indices = @transform_6, window_bounds = array<i64: 32, 64>}, {pipeline_mode = #tpu.pipeline_mode<synchronous>, transform_indices = @transform_7, window_bounds = array<i64: 32, 1>}, {transform_indices = @transform_8, window_bounds = array<i64: 8, 32>}, {transform_indices = @transform_9, window_bounds = array<i64: 8, 1>}, {pipeline_mode = #tpu.pipeline_mode<synchronous>, transform_indices = @transform_10, window_bounds = array<i64: 64, 256>}, {pipeline_mode = #tpu.pipeline_mode<synchronous>, transform_indices = @transform_11, window_bounds = array<i64: 32, 16>}, {pipeline_mode = #tpu.pipeline_mode<synchronous>, transform_indices = @transform_12, window_bounds = array<i64: 16, 32>}, {pipeline_mode = #tpu.pipeline_mode<synchronous>, transform_indices = @transform_13, window_bounds = array<i64: 64, 32>}, {pipeline_mode = #tpu.pipeline_mode<synchronous>, transform_indices = @transform_14, window_bounds = array<i64: 32, 64>}, {pipeline_mode = #tpu.pipeline_mode<synchronous>, transform_indices = @transform_15, window_bounds = array<i64: 128, 64>}, {pipeline_mode = #tpu.pipeline_mode<synchronous>, transform_indices = @transform_16, window_bounds = array<i64: 64, 128>}, {transform_indices = @transform_17, window_bounds = array<i64: 1, 8, 128, 128>}]} {
    %c0 = arith.constant 0 : index
    %c0_0 = arith.constant 0 : index
    %0 = vector.load %arg10[%c0, %c0_0] : memref<8x32xf32, #tpu.memory_space<vmem>>, vector<8x32xf32>
    %c0_1 = arith.constant 0 : index
    %c0_2 = arith.constant 0 : index
    %1 = vector.load %arg11[%c0_1, %c0_2] : memref<8x1xf32, #tpu.memory_space<vmem>>, vector<8x1xf32>
    %c0_3 = arith.constant 0 : index
    %c0_4 = arith.constant 0 : index
    %2 = vector.load %arg8[%c0_3, %c0_4] : memref<32x64xf32, #tpu.memory_space<vmem>>, vector<32x64xf32>
    %cst = arith.constant dense<0.000000e+00> : vector<8x64xf32>
    %3 = tpu.matmul %0, %2, %cst {dimension_numbers = #tpu.dot_dimension_numbers<[1], [0], [0], [1], [0, 0, 1, 1], [], []>} : vector<8x32xf32>, vector<32x64xf32>, vector<8x64xf32> -> vector<8x64xf32>
    %c0_5 = arith.constant 0 : index
    %c0_6 = arith.constant 0 : index
    %4 = vector.load %arg9[%c0_5, %c0_6] : memref<32x1xf32, #tpu.memory_space<vmem>>, vector<32x1xf32>
    %cst_7 = arith.constant dense<0.000000e+00> : vector<8x1xf32>
    %5 = tpu.matmul %0, %4, %cst_7 {dimension_numbers = #tpu.dot_dimension_numbers<[1], [0], [0], [1], [0, 0, 1, 1], [], []>} : vector<8x32xf32>, vector<32x1xf32>, vector<8x1xf32> -> vector<8x1xf32>
    %c0_8 = arith.constant 0 : index
    %c0_9 = arith.constant 0 : index
    %6 = vector.load %arg6[%c0_8, %c0_9] : memref<64x128xf32, #tpu.memory_space<vmem>>, vector<64x128xf32>
    %cst_10 = arith.constant dense<0.000000e+00> : vector<8x128xf32>
    %7 = tpu.matmul %3, %6, %cst_10 {dimension_numbers = #tpu.dot_dimension_numbers<[1], [0], [0], [1], [0, 0, 1, 1], [], []>} : vector<8x64xf32>, vector<64x128xf32>, vector<8x128xf32> -> vector<8x128xf32>
    %c0_11 = arith.constant 0 : index
    %c0_12 = arith.constant 0 : index
    %8 = vector.load %arg7[%c0_11, %c0_12] : memref<64x1xf32, #tpu.memory_space<vmem>>, vector<64x1xf32>
    %cst_13 = arith.constant dense<0.000000e+00> : vector<8x1xf32>
    %9 = tpu.matmul %3, %8, %cst_13 {dimension_numbers = #tpu.dot_dimension_numbers<[1], [0], [0], [1], [0, 0, 1, 1], [], []>} : vector<8x64xf32>, vector<64x1xf32>, vector<8x1xf32> -> vector<8x1xf32>
    %c0_14 = arith.constant 0 : index
    %c0_15 = arith.constant 0 : index
    %c0_16 = arith.constant 0 : index
    %10 = vector.load %arg2[%c0_14, %c0_15, %c0_16] : memref<1x128x64xf32, #tpu.memory_space<vmem>>, vector<1x128x64xf32>
    %11 = vector.shape_cast %10 : vector<1x128x64xf32> to vector<128x64xf32>
    %cst_17 = arith.constant dense<0.000000e+00> : vector<8x64xf32>
    %12 = tpu.matmul %7, %11, %cst_17 {dimension_numbers = #tpu.dot_dimension_numbers<[1], [0], [0], [1], [0, 0, 1, 1], [], []>} : vector<8x128xf32>, vector<128x64xf32>, vector<8x64xf32> -> vector<8x64xf32>
    %13 = vector.broadcast %9 : vector<8x1xf32> to vector<8x64xf32>
    %14 = arith.addf %12, %13 : vector<8x64xf32>
    %c0_18 = arith.constant 0 : index
    %c0_19 = arith.constant 0 : index
    %c0_20 = arith.constant 0 : index
    %15 = vector.load %arg3[%c0_18, %c0_19, %c0_20] : memref<1x64x256xf32, #tpu.memory_space<vmem>>, vector<1x64x256xf32>
    %16 = vector.shape_cast %15 : vector<1x64x256xf32> to vector<64x256xf32>
    %cst_21 = arith.constant dense<0.000000e+00> : vector<8x256xf32>
    %17 = tpu.matmul %3, %16, %cst_21 {dimension_numbers = #tpu.dot_dimension_numbers<[1], [0], [0], [1], [0, 0, 1, 1], [], []>} : vector<8x64xf32>, vector<64x256xf32>, vector<8x256xf32> -> vector<8x256xf32>
    %18 = vector.broadcast %5 : vector<8x1xf32> to vector<8x256xf32>
    %19 = arith.addf %17, %18 : vector<8x256xf32>
    %c0_22 = arith.constant 0 : index
    %c0_23 = arith.constant 0 : index
    %c0_24 = arith.constant 0 : index
    %20 = vector.load %arg4[%c0_22, %c0_23, %c0_24] : memref<1x32x1024xf32, #tpu.memory_space<vmem>>, vector<1x32x1024xf32>
    %21 = vector.shape_cast %20 : vector<1x32x1024xf32> to vector<32x1024xf32>
    %cst_25 = arith.constant dense<0.000000e+00> : vector<8x1024xf32>
    %22 = tpu.matmul %0, %21, %cst_25 {dimension_numbers = #tpu.dot_dimension_numbers<[1], [0], [0], [1], [0, 0, 1, 1], [], []>} : vector<8x32xf32>, vector<32x1024xf32>, vector<8x1024xf32> -> vector<8x1024xf32>
    %23 = vector.broadcast %1 : vector<8x1xf32> to vector<8x1024xf32>
    %24 = arith.addf %22, %23 : vector<8x1024xf32>
    %c0_26 = arith.constant 0 : index
    %c0_27 = arith.constant 0 : index
    %25 = vector.load %arg12[%c0_26, %c0_27] : memref<64x256xf32, #tpu.memory_space<vmem>>, vector<64x256xf32>
    %cst_28 = arith.constant dense<0.000000e+00> : vector<8x256xf32>
    %26 = tpu.matmul %14, %25, %cst_28 {dimension_numbers = #tpu.dot_dimension_numbers<[1], [0], [0], [1], [0, 0, 1, 1], [], []>} : vector<8x64xf32>, vector<64x256xf32>, vector<8x256xf32> -> vector<8x256xf32>
    %27 = arith.addf %26, %19 : vector<8x256xf32>
    %28 = vector.shape_cast %27 : vector<8x256xf32> to vector<8x16x16xf32>
    %29 = vector.shape_cast %24 : vector<8x1024xf32> to vector<8x32x32xf32>
    %c0_29 = arith.constant 0 : index
    %c0_30 = arith.constant 0 : index
    %30 = vector.load %arg13[%c0_29, %c0_30] : memref<32x16xf32, #tpu.memory_space<vmem>>, vector<32x16xf32>
    %c0_31 = arith.constant 0 : index
    %c0_32 = arith.constant 0 : index
    %31 = vector.load %arg14[%c0_31, %c0_32] : memref<16x32xf32, #tpu.memory_space<vmem>>, vector<16x32xf32>
    %c0_33 = arith.constant 0 : index
    %c0_34 = arith.constant 0 : index
    %32 = vector.load %arg15[%c0_33, %c0_34] : memref<64x32xf32, #tpu.memory_space<vmem>>, vector<64x32xf32>
    %c0_35 = arith.constant 0 : index
    %c0_36 = arith.constant 0 : index
    %33 = vector.load %arg16[%c0_35, %c0_36] : memref<32x64xf32, #tpu.memory_space<vmem>>, vector<32x64xf32>
    %c0_37 = arith.constant 0 : index
    %c0_38 = arith.constant 0 : index
    %34 = vector.load %arg17[%c0_37, %c0_38] : memref<128x64xf32, #tpu.memory_space<vmem>>, vector<128x64xf32>
    %c0_39 = arith.constant 0 : index
    %c0_40 = arith.constant 0 : index
    %35 = vector.load %arg18[%c0_39, %c0_40] : memref<64x128xf32, #tpu.memory_space<vmem>>, vector<64x128xf32>
    %36 = vector.extract_strided_slice %28 {offsets = [0, 0, 0], sizes = [1, 16, 16], strides = [1, 1, 1]} : vector<8x16x16xf32> to vector<1x16x16xf32>
    %37 = vector.shape_cast %36 : vector<1x16x16xf32> to vector<16x16xf32>
    %cst_41 = arith.constant dense<0.000000e+00> : vector<16x32xf32>
    %38 = tpu.matmul %37, %31, %cst_41 {dimension_numbers = #tpu.dot_dimension_numbers<[1], [0], [0], [1], [0, 0, 1, 1], [], []>} : vector<16x16xf32>, vector<16x32xf32>, vector<16x32xf32> -> vector<16x32xf32>
    %cst_42 = arith.constant dense<0.000000e+00> : vector<32x32xf32>
    %39 = tpu.matmul %30, %38, %cst_42 {dimension_numbers = #tpu.dot_dimension_numbers<[1], [0], [0], [1], [0, 0, 1, 1], [], []>} : vector<32x16xf32>, vector<16x32xf32>, vector<32x32xf32> -> vector<32x32xf32>
    %40 = vector.extract_strided_slice %29 {offsets = [0, 0, 0], sizes = [1, 32, 32], strides = [1, 1, 1]} : vector<8x32x32xf32> to vector<1x32x32xf32>
    %41 = vector.shape_cast %40 : vector<1x32x32xf32> to vector<32x32xf32>
    %42 = arith.addf %39, %41 : vector<32x32xf32>
    %cst_43 = arith.constant dense<0.000000e+00> : vector<32x64xf32>
    %43 = tpu.matmul %42, %33, %cst_43 {dimension_numbers = #tpu.dot_dimension_numbers<[1], [0], [0], [1], [0, 0, 1, 1], [], []>} : vector<32x32xf32>, vector<32x64xf32>, vector<32x64xf32> -> vector<32x64xf32>
    %cst_44 = arith.constant dense<0.000000e+00> : vector<64x64xf32>
    %44 = tpu.matmul %32, %43, %cst_44 {dimension_numbers = #tpu.dot_dimension_numbers<[1], [0], [0], [1], [0, 0, 1, 1], [], []>} : vector<64x32xf32>, vector<32x64xf32>, vector<64x64xf32> -> vector<64x64xf32>
    %c0_45 = arith.constant 0 : index
    %c0_46 = arith.constant 0 : index
    %c0_47 = arith.constant 0 : index
    %c0_48 = arith.constant 0 : index
    %45 = vector.load %arg5[%c0_45, %c0_46, %c0_47, %c0_48] : memref<1x8x64x64xf32, #tpu.memory_space<vmem>>, vector<1x1x64x64xf32>
    %46 = vector.shape_cast %45 : vector<1x1x64x64xf32> to vector<64x64xf32>
    %47 = arith.addf %44, %46 : vector<64x64xf32>
    %cst_49 = arith.constant dense<0.000000e+00> : vector<64x128xf32>
    %48 = tpu.matmul %47, %35, %cst_49 {dimension_numbers = #tpu.dot_dimension_numbers<[1], [0], [0], [1], [0, 0, 1, 1], [], []>} : vector<64x64xf32>, vector<64x128xf32>, vector<64x128xf32> -> vector<64x128xf32>
    %cst_50 = arith.constant dense<0.000000e+00> : vector<128x128xf32>
    %49 = tpu.matmul %34, %48, %cst_50 {dimension_numbers = #tpu.dot_dimension_numbers<[1], [0], [0], [1], [0, 0, 1, 1], [], []>} : vector<128x64xf32>, vector<64x128xf32>, vector<128x128xf32> -> vector<128x128xf32>
    %c0_51 = arith.constant 0 : index
    %c0_52 = arith.constant 0 : index
    %c0_53 = arith.constant 0 : index
    %c0_54 = arith.constant 0 : index
    %50 = vector.load %arg19[%c0_51, %c0_52, %c0_53, %c0_54] : memref<1x8x128x128xf32, #tpu.memory_space<vmem>>, vector<1x1x128x128xf32>
    %51 = vector.shape_cast %50 : vector<1x1x128x128xf32> to vector<128x128xf32>
    %52 = vector.shape_cast %49 : vector<128x128xf32> to vector<1x1x128x128xf32>
    tpu.vector_store %arg19[%c0_51, %c0_52, %c0_53, %c0_54], %52 {strides = array<i32>} : memref<1x8x128x128xf32, #tpu.memory_space<vmem>>, vector<1x1x128x128xf32>,
    %53 = vector.extract_strided_slice %28 {offsets = [1, 0, 0], sizes = [1, 16, 16], strides = [1, 1, 1]} : vector<8x16x16xf32> to vector<1x16x16xf32>
    %54 = vector.shape_cast %53 : vector<1x16x16xf32> to vector<16x16xf32>
    %cst_55 = arith.constant dense<0.000000e+00> : vector<16x32xf32>
    %55 = tpu.matmul %54, %31, %cst_55 {dimension_numbers = #tpu.dot_dimension_numbers<[1], [0], [0], [1], [0, 0, 1, 1], [], []>} : vector<16x16xf32>, vector<16x32xf32>, vector<16x32xf32> -> vector<16x32xf32>
    %cst_56 = arith.constant dense<0.000000e+00> : vector<32x32xf32>
    %56 = tpu.matmul %30, %55, %cst_56 {dimension_numbers = #tpu.dot_dimension_numbers<[1], [0], [0], [1], [0, 0, 1, 1], [], []>} : vector<32x16xf32>, vector<16x32xf32>, vector<32x32xf32> -> vector<32x32xf32>
    %57 = vector.extract_strided_slice %29 {offsets = [1, 0, 0], sizes = [1, 32, 32], strides = [1, 1, 1]} : vector<8x32x32xf32> to vector<1x32x32xf32>
    %58 = vector.shape_cast %57 : vector<1x32x32xf32> to vector<32x32xf32>
    %59 = arith.addf %56, %58 : vector<32x32xf32>
    %cst_57 = arith.constant dense<0.000000e+00> : vector<32x64xf32>
    %60 = tpu.matmul %59, %33, %cst_57 {dimension_numbers = #tpu.dot_dimension_numbers<[1], [0], [0], [1], [0, 0, 1, 1], [], []>} : vector<32x32xf32>, vector<32x64xf32>, vector<32x64xf32> -> vector<32x64xf32>
    %cst_58 = arith.constant dense<0.000000e+00> : vector<64x64xf32>
    %61 = tpu.matmul %32, %60, %cst_58 {dimension_numbers = #tpu.dot_dimension_numbers<[1], [0], [0], [1], [0, 0, 1, 1], [], []>} : vector<64x32xf32>, vector<32x64xf32>, vector<64x64xf32> -> vector<64x64xf32>
    %c0_59 = arith.constant 0 : index
    %c1 = arith.constant 1 : index
    %c0_60 = arith.constant 0 : index
    %c0_61 = arith.constant 0 : index
    %62 = vector.load %arg5[%c0_59, %c1, %c0_60, %c0_61] : memref<1x8x64x64xf32, #tpu.memory_space<vmem>>, vector<1x1x64x64xf32>
    %63 = vector.shape_cast %62 : vector<1x1x64x64xf32> to vector<64x64xf32>
    %64 = arith.addf %61, %63 : vector<64x64xf32>
    %cst_62 = arith.constant dense<0.000000e+00> : vector<64x128xf32>
    %65 = tpu.matmul %64, %35, %cst_62 {dimension_numbers = #tpu.dot_dimension_numbers<[1], [0], [0], [1], [0, 0, 1, 1], [], []>} : vector<64x64xf32>, vector<64x128xf32>, vector<64x128xf32> -> vector<64x128xf32>
    %cst_63 = arith.constant dense<0.000000e+00> : vector<128x128xf32>
    %66 = tpu.matmul %34, %65, %cst_63 {dimension_numbers = #tpu.dot_dimension_numbers<[1], [0], [0], [1], [0, 0, 1, 1], [], []>} : vector<128x64xf32>, vector<64x128xf32>, vector<128x128xf32> -> vector<128x128xf32>
    %c0_64 = arith.constant 0 : index
    %c1_65 = arith.constant 1 : index
    %c0_66 = arith.constant 0 : index
    %c0_67 = arith.constant 0 : index
    %67 = vector.load %arg19[%c0_64, %c1_65, %c0_66, %c0_67] : memref<1x8x128x128xf32, #tpu.memory_space<vmem>>, vector<1x1x128x128xf32>
    %68 = vector.shape_cast %67 : vector<1x1x128x128xf32> to vector<128x128xf32>
    %69 = vector.shape_cast %66 : vector<128x128xf32> to vector<1x1x128x128xf32>
    tpu.vector_store %arg19[%c0_64, %c1_65, %c0_66, %c0_67], %69 {strides = array<i32>} : memref<1x8x128x128xf32, #tpu.memory_space<vmem>>, vector<1x1x128x128xf32>,
    %70 = vector.extract_strided_slice %28 {offsets = [2, 0, 0], sizes = [1, 16, 16], strides = [1, 1, 1]} : vector<8x16x16xf32> to vector<1x16x16xf32>
    %71 = vector.shape_cast %70 : vector<1x16x16xf32> to vector<16x16xf32>
    %cst_68 = arith.constant dense<0.000000e+00> : vector<16x32xf32>
    %72 = tpu.matmul %71, %31, %cst_68 {dimension_numbers = #tpu.dot_dimension_numbers<[1], [0], [0], [1], [0, 0, 1, 1], [], []>} : vector<16x16xf32>, vector<16x32xf32>, vector<16x32xf32> -> vector<16x32xf32>
    %cst_69 = arith.constant dense<0.000000e+00> : vector<32x32xf32>
    %73 = tpu.matmul %30, %72, %cst_69 {dimension_numbers = #tpu.dot_dimension_numbers<[1], [0], [0], [1], [0, 0, 1, 1], [], []>} : vector<32x16xf32>, vector<16x32xf32>, vector<32x32xf32> -> vector<32x32xf32>
    %74 = vector.extract_strided_slice %29 {offsets = [2, 0, 0], sizes = [1, 32, 32], strides = [1, 1, 1]} : vector<8x32x32xf32> to vector<1x32x32xf32>
    %75 = vector.shape_cast %74 : vector<1x32x32xf32> to vector<32x32xf32>
    %76 = arith.addf %73, %75 : vector<32x32xf32>
    %cst_70 = arith.constant dense<0.000000e+00> : vector<32x64xf32>
    %77 = tpu.matmul %76, %33, %cst_70 {dimension_numbers = #tpu.dot_dimension_numbers<[1], [0], [0], [1], [0, 0, 1, 1], [], []>} : vector<32x32xf32>, vector<32x64xf32>, vector<32x64xf32> -> vector<32x64xf32>
    %cst_71 = arith.constant dense<0.000000e+00> : vector<64x64xf32>
    %78 = tpu.matmul %32, %77, %cst_71 {dimension_numbers = #tpu.dot_dimension_numbers<[1], [0], [0], [1], [0, 0, 1, 1], [], []>} : vector<64x32xf32>, vector<32x64xf32>, vector<64x64xf32> -> vector<64x64xf32>
    %c0_72 = arith.constant 0 : index
    %c2 = arith.constant 2 : index
    %c0_73 = arith.constant 0 : index
    %c0_74 = arith.constant 0 : index
    %79 = vector.load %arg5[%c0_72, %c2, %c0_73, %c0_74] : memref<1x8x64x64xf32, #tpu.memory_space<vmem>>, vector<1x1x64x64xf32>
    %80 = vector.shape_cast %79 : vector<1x1x64x64xf32> to vector<64x64xf32>
    %81 = arith.addf %78, %80 : vector<64x64xf32>
    %cst_75 = arith.constant dense<0.000000e+00> : vector<64x128xf32>
    %82 = tpu.matmul %81, %35, %cst_75 {dimension_numbers = #tpu.dot_dimension_numbers<[1], [0], [0], [1], [0, 0, 1, 1], [], []>} : vector<64x64xf32>, vector<64x128xf32>, vector<64x128xf32> -> vector<64x128xf32>
    %cst_76 = arith.constant dense<0.000000e+00> : vector<128x128xf32>
    %83 = tpu.matmul %34, %82, %cst_76 {dimension_numbers = #tpu.dot_dimension_numbers<[1], [0], [0], [1], [0, 0, 1, 1], [], []>} : vector<128x64xf32>, vector<64x128xf32>, vector<128x128xf32> -> vector<128x128xf32>
    %c0_77 = arith.constant 0 : index
    %c2_78 = arith.constant 2 : index
    %c0_79 = arith.constant 0 : index
    %c0_80 = arith.constant 0 : index
    %84 = vector.load %arg19[%c0_77, %c2_78, %c0_79, %c0_80] : memref<1x8x128x128xf32, #tpu.memory_space<vmem>>, vector<1x1x128x128xf32>
    %85 = vector.shape_cast %84 : vector<1x1x128x128xf32> to vector<128x128xf32>
    %86 = vector.shape_cast %83 : vector<128x128xf32> to vector<1x1x128x128xf32>
    tpu.vector_store %arg19[%c0_77, %c2_78, %c0_79, %c0_80], %86 {strides = array<i32>} : memref<1x8x128x128xf32, #tpu.memory_space<vmem>>, vector<1x1x128x128xf32>,
    %87 = vector.extract_strided_slice %28 {offsets = [3, 0, 0], sizes = [1, 16, 16], strides = [1, 1, 1]} : vector<8x16x16xf32> to vector<1x16x16xf32>
    %88 = vector.shape_cast %87 : vector<1x16x16xf32> to vector<16x16xf32>
    %cst_81 = arith.constant dense<0.000000e+00> : vector<16x32xf32>
    %89 = tpu.matmul %88, %31, %cst_81 {dimension_numbers = #tpu.dot_dimension_numbers<[1], [0], [0], [1], [0, 0, 1, 1], [], []>} : vector<16x16xf32>, vector<16x32xf32>, vector<16x32xf32> -> vector<16x32xf32>
    %cst_82 = arith.constant dense<0.000000e+00> : vector<32x32xf32>
    %90 = tpu.matmul %30, %89, %cst_82 {dimension_numbers = #tpu.dot_dimension_numbers<[1], [0], [0], [1], [0, 0, 1, 1], [], []>} : vector<32x16xf32>, vector<16x32xf32>, vector<32x32xf32> -> vector<32x32xf32>
    %91 = vector.extract_strided_slice %29 {offsets = [3, 0, 0], sizes = [1, 32, 32], strides = [1, 1, 1]} : vector<8x32x32xf32> to vector<1x32x32xf32>
    %92 = vector.shape_cast %91 : vector<1x32x32xf32> to vector<32x32xf32>
    %93 = arith.addf %90, %92 : vector<32x32xf32>
    %cst_83 = arith.constant dense<0.000000e+00> : vector<32x64xf32>
    %94 = tpu.matmul %93, %33, %cst_83 {dimension_numbers = #tpu.dot_dimension_numbers<[1], [0], [0], [1], [0, 0, 1, 1], [], []>} : vector<32x32xf32>, vector<32x64xf32>, vector<32x64xf32> -> vector<32x64xf32>
    %cst_84 = arith.constant dense<0.000000e+00> : vector<64x64xf32>
    %95 = tpu.matmul %32, %94, %cst_84 {dimension_numbers = #tpu.dot_dimension_numbers<[1], [0], [0], [1], [0, 0, 1, 1], [], []>} : vector<64x32xf32>, vector<32x64xf32>, vector<64x64xf32> -> vector<64x64xf32>
    %c0_85 = arith.constant 0 : index
    %c3 = arith.constant 3 : index
    %c0_86 = arith.constant 0 : index
    %c0_87 = arith.constant 0 : index
    %96 = vector.load %arg5[%c0_85, %c3, %c0_86, %c0_87] : memref<1x8x64x64xf32, #tpu.memory_space<vmem>>, vector<1x1x64x64xf32>
    %97 = vector.shape_cast %96 : vector<1x1x64x64xf32> to vector<64x64xf32>
    %98 = arith.addf %95, %97 : vector<64x64xf32>
    %cst_88 = arith.constant dense<0.000000e+00> : vector<64x128xf32>
    %99 = tpu.matmul %98, %35, %cst_88 {dimension_numbers = #tpu.dot_dimension_numbers<[1], [0], [0], [1], [0, 0, 1, 1], [], []>} : vector<64x64xf32>, vector<64x128xf32>, vector<64x128xf32> -> vector<64x128xf32>
    %cst_89 = arith.constant dense<0.000000e+00> : vector<128x128xf32>
    %100 = tpu.matmul %34, %99, %cst_89 {dimension_numbers = #tpu.dot_dimension_numbers<[1], [0], [0], [1], [0, 0, 1, 1], [], []>} : vector<128x64xf32>, vector<64x128xf32>, vector<128x128xf32> -> vector<128x128xf32>
    %c0_90 = arith.constant 0 : index
    %c3_91 = arith.constant 3 : index
    %c0_92 = arith.constant 0 : index
    %c0_93 = arith.constant 0 : index
    %101 = vector.load %arg19[%c0_90, %c3_91, %c0_92, %c0_93] : memref<1x8x128x128xf32, #tpu.memory_space<vmem>>, vector<1x1x128x128xf32>
    %102 = vector.shape_cast %101 : vector<1x1x128x128xf32> to vector<128x128xf32>
    %103 = vector.shape_cast %100 : vector<128x128xf32> to vector<1x1x128x128xf32>
    tpu.vector_store %arg19[%c0_90, %c3_91, %c0_92, %c0_93], %103 {strides = array<i32>} : memref<1x8x128x128xf32, #tpu.memory_space<vmem>>, vector<1x1x128x128xf32>,
    %104 = vector.extract_strided_slice %28 {offsets = [4, 0, 0], sizes = [1, 16, 16], strides = [1, 1, 1]} : vector<8x16x16xf32> to vector<1x16x16xf32>
    %105 = vector.shape_cast %104 : vector<1x16x16xf32> to vector<16x16xf32>
    %cst_94 = arith.constant dense<0.000000e+00> : vector<16x32xf32>
    %106 = tpu.matmul %105, %31, %cst_94 {dimension_numbers = #tpu.dot_dimension_numbers<[1], [0], [0], [1], [0, 0, 1, 1], [], []>} : vector<16x16xf32>, vector<16x32xf32>, vector<16x32xf32> -> vector<16x32xf32>
    %cst_95 = arith.constant dense<0.000000e+00> : vector<32x32xf32>
    %107 = tpu.matmul %30, %106, %cst_95 {dimension_numbers = #tpu.dot_dimension_numbers<[1], [0], [0], [1], [0, 0, 1, 1], [], []>} : vector<32x16xf32>, vector<16x32xf32>, vector<32x32xf32> -> vector<32x32xf32>
    %108 = vector.extract_strided_slice %29 {offsets = [4, 0, 0], sizes = [1, 32, 32], strides = [1, 1, 1]} : vector<8x32x32xf32> to vector<1x32x32xf32>
    %109 = vector.shape_cast %108 : vector<1x32x32xf32> to vector<32x32xf32>
    %110 = arith.addf %107, %109 : vector<32x32xf32>
    %cst_96 = arith.constant dense<0.000000e+00> : vector<32x64xf32>
    %111 = tpu.matmul %110, %33, %cst_96 {dimension_numbers = #tpu.dot_dimension_numbers<[1], [0], [0], [1], [0, 0, 1, 1], [], []>} : vector<32x32xf32>, vector<32x64xf32>, vector<32x64xf32> -> vector<32x64xf32>
    %cst_97 = arith.constant dense<0.000000e+00> : vector<64x64xf32>
    %112 = tpu.matmul %32, %111, %cst_97 {dimension_numbers = #tpu.dot_dimension_numbers<[1], [0], [0], [1], [0, 0, 1, 1], [], []>} : vector<64x32xf32>, vector<32x64xf32>, vector<64x64xf32> -> vector<64x64xf32>
    %c0_98 = arith.constant 0 : index
    %c4 = arith.constant 4 : index
    %c0_99 = arith.constant 0 : index
    %c0_100 = arith.constant 0 : index
    %113 = vector.load %arg5[%c0_98, %c4, %c0_99, %c0_100] : memref<1x8x64x64xf32, #tpu.memory_space<vmem>>, vector<1x1x64x64xf32>
    %114 = vector.shape_cast %113 : vector<1x1x64x64xf32> to vector<64x64xf32>
    %115 = arith.addf %112, %114 : vector<64x64xf32>
    %cst_101 = arith.constant dense<0.000000e+00> : vector<64x128xf32>
    %116 = tpu.matmul %115, %35, %cst_101 {dimension_numbers = #tpu.dot_dimension_numbers<[1], [0], [0], [1], [0, 0, 1, 1], [], []>} : vector<64x64xf32>, vector<64x128xf32>, vector<64x128xf32> -> vector<64x128xf32>
    %cst_102 = arith.constant dense<0.000000e+00> : vector<128x128xf32>
    %117 = tpu.matmul %34, %116, %cst_102 {dimension_numbers = #tpu.dot_dimension_numbers<[1], [0], [0], [1], [0, 0, 1, 1], [], []>} : vector<128x64xf32>, vector<64x128xf32>, vector<128x128xf32> -> vector<128x128xf32>
    %c0_103 = arith.constant 0 : index
    %c4_104 = arith.constant 4 : index
    %c0_105 = arith.constant 0 : index
    %c0_106 = arith.constant 0 : index
    %118 = vector.load %arg19[%c0_103, %c4_104, %c0_105, %c0_106] : memref<1x8x128x128xf32, #tpu.memory_space<vmem>>, vector<1x1x128x128xf32>
    %119 = vector.shape_cast %118 : vector<1x1x128x128xf32> to vector<128x128xf32>
    %120 = vector.shape_cast %117 : vector<128x128xf32> to vector<1x1x128x128xf32>
    tpu.vector_store %arg19[%c0_103, %c4_104, %c0_105, %c0_106], %120 {strides = array<i32>} : memref<1x8x128x128xf32, #tpu.memory_space<vmem>>, vector<1x1x128x128xf32>,
    %121 = vector.extract_strided_slice %28 {offsets = [5, 0, 0], sizes = [1, 16, 16], strides = [1, 1, 1]} : vector<8x16x16xf32> to vector<1x16x16xf32>
    %122 = vector.shape_cast %121 : vector<1x16x16xf32> to vector<16x16xf32>
    %cst_107 = arith.constant dense<0.000000e+00> : vector<16x32xf32>
    %123 = tpu.matmul %122, %31, %cst_107 {dimension_numbers = #tpu.dot_dimension_numbers<[1], [0], [0], [1], [0, 0, 1, 1], [], []>} : vector<16x16xf32>, vector<16x32xf32>, vector<16x32xf32> -> vector<16x32xf32>
    %cst_108 = arith.constant dense<0.000000e+00> : vector<32x32xf32>
    %124 = tpu.matmul %30, %123, %cst_108 {dimension_numbers = #tpu.dot_dimension_numbers<[1], [0], [0], [1], [0, 0, 1, 1], [], []>} : vector<32x16xf32>, vector<16x32xf32>, vector<32x32xf32> -> vector<32x32xf32>
    %125 = vector.extract_strided_slice %29 {offsets = [5, 0, 0], sizes = [1, 32, 32], strides = [1, 1, 1]} : vector<8x32x32xf32> to vector<1x32x32xf32>
    %126 = vector.shape_cast %125 : vector<1x32x32xf32> to vector<32x32xf32>
    %127 = arith.addf %124, %126 : vector<32x32xf32>
    %cst_109 = arith.constant dense<0.000000e+00> : vector<32x64xf32>
    %128 = tpu.matmul %127, %33, %cst_109 {dimension_numbers = #tpu.dot_dimension_numbers<[1], [0], [0], [1], [0, 0, 1, 1], [], []>} : vector<32x32xf32>, vector<32x64xf32>, vector<32x64xf32> -> vector<32x64xf32>
    %cst_110 = arith.constant dense<0.000000e+00> : vector<64x64xf32>
    %129 = tpu.matmul %32, %128, %cst_110 {dimension_numbers = #tpu.dot_dimension_numbers<[1], [0], [0], [1], [0, 0, 1, 1], [], []>} : vector<64x32xf32>, vector<32x64xf32>, vector<64x64xf32> -> vector<64x64xf32>
    %c0_111 = arith.constant 0 : index
    %c5 = arith.constant 5 : index
    %c0_112 = arith.constant 0 : index
    %c0_113 = arith.constant 0 : index
    %130 = vector.load %arg5[%c0_111, %c5, %c0_112, %c0_113] : memref<1x8x64x64xf32, #tpu.memory_space<vmem>>, vector<1x1x64x64xf32>
    %131 = vector.shape_cast %130 : vector<1x1x64x64xf32> to vector<64x64xf32>
    %132 = arith.addf %129, %131 : vector<64x64xf32>
    %cst_114 = arith.constant dense<0.000000e+00> : vector<64x128xf32>
    %133 = tpu.matmul %132, %35, %cst_114 {dimension_numbers = #tpu.dot_dimension_numbers<[1], [0], [0], [1], [0, 0, 1, 1], [], []>} : vector<64x64xf32>, vector<64x128xf32>, vector<64x128xf32> -> vector<64x128xf32>
    %cst_115 = arith.constant dense<0.000000e+00> : vector<128x128xf32>
    %134 = tpu.matmul %34, %133, %cst_115 {dimension_numbers = #tpu.dot_dimension_numbers<[1], [0], [0], [1], [0, 0, 1, 1], [], []>} : vector<128x64xf32>, vector<64x128xf32>, vector<128x128xf32> -> vector<128x128xf32>
    %c0_116 = arith.constant 0 : index
    %c5_117 = arith.constant 5 : index
    %c0_118 = arith.constant 0 : index
    %c0_119 = arith.constant 0 : index
    %135 = vector.load %arg19[%c0_116, %c5_117, %c0_118, %c0_119] : memref<1x8x128x128xf32, #tpu.memory_space<vmem>>, vector<1x1x128x128xf32>
    %136 = vector.shape_cast %135 : vector<1x1x128x128xf32> to vector<128x128xf32>
    %137 = vector.shape_cast %134 : vector<128x128xf32> to vector<1x1x128x128xf32>
    tpu.vector_store %arg19[%c0_116, %c5_117, %c0_118, %c0_119], %137 {strides = array<i32>} : memref<1x8x128x128xf32, #tpu.memory_space<vmem>>, vector<1x1x128x128xf32>,
    %138 = vector.extract_strided_slice %28 {offsets = [6, 0, 0], sizes = [1, 16, 16], strides = [1, 1, 1]} : vector<8x16x16xf32> to vector<1x16x16xf32>
    %139 = vector.shape_cast %138 : vector<1x16x16xf32> to vector<16x16xf32>
    %cst_120 = arith.constant dense<0.000000e+00> : vector<16x32xf32>
    %140 = tpu.matmul %139, %31, %cst_120 {dimension_numbers = #tpu.dot_dimension_numbers<[1], [0], [0], [1], [0, 0, 1, 1], [], []>} : vector<16x16xf32>, vector<16x32xf32>, vector<16x32xf32> -> vector<16x32xf32>
    %cst_121 = arith.constant dense<0.000000e+00> : vector<32x32xf32>
    %141 = tpu.matmul %30, %140, %cst_121 {dimension_numbers = #tpu.dot_dimension_numbers<[1], [0], [0], [1], [0, 0, 1, 1], [], []>} : vector<32x16xf32>, vector<16x32xf32>, vector<32x32xf32> -> vector<32x32xf32>
    %142 = vector.extract_strided_slice %29 {offsets = [6, 0, 0], sizes = [1, 32, 32], strides = [1, 1, 1]} : vector<8x32x32xf32> to vector<1x32x32xf32>
    %143 = vector.shape_cast %142 : vector<1x32x32xf32> to vector<32x32xf32>
    %144 = arith.addf %141, %143 : vector<32x32xf32>
    %cst_122 = arith.constant dense<0.000000e+00> : vector<32x64xf32>
    %145 = tpu.matmul %144, %33, %cst_122 {dimension_numbers = #tpu.dot_dimension_numbers<[1], [0], [0], [1], [0, 0, 1, 1], [], []>} : vector<32x32xf32>, vector<32x64xf32>, vector<32x64xf32> -> vector<32x64xf32>
    %cst_123 = arith.constant dense<0.000000e+00> : vector<64x64xf32>
    %146 = tpu.matmul %32, %145, %cst_123 {dimension_numbers = #tpu.dot_dimension_numbers<[1], [0], [0], [1], [0, 0, 1, 1], [], []>} : vector<64x32xf32>, vector<32x64xf32>, vector<64x64xf32> -> vector<64x64xf32>
    %c0_124 = arith.constant 0 : index
    %c6 = arith.constant 6 : index
    %c0_125 = arith.constant 0 : index
    %c0_126 = arith.constant 0 : index
    %147 = vector.load %arg5[%c0_124, %c6, %c0_125, %c0_126] : memref<1x8x64x64xf32, #tpu.memory_space<vmem>>, vector<1x1x64x64xf32>
    %148 = vector.shape_cast %147 : vector<1x1x64x64xf32> to vector<64x64xf32>
    %149 = arith.addf %146, %148 : vector<64x64xf32>
    %cst_127 = arith.constant dense<0.000000e+00> : vector<64x128xf32>
    %150 = tpu.matmul %149, %35, %cst_127 {dimension_numbers = #tpu.dot_dimension_numbers<[1], [0], [0], [1], [0, 0, 1, 1], [], []>} : vector<64x64xf32>, vector<64x128xf32>, vector<64x128xf32> -> vector<64x128xf32>
    %cst_128 = arith.constant dense<0.000000e+00> : vector<128x128xf32>
    %151 = tpu.matmul %34, %150, %cst_128 {dimension_numbers = #tpu.dot_dimension_numbers<[1], [0], [0], [1], [0, 0, 1, 1], [], []>} : vector<128x64xf32>, vector<64x128xf32>, vector<128x128xf32> -> vector<128x128xf32>
    %c0_129 = arith.constant 0 : index
    %c6_130 = arith.constant 6 : index
    %c0_131 = arith.constant 0 : index
    %c0_132 = arith.constant 0 : index
    %152 = vector.load %arg19[%c0_129, %c6_130, %c0_131, %c0_132] : memref<1x8x128x128xf32, #tpu.memory_space<vmem>>, vector<1x1x128x128xf32>
    %153 = vector.shape_cast %152 : vector<1x1x128x128xf32> to vector<128x128xf32>
    %154 = vector.shape_cast %151 : vector<128x128xf32> to vector<1x1x128x128xf32>
    tpu.vector_store %arg19[%c0_129, %c6_130, %c0_131, %c0_132], %154 {strides = array<i32>} : memref<1x8x128x128xf32, #tpu.memory_space<vmem>>, vector<1x1x128x128xf32>,
    %155 = vector.extract_strided_slice %28 {offsets = [7, 0, 0], sizes = [1, 16, 16], strides = [1, 1, 1]} : vector<8x16x16xf32> to vector<1x16x16xf32>
    %156 = vector.shape_cast %155 : vector<1x16x16xf32> to vector<16x16xf32>
    %cst_133 = arith.constant dense<0.000000e+00> : vector<16x32xf32>
    %157 = tpu.matmul %156, %31, %cst_133 {dimension_numbers = #tpu.dot_dimension_numbers<[1], [0], [0], [1], [0, 0, 1, 1], [], []>} : vector<16x16xf32>, vector<16x32xf32>, vector<16x32xf32> -> vector<16x32xf32>
    %cst_134 = arith.constant dense<0.000000e+00> : vector<32x32xf32>
    %158 = tpu.matmul %30, %157, %cst_134 {dimension_numbers = #tpu.dot_dimension_numbers<[1], [0], [0], [1], [0, 0, 1, 1], [], []>} : vector<32x16xf32>, vector<16x32xf32>, vector<32x32xf32> -> vector<32x32xf32>
    %159 = vector.extract_strided_slice %29 {offsets = [7, 0, 0], sizes = [1, 32, 32], strides = [1, 1, 1]} : vector<8x32x32xf32> to vector<1x32x32xf32>
    %160 = vector.shape_cast %159 : vector<1x32x32xf32> to vector<32x32xf32>
    %161 = arith.addf %158, %160 : vector<32x32xf32>
    %cst_135 = arith.constant dense<0.000000e+00> : vector<32x64xf32>
    %162 = tpu.matmul %161, %33, %cst_135 {dimension_numbers = #tpu.dot_dimension_numbers<[1], [0], [0], [1], [0, 0, 1, 1], [], []>} : vector<32x32xf32>, vector<32x64xf32>, vector<32x64xf32> -> vector<32x64xf32>
    %cst_136 = arith.constant dense<0.000000e+00> : vector<64x64xf32>
    %163 = tpu.matmul %32, %162, %cst_136 {dimension_numbers = #tpu.dot_dimension_numbers<[1], [0], [0], [1], [0, 0, 1, 1], [], []>} : vector<64x32xf32>, vector<32x64xf32>, vector<64x64xf32> -> vector<64x64xf32>
    %c0_137 = arith.constant 0 : index
    %c7 = arith.constant 7 : index
    %c0_138 = arith.constant 0 : index
    %c0_139 = arith.constant 0 : index
    %164 = vector.load %arg5[%c0_137, %c7, %c0_138, %c0_139] : memref<1x8x64x64xf32, #tpu.memory_space<vmem>>, vector<1x1x64x64xf32>
    %165 = vector.shape_cast %164 : vector<1x1x64x64xf32> to vector<64x64xf32>
    %166 = arith.addf %163, %165 : vector<64x64xf32>
    %cst_140 = arith.constant dense<0.000000e+00> : vector<64x128xf32>
    %167 = tpu.matmul %166, %35, %cst_140 {dimension_numbers = #tpu.dot_dimension_numbers<[1], [0], [0], [1], [0, 0, 1, 1], [], []>} : vector<64x64xf32>, vector<64x128xf32>, vector<64x128xf32> -> vector<64x128xf32>
    %cst_141 = arith.constant dense<0.000000e+00> : vector<128x128xf32>
    %168 = tpu.matmul %34, %167, %cst_141 {dimension_numbers = #tpu.dot_dimension_numbers<[1], [0], [0], [1], [0, 0, 1, 1], [], []>} : vector<128x64xf32>, vector<64x128xf32>, vector<128x128xf32> -> vector<128x128xf32>
    %c0_142 = arith.constant 0 : index
    %c7_143 = arith.constant 7 : index
    %c0_144 = arith.constant 0 : index
    %c0_145 = arith.constant 0 : index
    %169 = vector.load %arg19[%c0_142, %c7_143, %c0_144, %c0_145] : memref<1x8x128x128xf32, #tpu.memory_space<vmem>>, vector<1x1x128x128xf32>
    %170 = vector.shape_cast %169 : vector<1x1x128x128xf32> to vector<128x128xf32>
    %171 = vector.shape_cast %168 : vector<128x128xf32> to vector<1x1x128x128xf32>
    tpu.vector_store %arg19[%c0_142, %c7_143, %c0_144, %c0_145], %171 {strides = array<i32>} : memref<1x8x128x128xf32, #tpu.memory_space<vmem>>, vector<1x1x128x128xf32>,
    return
  }
  func.func @transform_0(%arg0: i32, %arg1: i32) -> (i32, i32, i32) {
    %c0_i32 = arith.constant 0 : i32
    %c0_i32_0 = arith.constant 0 : i32
    %c0_i32_1 = arith.constant 0 : i32
    return %arg0, %c0_i32, %c0_i32_0 : i32, i32, i32
  }
  func.func @transform_1(%arg0: i32, %arg1: i32) -> (i32, i32, i32) {
    %c0_i32 = arith.constant 0 : i32
    %c0_i32_0 = arith.constant 0 : i32
    %c0_i32_1 = arith.constant 0 : i32
    return %arg0, %c0_i32, %c0_i32_0 : i32, i32, i32
  }
  func.func @transform_2(%arg0: i32, %arg1: i32) -> (i32, i32, i32) {
    %c0_i32 = arith.constant 0 : i32
    %c0_i32_0 = arith.constant 0 : i32
    %c0_i32_1 = arith.constant 0 : i32
    return %arg0, %c0_i32, %c0_i32_0 : i32, i32, i32
  }
  func.func @transform_3(%arg0: i32, %arg1: i32) -> (i32, i32, i32, i32) {
    %c0_i32 = arith.constant 0 : i32
    %c0_i32_0 = arith.constant 0 : i32
    %c0_i32_1 = arith.constant 0 : i32
    return %arg0, %arg1, %c0_i32, %c0_i32_0 : i32, i32, i32, i32
  }
  func.func @transform_4(%arg0: i32, %arg1: i32) -> (i32, i32) {
    %c0_i32 = arith.constant 0 : i32
    %c0_i32_0 = arith.constant 0 : i32
    %c0_i32_1 = arith.constant 0 : i32
    return %c0_i32, %c0_i32_0 : i32, i32
  }
  func.func @transform_5(%arg0: i32, %arg1: i32) -> (i32, i32) {
    %c0_i32 = arith.constant 0 : i32
    %c0_i32_0 = arith.constant 0 : i32
    %c0_i32_1 = arith.constant 0 : i32
    return %c0_i32, %c0_i32_0 : i32, i32
  }
  func.func @transform_6(%arg0: i32, %arg1: i32) -> (i32, i32) {
    %c0_i32 = arith.constant 0 : i32
    %c0_i32_0 = arith.constant 0 : i32
    %c0_i32_1 = arith.constant 0 : i32
    return %c0_i32, %c0_i32_0 : i32, i32
  }
  func.func @transform_7(%arg0: i32, %arg1: i32) -> (i32, i32) {
    %c0_i32 = arith.constant 0 : i32
    %c0_i32_0 = arith.constant 0 : i32
    %c0_i32_1 = arith.constant 0 : i32
    return %c0_i32, %c0_i32_0 : i32, i32
  }
  func.func @transform_8(%arg0: i32, %arg1: i32) -> (i32, i32) {
    %c0_i32 = arith.constant 0 : i32
    %c0_i32_0 = arith.constant 0 : i32
    return %arg1, %c0_i32 : i32, i32
  }
  func.func @transform_9(%arg0: i32, %arg1: i32) -> (i32, i32) {
    %c0_i32 = arith.constant 0 : i32
    %c0_i32_0 = arith.constant 0 : i32
    return %arg1, %c0_i32 : i32, i32
  }
  func.func @transform_10(%arg0: i32, %arg1: i32) -> (i32, i32) {
    %c0_i32 = arith.constant 0 : i32
    %c0_i32_0 = arith.constant 0 : i32
    %c0_i32_1 = arith.constant 0 : i32
    return %c0_i32, %c0_i32_0 : i32, i32
  }
  func.func @transform_11(%arg0: i32, %arg1: i32) -> (i32, i32) {
    %c0_i32 = arith.constant 0 : i32
    %c0_i32_0 = arith.constant 0 : i32
    %c0_i32_1 = arith.constant 0 : i32
    return %c0_i32, %c0_i32_0 : i32, i32
  }
  func.func @transform_12(%arg0: i32, %arg1: i32) -> (i32, i32) {
    %c0_i32 = arith.constant 0 : i32
    %c0_i32_0 = arith.constant 0 : i32
    %c0_i32_1 = arith.constant 0 : i32
    return %c0_i32, %c0_i32_0 : i32, i32
  }
  func.func @transform_13(%arg0: i32, %arg1: i32) -> (i32, i32) {
    %c0_i32 = arith.constant 0 : i32
    %c0_i32_0 = arith.constant 0 : i32
    %c0_i32_1 = arith.constant 0 : i32
    return %c0_i32, %c0_i32_0 : i32, i32
  }
  func.func @transform_14(%arg0: i32, %arg1: i32) -> (i32, i32) {
    %c0_i32 = arith.constant 0 : i32
    %c0_i32_0 = arith.constant 0 : i32
    %c0_i32_1 = arith.constant 0 : i32
    return %c0_i32, %c0_i32_0 : i32, i32
  }
  func.func @transform_15(%arg0: i32, %arg1: i32) -> (i32, i32) {
    %c0_i32 = arith.constant 0 : i32
    %c0_i32_0 = arith.constant 0 : i32
    %c0_i32_1 = arith.constant 0 : i32
    return %c0_i32, %c0_i32_0 : i32, i32
  }
  func.func @transform_16(%arg0: i32, %arg1: i32) -> (i32, i32) {
    %c0_i32 = arith.constant 0 : i32
    %c0_i32_0 = arith.constant 0 : i32
    %c0_i32_1 = arith.constant 0 : i32
    return %c0_i32, %c0_i32_0 : i32, i32
  }
  func.func @transform_17(%arg0: i32, %arg1: i32) -> (i32, i32, i32, i32) {
    %c0_i32 = arith.constant 0 : i32
    %c0_i32_0 = arith.constant 0 : i32
    %c0_i32_1 = arith.constant 0 : i32
    return %arg0, %arg1, %c0_i32, %c0_i32_0 : i32, i32, i32, i32
  }
}

</mosaic_0001>

<bundles_post_ra>
// kernel: decoder_forward.1
= control target key start
LH: loop header
LB: loop body
LE: loop exit
PB: predicated region body
PF: predicated region fallthrough
CT: control target
= control target key end

     0   :  { %s8400_s0 = inlined_call_operand.vmem [shape: f32[2,128,64], index: 0, kind: input, shape index: {}]   ;;  %s8401_s1 = inlined_call_operand.vmem [shape: f32[2,64,256], index: 1, kind: input, shape index: {}]   ;;  %s8402_s2 = inlined_call_operand.vmem [shape: f32[2,32,1024], index: 2, kind: input, shape index: {}]   ;;  %s8403_s3 = inlined_call_operand.hbm [shape: f32[2,16,64,64], index: 3, kind: input, shape index: {}]   ;;  %s8404_s4 = inlined_call_operand.hbm [shape: f32[64,128], index: 4, kind: input, shape index: {}]   ;;  %s8405_s5 = inlined_call_operand.vmem [shape: f32[64,1], index: 5, kind: input, shape index: {}]   ;;  %s8406_s6 = inlined_call_operand.hbm [shape: f32[32,64], index: 6, kind: input, shape index: {}]   ;;  %s8407_s7 = inlined_call_operand.vmem [shape: f32[32,1], index: 7, kind: input, shape index: {}]   ;;  %s8408_s8 = inlined_call_operand.hbm [shape: f32[16,32], index: 8, kind: input, shape index: {}]   ;;  %s8409_s9 = inlined_call_operand.vmem [shape: f32[16,1], index: 9, kind: input, shape index: {}]   ;;  %s8410_s10 = inlined_call_operand.hbm [shape: f32[64,256], index: 10, kind: input, shape index: {}]   ;;  %s8411_s11 = inlined_call_operand.hbm [shape: f32[32,16], index: 11, kind: input, shape index: {}]   ;;  %s8412_s12 = inlined_call_operand.hbm [shape: f32[16,32], index: 12, kind: input, shape index: {}]   ;;  %s8413_s13 = inlined_call_operand.hbm [shape: f32[64,32], index: 13, kind: input, shape index: {}]   ;;  %s8414_s14 = inlined_call_operand.hbm [shape: f32[32,64], index: 14, kind: input, shape index: {}]   ;;  %s8415_s15 = inlined_call_operand.hbm [shape: f32[128,64], index: 15, kind: input, shape index: {}]   ;;  %s8416_s16 = inlined_call_operand.hbm [shape: f32[64,128], index: 16, kind: input, shape index: {}]   ;;  %s8417_s17 = inlined_call_operand.hbm [shape: f32[2,16,128,128], index: 17, kind: output, shape index: {}]  }
   0x1   :  { %8430 = sst [smem:[#allocation55_spill]] %s8400_s0 }
   0x2   :  { %8431 = sst [smem:[#allocation56_spill]] %s8401_s1 }
   0x3   :  { %8432 = sst [smem:[#allocation57_spill]] %s8402_s2 }
   0x4   :  { %8433 = sst [smem:[#allocation58_spill]] %s8403_s3 }
   0x5   :  { %8434 = sst [smem:[#allocation59_spill]] %s8404_s4 }
   0x6   :  { %8435 = sst [smem:[#allocation60_spill]] %s8405_s5 }
   0x7   :  { %8436 = sst [smem:[#allocation61_spill]] %s8406_s6 }
   0x8   :  { %8437 = sst [smem:[#allocation62_spill]] %s8407_s7 }
   0x9   :  { %8438 = sst [smem:[#allocation63_spill]] %s8408_s8 }
   0xa   :  { %8439 = sst [smem:[#allocation64_spill]] %s8409_s9 }
   0xb   :  { %8440 = sst [smem:[#allocation65_spill]] %s8410_s10 }
   0xc   :  { %8441 = sst [smem:[#allocation66_spill]] %s8411_s11 }
   0xd   :  { %8442 = sst [smem:[#allocation67_spill]] %s8412_s12 }
   0xe   :  { %8443 = sst [smem:[#allocation68_spill]] %s8413_s13 }
   0xf   :  { %8444 = sst [smem:[#allocation69_spill]] %s8414_s14 }
  0x10   :  { %8445 = sst [smem:[#allocation70_spill]] %s8415_s15 }
  0x11   :  { %8446 = sst [smem:[#allocation71_spill]] %s8416_s16 }
  0x12   :  { %8447 = sst [smem:[#allocation72_spill]] %s8417_s17 }
  0x13   :  { %22 = vsyncpa [#allocation3], 0 }
  0x14   :  { %24 = vsyncpa [#allocation3 + $0x1], 0 }
  0x15   :  { %25 = vsyncpa [#allocation6], 0 }
  0x16   :  { %26 = vsyncpa [#allocation9], 0 }
  0x17   :  { %28 = vsyncpa [#allocation9 + $0x1], 0 }
  0x18   :  { %29 = vsyncpa [#allocation12], 0 }
  0x19   :  { %30 = vsyncpa [#allocation15], 0 }
  0x1a   :  { %31 = vsyncpa [#allocation18], 0 }
  0x1b   :  { %32 = vsyncpa [#allocation4], 0 }
  0x1c   :  { %34 = vsyncpa [#allocation4 + $0x1], 0  ;;  %s6326_s24 = smov 0   ;;  %s6328_s25 = smov 0  }
  0x1d   :  { %s6330_s26 = smov 0   ;;  %s6332_s27 = smov 0  }
  0x1e   :  { %s6334_s28 = smov 0   ;;  %s6336_s29 = smov 0  }
  0x1f   :  { %s6338_s0 = smov 0   ;;  %s6340_s30 = smov 0  }
  0x20   :  { %s6342_s18 = smov 0   ;;  %s6344_s19 = smov 0  }
  0x21   :  { %s6346_s1 = smov 0  }
  0x22 LB: > { %8448 = sst [smem:[#allocation29_spill]] %s6169_s24  ;;  %s6382_s20 = sadd.s32 4294967295, %s6209_s1   ;;  %s6209_s1 = sphi %s6346_s1, %s40_s1   ;;  %s6205_s19 = sphi %s6344_s19, %s8540_s19   ;;  %s6201_s18 = sphi %s6342_s18, %s8539_s18   ;;  %s6197_s30 = sphi %s6340_s30, %s8538_s30   ;;  %s6193_s0 = sphi %s6338_s0, %s8537_s0   ;;  %s6189_s29 = sphi %s6336_s29, %s8536_s29   ;;  %s6185_s28 = sphi %s6334_s28, %s8535_s28   ;;  %s6181_s27 = sphi %s6332_s27, %s8534_s27   ;;  %s6177_s26 = sphi %s6330_s26, %s8533_s26   ;;  %s6173_s25 = sphi %s6328_s25, %s8530_s25   ;;  %s6169_s24 = sphi %s6326_s24, %s8529_s24  }
  0x23   : > { %8449 = sst [smem:[#allocation30_spill]] %s6173_s25  ;;  %p4883_p0 = scmp.ge.s32.totalorder %s6209_s1, 1 }
  0x24   : > { %8450 = sst [smem:[#allocation31_spill]] %s6177_s26  ;;  %p153_p1 = scmp.eq.s32.totalorder %s6382_s20, 0 }
  0x25   : > { %8451 = sst [smem:[#allocation32_spill]] %s6193_s0  ;;  %p474_p2 = scmp.lt.s32.totalorder %s6209_s1, 5 }
  0x26   : > { %8452 = sst [smem:[#allocation33_spill]] %s6197_s30  ;;  %s6211_s9 = smov [#allocation5]  }
  0x27   : > { %s8453_s4 = sld [smem:[#allocation59_spill]]  ;;  %p6390_p3 = pnand %p4883_p0, %p474_p2 }
  0x28   : > { %s487_s0 = sshll.u32 %s6211_s9, 4  ;;  %s8457_s10 = sld [smem:[#allocation65_spill]]  ;;  %s488_s0 = int_to_ptr.vmem [resolvable:$true] %s487_s0 }
  0x29   : > { %s8454_s17 = scalar_select %p6390_p3, 1, 0 }
  0x2a   : > { %p5511_p4 = pneg %p6390_p3  ;;  %s8426_s22 = smov 128  }
  0x2b   : > { %8455 = sst [smem:[#allocation34_spill]] %s8454_s17  ;;  %s6214_s9 = smov [#allocation10]  }
  0x2c   : > { %p6398_p5 = pnand %p5511_p4, %p153_p1  ;;  %s521_s30 = sshll.u32 %s6214_s9, 4  ;;  %s522_s30 = int_to_ptr.vmem [resolvable:$true] %s521_s30 }
  0x2d   : > { %s485_s23 = sshll.u32 %s8453_s4, 4  ;;  %s8427_s4 = smov 8   ;;  %s486_s23 = int_to_ptr.hbm [resolvable:$true] %s485_s23 }
  0x2e   : > { %s519_s21 = sshll.u32 %s8457_s10, 4  ;;  %s6215_s17 = smov 256   ;;  %s520_s21 = int_to_ptr.hbm [resolvable:$true] %s519_s21 }
  0x2f   : > { %5514 = dma.hbm_to_vmem [thread:$0]  (!%p6398_p5), %s486_s23, 1024, %s488_s0, [#allocation6], %s8426_s22, %s8426_s22, %s8427_s4  }
  0x30   : > { %s6216_s8 = smov 16   ;;  %s8458_s11 = sld [smem:[#allocation66_spill]] }
  0x31   : > { %5520 = dma.hbm_to_vmem [thread:$0]  (!%p6398_p5), %s520_s21, 2048, %s522_s30, [#allocation9], %s6215_s17, %s6215_s17, %s6216_s8  }
  0x32   : > { %s6217_s3 = smov [#allocation11]   ;;  %s8459_s13 = sld [smem:[#allocation68_spill]] }
  0x33   : > { %s535_s24 = sshll.u32 %s6217_s3, 4  ;;  %s6218_s8 = smov [#allocation14]   ;;  %s536_s24 = int_to_ptr.vmem [resolvable:$true] %s535_s24 }
  0x34   : > { %s563_s17 = sshll.u32 %s6218_s8, 4  ;;  %s8460_s15 = sld [smem:[#allocation70_spill]]  ;;  %s564_s17 = int_to_ptr.vmem [resolvable:$true] %s563_s17 }
  0x35   : > { %s8461_s6 = sld [smem:[#allocation61_spill]]  ;;  %s6220_s9 = smov [#allocation7]  }
  0x36   : > { %s533_s10 = sshll.u32 %s8458_s11, 4  ;;  %s504_s5 = sshll.u32 %s6220_s9, 4  ;;  %s534_s10 = int_to_ptr.hbm [resolvable:$true] %s533_s10  ;;  %s505_s5 = int_to_ptr.vmem [resolvable:$true] %s504_s5 }
  0x37   : > { %5523 = dma.hbm_to_vmem [thread:$0]  (!%p6398_p5), %s534_s10, 512, %s536_s24, [#allocation12], %s8426_s22, %s8426_s22, %s8427_s4  }
  0x38   : > { %s561_s0 = sshll.u32 %s8459_s13, 4  ;;  %s6219_s10 = smov [#allocation17]   ;;  %s562_s0 = int_to_ptr.hbm [resolvable:$true] %s561_s0 }
  0x39   : > { %5529 = dma.hbm_to_vmem [thread:$0]  (!%p6398_p5), %s562_s0, 1024, %s564_s17, [#allocation15], %s8426_s22, %s8426_s22, %s8427_s4  }
  0x3a   : > { %s589_s21 = sshll.u32 %s8460_s15, 4  ;;  %s591_s24 = sshll.u32 %s6219_s10, 4  ;;  %s590_s21 = int_to_ptr.hbm [resolvable:$true] %s589_s21  ;;  %s592_s24 = int_to_ptr.vmem [resolvable:$true] %s591_s24 }
  0x3b   : > { %s502_s26 = sshll.u32 %s8461_s6, 4  ;;  %s8462_s12 = sld [smem:[#allocation67_spill]]  ;;  %s503_s26 = int_to_ptr.hbm [resolvable:$true] %s502_s26 }
  0x3c   : > { %5535 = dma.hbm_to_vmem [thread:$0]  (!%p6398_p5), %s590_s21, 2048, %s592_s24, [#allocation18], %s8426_s22, %s8426_s22, %s8427_s4  }
  0x3d   : > { %5517 = dma.hbm_to_vmem [thread:$0]  (!%p6398_p5), %s503_s26, 512, %s505_s5, [#allocation6], %s8426_s22, %s8426_s22, %s8427_s4  }
  0x3e   : > { %s8463_s14 = sld [smem:[#allocation69_spill]]  ;;  %s6221_s21 = smov [#allocation13]  }
  0x3f   : > { %s549_s3 = sshll.u32 %s6221_s21, 4  ;;  %s6222_s25 = smov [#allocation16]   ;;  %s550_s3 = int_to_ptr.vmem [resolvable:$true] %s549_s3 }
  0x40   : > { %s577_s26 = sshll.u32 %s6222_s25, 4  ;;  %s8464_s16 = sld [smem:[#allocation71_spill]]  ;;  %s578_s26 = int_to_ptr.vmem [resolvable:$true] %s577_s26 }
  0x41   : > { %s547_s0 = sshll.u32 %s8462_s12, 4  ;;  %s6223_s5 = smov [#allocation19]   ;;  %s548_s0 = int_to_ptr.hbm [resolvable:$true] %s547_s0 }
  0x42   : > { %5526 = dma.hbm_to_vmem [thread:$0]  (!%p6398_p5), %s548_s0, 256, %s550_s3, [#allocation12], %s8426_s22, %s8426_s22, %s8427_s4  }
  0x43   : > { %s605_s7 = sshll.u32 %s6223_s5, 4  ;;  %s4882_s8 = sadd.s32 4294967294, %s6209_s1   ;;  %s606_s7 = int_to_ptr.vmem [resolvable:$true] %s605_s7 }
  0x44   : > { %s575_s23 = sshll.u32 %s8463_s14, 4  ;;  %s49_s0 = sadd.s32 1, %s6201_s18  ;;  %s576_s23 = int_to_ptr.hbm [resolvable:$true] %s575_s23 }
  0x45   : > { %5532 = dma.hbm_to_vmem [thread:$0]  (!%p6398_p5), %s576_s23, 512, %s578_s26, [#allocation15], %s8426_s22, %s8426_s22, %s8427_s4  }
  0x46   : > { %s603_s9 = sshll.u32 %s8464_s16, 4  ;;  %s52_s17 = sadd.s32 1, %s6205_s19  ;;  %s604_s9 = int_to_ptr.hbm [resolvable:$true] %s603_s9 }
  0x47   : > { %5538 = dma.hbm_to_vmem [thread:$0]  (!%p6398_p5), %s604_s9, 1024, %s606_s7, [#allocation18], %s8426_s22, %s8426_s22, %s8427_s4  }
  0x48   : > { %p50_p6 = scmp.ge.s32.totalorder %s49_s0, 2  ;;  %s139_s30 = sadd.s32 1, %s6189_s29 }
  0x49   : > { %p146_p7 = scmp.ne.s32.totalorder %s6189_s29, %s6185_s28  ;;  %p147_p8 = scmp.eq.s32.totalorder %s6209_s1, 0 }
  0x4a   : > { %s8542_s0 = smov (%p50_p6, %s49_s0), 0  ;;  %s8544_s17 = smov (!%p50_p6, %s52_s17), %s6205_s19 }
  0x4b   : > { %8465 = sst [smem:[#allocation35_spill]] %s8542_s0  ;;  %s6480_s2 = ssub.s32 %s6201_s18, %s8542_s0 }
  0x4c   : > { %p6484_p9 = por %p147_p8, %p146_p7  ;;  %p54_p10 = scmp.ge.s32.totalorder %s8544_s17, 2 }
  0x4d   : > { %p152_p11 = scmp.ne.s32.totalorder %s6185_s28, %s6181_s27  ;;  %p461_p12 = scmp.eq.s32.totalorder %s6382_s20, 3 }
  0x4e   : > { %p467_p13 = scmp.eq.s32.totalorder %s4882_s8, 3  ;;  %s8546_s17 = smov (%p54_p10, %s8544_s17), 0 }
  0x4f   : > { %8467 = sst [smem:[#allocation36_spill]] %s8546_s17  ;;  %p6495_p0 = por %p153_p1, %p152_p11 }
  0x50   : > { %p6499_p2 = por %p461_p12, %p146_p7  ;;  %s134_s25 = ssub.s32 %s6205_s19, %s8546_s17 }
  0x51   : > { %p6505_p4 = por %p467_p13, %p152_p11  ;;  %s136_s10 = sor.u32 %s6480_s2, %s134_s25 }
  0x52   : > { %p5559_p5 = scmp.lt.s32.totalorder %s6209_s1, 4  ;;  %p137_p6 = scmp.eq.s32.totalorder %s136_s10, 0 }
  0x53   : > { %s643_s24 = sand.u32 1, %s6189_s29   ;;  %s8471_s5 = sld [smem:[#allocation31_spill]] }
  0x54   : > { %s4894_s9 = sshll.u32 %s643_s24, 9  ;;  %s8472_s8 = sld [smem:[#allocation30_spill]] }
  0x55   : > { %s6513_s7 = scalar_select %p137_p6, %s6189_s29, %s139_s30  }
  0x56   : > { %s5448_s22 = sshll.u32 %s6201_s18, 6  ;;  %s8473_s4 = sld [smem:[#allocation29_spill]] }
  0x57   : > { %s4897_s6 = sshll.u32 %s6205_s19, 7  ;;  %s647_s11 = scalar_lea.vmem [#allocation2], %s4894_s9 }
  0x58   : > { %s658_s12 = sshll.u32 %s647_s11, 4  ;;  %s653_s25 = sadd.s32 %s5448_s22, %s4897_s6  ;;  %s659_s12 = int_to_ptr.vmem [resolvable:$true] %s658_s12 }
  0x59   : > { %s4898_s10 = sshll.u32 %s653_s25, 3  ;;  %p5540_p7 = pnand %p5559_p5, %p6484_p9 }
  0x5a   : > { %s8474_s14 = sld [smem:[#allocation58_spill]]  ;;  %s644_s17 = scalar_lea.sflag [#allocation3], %s643_s24 }
  0x5b   : > { %s8475_s9 = smov 8   ;;  %s8476_s0 = smov 128  }
  0x5c   : > { %p247_p10 = scmp.eq.s32.totalorder %s6480_s2, 0  ;;  %s249_s6 = sadd.s32 1, %s8471_s5 }
  0x5d   : > { %p256_p11 = scmp.ne.s32.totalorder %s8471_s5, %s8472_s8  ;;  %p262_p12 = scmp.ne.s32.totalorder %s8472_s8, %s8473_s4 }
  0x5e   : > { %s6534_s11 = scalar_select %p247_p10, %s8471_s5, %s249_s6  }
  0x5f   : > { %p258_p9 = por %p256_p11, %p147_p8  ;;  %p6540_p13 = por %p262_p12, %p153_p1 }
  0x60   : > { %s655_s15 = scalar_lea.hbm %s8474_s14, %s4898_s10  ;;  %s668_s14 = sand.u32 1, %s6209_s1  }
  0x61   : > { %s656_s16 = sshll.u32 %s655_s15, 4  ;;  %s670_s15 = sand.u32 1, %s8471_s5   ;;  %s657_s16 = int_to_ptr.hbm [resolvable:$true] %s656_s16 }
  0x62   : > { %5542 = dma.hbm_to_vmem [thread:$0]  (!%p5540_p7), %s657_s16, 8192, %s659_s12, %s644_s17, %s8476_s0, %s8476_s0, %s8475_s9  }
  0x63   : > { %s4899_s22 = sshll.u32 %s670_s15, 3  ;;  %s4900_s23 = sshll.u32 %s6201_s18, 3 }
  0x64   : > { %s8478_s16 = sld [smem:[#allocation63_spill]]  ;;  %s672_s17 = scalar_lea.vmem [#allocation8], %s4899_s22 }
  0x65   : > { %s680_s2 = sshll.u32 %s672_s17, 4  ;;  %p5543_p8 = pnand %p5559_p5, %p258_p9  ;;  %s681_s2 = int_to_ptr.vmem [resolvable:$true] %s680_s2 }
  0x66   : > { %s669_s8 = scalar_lea.sflag [#allocation9], %s668_s14 }
  0x68   : > { %696 = sbr.rel (%p6390_p3) target bundleno = 5599 (0x15df), region = 88 }
  0x6a   : > { %s676_s0 = scalar_lea.hbm %s8478_s16, %s4900_s23 }
  0x6b   : > { %s678_s4 = sshll.u32 %s676_s0, 4  ;;  %s679_s4 = int_to_ptr.hbm [resolvable:$true] %s678_s4 }
  0x6c   : > { %5545 = dma.hbm_to_vmem [thread:$0]  (!%p5543_p8), %s679_s4, 128, %s681_s2, %s669_s8  }
  0x6d   : > { %s6555_s5 = sand.u32 1, %s6185_s28  }
  0x6e   : > { %s4902_s10 = sshll.u32 %s6555_s5, 9  ;;  %s699_s30 = scalar_lea.sflag [#allocation3], %s6555_s5 }
  0x6f   : > { %s6559_s9 = scalar_lea.vmem [#allocation2], %s4902_s10 }
  0x70   : > { %6136 = dma.done.wait (%p6495_p0), %s699_s30, 8192  }
  0x71   : > { %6138 = vsyncadd (%p6495_p0), %s699_s30, 4294959104 }
  0x72   : > { %6140 = dma.done.wait (%p153_p1), [#allocation6], 1536  }
  0x73   : > { %6142 = vsyncadd (%p153_p1), [#allocation6], 4294965760  ;;  %s8480_s6 = sld [smem:[#allocation30_spill]]  ;;  %s718_s14 = sand.u32 1, %s6382_s20  }
  0x74   : > { %s719_s23 = scalar_lea.sflag [#allocation9], %s718_s14 }
  0x79   : > { %s720_s15 = sand.u32 1, %s8480_s6  }
  0x7a   : > { %s6571_s22 = sshll.u32 %s720_s15, 3 }
  0x7b   : > { %s722_s24 = scalar_lea.vmem [#allocation8], %s6571_s22 }
  0x7c   : > { %6144 = dma.done.wait (%p6540_p13), %s719_s23, 128  }
  0x7d   : > { %6146 = vsyncadd (%p6540_p13), %s719_s23, 4294967168 }
  0x7e   : > { %6148 = dma.done.wait (%p153_p1), [#allocation9], 2048  }
  0x7f   : > { %6150 = vsyncadd (%p153_p1), [#allocation9], 4294965248 }
  0x80   : > { %6152 = dma.done.wait (%p153_p1), [#allocation12], 768  }
  0x81   : > { %6154 = vsyncadd (%p153_p1), [#allocation12], 4294966528 }
  0x82   : > { %6156 = dma.done.wait (%p153_p1), [#allocation15], 1536  }
  0x83   : > { %6158 = vsyncadd (%p153_p1), [#allocation15], 4294965760 }
  0x84   : > { %6160 = dma.done.wait (%p153_p1), [#allocation18], 3072  }
  0x85   : > { %6162 = vsyncadd (%p153_p1), [#allocation18], 4294964224  ;;  %s8481_s21 = sld [smem:[#allocation33_spill]]  ;;  %v859_v0 = vld [vmem:[#allocation7 + $0x18] sm:$0xff]  ;;  %v858_v1 = vld [vmem:[#allocation7 + $0x10] sm:$0xff]  ;;  %vm860_vm0 = vcmask 261120  }
  0x86   : > { %876 = vmatpush.msra.mxu3 %v859_v0  ;;  %v857_v2 = vld [vmem:[#allocation7 + $0x8] sm:$0xff]  ;;  %s8482_s0 = sld [smem:[#allocation62_spill]]  ;;  %v915_v4 = vld [vmem:[#allocation5 + $0x38] sm:$0xff]  ;;  %v914_v6 = vld [vmem:[#allocation5 + $0x30] sm:$0xff]  ;;  %vm916_vm1 = vcmask 523264   ;;  %v6224_v57 = vmov 0  }
  0x87   : > { %928 = vmatpush.msra.mxu2 %v915_v4  ;;  %v856_v8 = vld [vmem:[#allocation7] sm:$0xff]  ;;  %v913_v9 = vld [vmem:[#allocation5 + $0x28] sm:$0xff]  ;;  %s8484_s6 = sld [smem:[#allocation56_spill]]  ;;  %v911_v15 = vld [vmem:[#allocation5 + $0x18] sm:$0xff]  ;;  %5683 = vset.pattern.permute.xlu0 %v6224_v57  ;;  %s6226_s15 = smov 48   ;;  %vm1371_vm2 = vcmask 1047556  }
  0x88   : > { %877 = vmatpush.msra.mxu3 %v858_v1  ;;  %v6617_v10 = vld [vmem:[%s722_s24] sm:$0xff]  ;;  %v910_v18 = vld [vmem:[#allocation5 + $0x10] sm:$0xff]  ;;  %s8487_s8 = sld [smem:[#allocation55_spill]]  ;;  %5684 = vset.pattern.permute.xlu1 %v6224_v57  ;;  %s6227_s23 = smov 16   ;;  %vm2165_vm3 = vcmask 130048  }
  0x89   : > { %929 = vmatpush.msra.mxu2 %v914_v6  ;;  %v912_v12 = vld [vmem:[#allocation5 + $0x20] sm:$0xff]  ;;  %v909_v21 = vld [vmem:[#allocation5 + $0x8] sm:$0xff]  ;;  %s8488_s30 = sld [smem:[#allocation57_spill]]  ;;  %s6228_s12 = smov 32  }
  0x8a   : > { %878 = vmatpush.msra.mxu3 %v857_v2  ;;  %v908_v24 = vld [vmem:[#allocation5] sm:$0xff]  ;;  %s6229_s16 = smov 80   ;;  %s6230_s22 = smov 64  }
  0x8b   : > { %p833_p3 = scmp.lt.s32.totalorder %s8481_s21, 1  ;;  %930 = vmatpush.msra.mxu2 %v913_v9  ;;  %s6231_s24 = smov 96  }
  0x8c   : > { %s8483_s17 = smov %s8482_s0  ;;  %v887_v3 = vld [vmem:[%s8482_s0 + $0x18] sm:$0xff]  ;;  %s8485_s0 = sld [smem:[#allocation60_spill]]  ;;  %879 = vmatpush.msra.mxu3 %v856_v8 }
  0x8d   : > { %s6596_s13 = scalar_select %p833_p3, %s8481_s21, 1  ;;  %900 = vmatpush.msra.mxu1 %v887_v3  ;;  %v886_v5 = vld [vmem:[%s8483_s17 + $0x10] sm:$0xff]  ;;  %v885_v7 = vld [vmem:[%s8483_s17 + $0x8] sm:$0xff]  ;;  %v884_v11 = vld [vmem:[%s8483_s17] sm:$0xff]  ;;  %4921 = vmatmul.msk.f32.vlgmr.msra.gmra.mxu3 %vm860_vm0, %v6617_v10 }
  0x8e   : > { %931 = vmatpush.msra.mxu2 %v912_v12 }
  0x8f   : > { %s5449_s2 = sshll.u32 %s6596_s13, 7  ;;  %901 = vmatpush.msra.mxu1 %v886_v5  ;;  %v1281_v5 = vld [vmem:[#allocation10 + $0x70] sm:$0xff] }
  0x90   : > { %s6613_s14 = scalar_lea.vmem %s8484_s6, %s5449_s2  ;;  %932 = vmatpush.msra.mxu2 %v911_v15  ;;  %s6671_s25 = scalar_lea.vmem %s8487_s8, %s5449_s2 }
  0x91   : > { %902 = vmatpush.msra.mxu1 %v885_v7  ;;  %v1023_v14 = vld [vmem:[%s6613_s14 + $0x70] sm:$0xff]  ;;  %v1021_v17 = vld [vmem:[%s6613_s14 + $0x60] sm:$0xff]  ;;  %v1024_v27 = vld [vmem:[%s6613_s14 + $0x78] sm:$0xff]  ;;  %s5451_s2 = sshll.u32 %s6596_s13, 8  ;;  %s6225_s13 = smov 112  }
  0x92   : > { %s8486_s20 = smov %s8485_s0  ;;  %v947_v13 = vld [vmem:[%s8485_s0 + $0x38] sm:$0xff]  ;;  %v1019_v20 = vld [vmem:[%s6613_s14 + $0x50] sm:$0xff]  ;;  %933 = vmatpush.msra.mxu2 %v910_v18  ;;  %v1017_v23 = vld [vmem:[%s6613_s14 + $0x40] sm:$0xff]  ;;  %s6697_s6 = scalar_lea.vmem %s8488_s30, %s5451_s2 }
  0x93   : > { %903 = vmatpush.msra.mxu1 %v884_v11  ;;  %v946_v16 = vld [vmem:[%s8486_s20 + $0x30] sm:$0xff]  ;;  %956 = vmatpush.msrb.mxu3 %v947_v13  ;;  %v945_v19 = vld [vmem:[%s8486_s20 + $0x28] sm:$0xff]  ;;  %v944_v22 = vld [vmem:[%s8486_s20 + $0x20] sm:$0xff]  ;;  %s8489_s0 = sld [smem:[#allocation32_spill]]  ;;  %s4913_s30 = sshll.u32 %s6555_s5, 10 }
  0x94   : > { %934 = vmatpush.msra.mxu2 %v909_v21  ;;  %v943_v25 = vld [vmem:[%s8486_s20 + $0x18] sm:$0xff]  ;;  %v1015_v26 = vld [vmem:[%s6613_s14 + $0x30] sm:$0xff]  ;;  %4922 = vmatmul.msk.f32.vlgmr.msra.gmra.mxu1 %vm860_vm0, %v6617_v10  ;;  %v1013_v29 = vld [vmem:[%s6613_s14 + $0x20] sm:$0xff] }
  0x95   : > { %1038 = vmatpush.msrb.mxu1 %v1023_v14  ;;  %957 = vmatpush.msrb.mxu3 %v946_v16  ;;  %v942_v28 = vld [vmem:[%s8486_s20 + $0x10] sm:$0xff]  ;;  %v1022_v30 = vld [vmem:[%s6613_s14 + $0x68] sm:$0xff]  ;;  %v1020_v33 = vld [vmem:[%s6613_s14 + $0x58] sm:$0xff] }
  0x96   : > { %935 = vmatpush.msra.mxu2 %v908_v24  ;;  %v941_v31 = vld [vmem:[%s8486_s20 + $0x8] sm:$0xff]  ;;  %v1011_v32 = vld [vmem:[%s6613_s14 + $0x10] sm:$0xff]  ;;  %v940_v34 = vld [vmem:[%s8486_s20] sm:$0xff] }
  0x97   : > { %1039 = vmatpush.msrb.mxu1 %v1021_v17  ;;  %958 = vmatpush.msrb.mxu3 %v945_v19  ;;  %v1009_v35 = vld [vmem:[%s6613_s14] sm:$0xff]  ;;  %v1018_v36 = vld [vmem:[%s6613_s14 + $0x48] sm:$0xff]  ;;  %v1016_v37 = vld [vmem:[%s6613_s14 + $0x38] sm:$0xff] }
  0x98   : > { %1058 = vmatpush.msrb.mxu2 %v1024_v27  ;;  %v1014_v38 = vld [vmem:[%s6613_s14 + $0x28] sm:$0xff]  ;;  %v1012_v39 = vld [vmem:[%s6613_s14 + $0x18] sm:$0xff]  ;;  %v982_v42 = vld [vmem:[%s6671_s25 + $0x70] sm:$0xff] }
  0x99   : > { %1040 = vmatpush.msrb.mxu1 %v1019_v20  ;;  %959 = vmatpush.msrb.mxu3 %v944_v22  ;;  %v1010_v40 = vld [vmem:[%s6613_s14 + $0x8] sm:$0xff]  ;;  %v983_v41 = vld [vmem:[%s6671_s25 + $0x78] sm:$0xff]  ;;  %v980_v44 = vld [vmem:[%s6671_s25 + $0x60] sm:$0xff]  ;;  %p849_p1 = scmp.lt.s32.totalorder %s8489_s0, 1  ;;  %s8490_s14 = sld [smem:[#allocation64_spill]] }
  0x9a   : > { %1059 = vmatpush.msrb.mxu2 %v1022_v30  ;;  %989 = vmatpush.msra.mxu0 %v983_v41  ;;  %v981_v43 = vld [vmem:[%s6671_s25 + $0x68] sm:$0xff]  ;;  %v979_v45 = vld [vmem:[%s6671_s25 + $0x58] sm:$0xff]  ;;  %v978_v46 = vld [vmem:[%s6671_s25 + $0x50] sm:$0xff] }
  0x9b   : > { %1041 = vmatpush.msrb.mxu1 %v1017_v23  ;;  %960 = vmatpush.msrb.mxu3 %v943_v25  ;;  %v977_v47 = vld [vmem:[%s6671_s25 + $0x48] sm:$0xff]  ;;  %v976_v48 = vld [vmem:[%s6671_s25 + $0x40] sm:$0xff]  ;;  %v975_v49 = vld [vmem:[%s6671_s25 + $0x38] sm:$0xff]  ;;  %s850_s4 = scalar_select %p849_p1, %s8489_s0, 1 }
  0x9c   : > { %1060 = vmatpush.msrb.mxu2 %v1020_v33  ;;  %990 = vmatpush.msra.mxu0 %v982_v42  ;;  %v974_v50 = vld [vmem:[%s6671_s25 + $0x30] sm:$0xff]  ;;  %v973_v51 = vld [vmem:[%s6671_s25 + $0x28] sm:$0xff]  ;;  %v972_v52 = vld [vmem:[%s6671_s25 + $0x20] sm:$0xff] }
  0x9d   : > { %1042 = vmatpush.msrb.mxu1 %v1015_v26  ;;  %961 = vmatpush.msrb.mxu3 %v942_v28  ;;  %v971_v53 = vld [vmem:[%s6671_s25 + $0x18] sm:$0xff]  ;;  %v970_v55 = vld [vmem:[%s6671_s25 + $0x10] sm:$0xff]  ;;  %v969_v56 = vld [vmem:[%s6671_s25 + $0x8] sm:$0xff]  ;;  %s4920_s8 = sshll.u32 %s850_s4, 3 }
  0x9e   : > { %1061 = vmatpush.msrb.mxu2 %v1018_v36  ;;  %991 = vmatpush.msra.mxu0 %v981_v43  ;;  %v968_v58 = vld [vmem:[%s6671_s25] sm:$0xff]  ;;  %v1096_v2 = vld [vmem:[%s6697_s6 + $0xd0] sm:$0xff]  ;;  %v1099_v8 = vld [vmem:[%s6697_s6 + $0xe8] sm:$0xff]  ;;  %s4617_s25 = scalar_lea.sflag [#allocation4], %s6555_s5 }
  0x9f   : > { %1043 = vmatpush.msrb.mxu1 %v1013_v29  ;;  %962 = vmatpush.msrb.mxu3 %v941_v31  ;;  %v1094_v59 = vld [vmem:[%s6697_s6 + $0xc0] sm:$0xff]  ;;  %v1088_v4 = vld [vmem:[%s6697_s6 + $0x90] sm:$0xff]  ;;  %v1091_v9 = vld [vmem:[%s6697_s6 + $0xa8] sm:$0xff]  ;;  %s852_s10 = scalar_lea.vmem %s8490_s14, %s4920_s8 }
  0xa0   : > { %1062 = vmatpush.msrb.mxu2 %v1016_v37  ;;  %992 = vmatpush.msra.mxu0 %v980_v44  ;;  %v1086_v60 = vld [vmem:[%s6697_s6 + $0x80] sm:$0xff]  ;;  %v1080_v6 = vld [vmem:[%s6697_s6 + $0x50] sm:$0xff]  ;;  %v1083_v11 = vld [vmem:[%s6697_s6 + $0x68] sm:$0xff] }
  0xa1   : > { %1044 = vmatpush.msrb.mxu1 %v1011_v32  ;;  %963 = vmatpush.msrb.mxu3 %v940_v34  ;;  %v1078_v61 = vld [vmem:[%s6697_s6 + $0x40] sm:$0xff]  ;;  %v1072_v7 = vld [vmem:[%s6697_s6 + $0x10] sm:$0xff]  ;;  %v1075_v12 = vld [vmem:[%s6697_s6 + $0x28] sm:$0xff] }
  0xa2   : > { %1063 = vmatpush.msrb.mxu2 %v1014_v38  ;;  %993 = vmatpush.msra.mxu0 %v979_v45  ;;  %v1098_v62 = vld [vmem:[%s6697_s6 + $0xe0] sm:$0xff]  ;;  %v1282_v13 = vld [vmem:[#allocation10 + $0x78] sm:$0xff]  ;;  %v1279_v17 = vld [vmem:[#allocation10 + $0x60] sm:$0xff] }
  0xa3   : > { %1045 = vmatpush.msrb.mxu1 %v1009_v35  ;;  %1119 = vmatpush.msra.mxu3 %v1094_v59  ;;  %v1090_v63 = vld [vmem:[%s6697_s6 + $0xa0] sm:$0xff]  ;;  %v1280_v18 = vld [vmem:[#allocation10 + $0x68] sm:$0xff]  ;;  %v1278_v20 = vld [vmem:[#allocation10 + $0x58] sm:$0xff] }
  0xa4   : > { %1064 = vmatpush.msrb.mxu2 %v1012_v39  ;;  %994 = vmatpush.msra.mxu0 %v978_v46  ;;  %v1070_v0 = vld [vmem:[%s6697_s6] sm:$0xff]  ;;  %v1275_v21 = vld [vmem:[#allocation10 + $0x40] sm:$0xff]  ;;  %v1276_v22 = vld [vmem:[#allocation10 + $0x48] sm:$0xff] }
  0xa5   : > { %1120 = vmatpush.msra.mxu3 %v1086_v60  ;;  %v1082_v1 = vld [vmem:[%s6697_s6 + $0x60] sm:$0xff]  ;;  %v1274_v24 = vld [vmem:[#allocation10 + $0x38] sm:$0xff]  ;;  %v1271_v25 = vld [vmem:[#allocation10 + $0x20] sm:$0xff] }
  0xa6   : > { %1065 = vmatpush.msrb.mxu2 %v1010_v40  ;;  %995 = vmatpush.msra.mxu0 %v977_v47  ;;  %v1074_v3 = vld [vmem:[%s6697_s6 + $0x20] sm:$0xff]  ;;  %v1272_v26 = vld [vmem:[#allocation10 + $0x28] sm:$0xff]  ;;  %v1270_v28 = vld [vmem:[#allocation10 + $0x18] sm:$0xff] }
  0xa7   : > { %1121 = vmatpush.msra.mxu3 %v1078_v61  ;;  %v1277_v19 = vld [vmem:[#allocation10 + $0x50] sm:$0xff]  ;;  %v1267_v29 = vld [vmem:[#allocation10] sm:$0xff]  ;;  %v1268_v30 = vld [vmem:[#allocation10 + $0x8] sm:$0xff] }
  0xa8   : > { %996 = vmatpush.msra.mxu0 %v976_v48  ;;  %v1273_v23 = vld [vmem:[#allocation10 + $0x30] sm:$0xff]  ;;  %v1095_v37 = vld [vmem:[%s6697_s6 + $0xc8] sm:$0xff]  ;;  %v1097_v48 = vld [vmem:[%s6697_s6 + $0xd8] sm:$0xff] }
  0xa9   : > { %1122 = vmatpush.msra.mxu3 %v1070_v0  ;;  %v1269_v27 = vld [vmem:[#allocation10 + $0x10] sm:$0xff]  ;;  %v1087_v38 = vld [vmem:[%s6697_s6 + $0x88] sm:$0xff]  ;;  %1139 = vmatpush.msra.mxu1 %v1095_v37  ;;  %v1101_v57 = vld [vmem:[%s6697_s6 + $0xf8] sm:$0xff] }
  0xaa   : > { %997 = vmatpush.msra.mxu0 %v975_v49  ;;  %v1079_v42 = vld [vmem:[%s6697_s6 + $0x48] sm:$0xff]  ;;  %v1089_v49 = vld [vmem:[%s6697_s6 + $0x98] sm:$0xff]  ;;  %v1076_v60 = vld [vmem:[%s6697_s6 + $0x30] sm:$0xff] }
  0xab   : > { %1140 = vmatpush.msra.mxu1 %v1087_v38  ;;  %v1071_v43 = vld [vmem:[%s6697_s6 + $0x8] sm:$0xff]  ;;  %v1093_v59 = vld [vmem:[%s6697_s6 + $0xb8] sm:$0xff] }
  0xac   : > { %998 = vmatpush.msra.mxu0 %v974_v50  ;;  %v1085_v61 = vld [vmem:[%s6697_s6 + $0x78] sm:$0xff] }
  0xad   : > { %1141 = vmatpush.msra.mxu1 %v1079_v42 }
  0xae   : > { %999 = vmatpush.msra.mxu0 %v973_v51 }
  0xaf   : > { %1142 = vmatpush.msra.mxu1 %v1071_v43 }
  0xb0   : > { %1000 = vmatpush.msra.mxu0 %v972_v52 }
  0xb2   : > { %1001 = vmatpush.msra.mxu0 %v971_v53  ;;  %v1081_v53 = vld [vmem:[%s6697_s6 + $0x58] sm:$0xff] }
  0xb4   : > { %1002 = vmatpush.msra.mxu0 %v970_v55  ;;  %v1100_v55 = vld [vmem:[%s6697_s6 + $0xf0] sm:$0xff] }
  0xb6   : > { %1003 = vmatpush.msra.mxu0 %v969_v56  ;;  %v1092_v56 = vld [vmem:[%s6697_s6 + $0xb0] sm:$0xff] }
  0xb8   : > { %1004 = vmatpush.msra.mxu0 %v968_v58  ;;  %v1084_v58 = vld [vmem:[%s6697_s6 + $0x70] sm:$0xff] }
  0xba   : > { %1239 = vmatpush.msrb.mxu0 %v1100_v55 }
  0xbc   : > { %1240 = vmatpush.msrb.mxu0 %v1092_v56 }
  0xbe   : > { %1241 = vmatpush.msrb.mxu0 %v1084_v58 }
  0xc0   : > { %1242 = vmatpush.msrb.mxu0 %v1076_v60 }
 0x110   : > { %v881_v54 = vpop.f32.mrf.mxu3 }
 0x111   : > { %4923 = vmatmul.msk.f32.vlgmr.msra.gmra.mxu2 %vm916_vm1, %v881_v54  ;;  %4924 = vmatmul.msk.f32.vlgmr.msrb.gmra.mxu3 %vm916_vm1, %v881_v54  ;;  %v905_v16 = vpop.f32.mrf.mxu1 }
 0x112   : > { %4925 = vmatmul.msk.f32.vlgmr.msrb.gmra.mxu1 %vm916_vm1, %v881_v54  ;;  %1199 = vmatpush.msra.mxu2 %v1098_v62  ;;  %v1077_v62 = vld [vmem:[%s6697_s6 + $0x38] sm:$0xff] }
 0x113   : > { %1159 = vmatpush.msrb.mxu3 %v1096_v2  ;;  %1179 = vmatpush.msrb.mxu1 %v1097_v48  ;;  %v6232_v2 = vmov 1983009808  }
 0x114   : > { %1200 = vmatpush.msra.mxu2 %v1090_v63 }
 0x115   : > { %1160 = vmatpush.msrb.mxu3 %v1088_v4  ;;  %1180 = vmatpush.msrb.mxu1 %v1089_v49 }
 0x116   : > { %1201 = vmatpush.msra.mxu2 %v1082_v1 }
 0x117   : > { %1161 = vmatpush.msrb.mxu3 %v1080_v6  ;;  %1181 = vmatpush.msrb.mxu1 %v1081_v53 }
 0x118   : > { %1202 = vmatpush.msra.mxu2 %v1074_v3  ;;  %v1376_v3 = vunpack.c.l.s4 %v6232_v2 }
 0x119   : > { %4926 = vmatmul.msk.f32.vlgmr.msrb.gmra.mxu2 %vm916_vm1, %v881_v54  ;;  %4927 = vmatmul.msk.f32.vlgmr.msra.gmra.mxu3 %vm860_vm0, %v6617_v10  ;;  %v1073_v54 = vld [vmem:[%s6697_s6 + $0x18] sm:$0xff]  ;;  %s7412_s6 = scalar_lea.vmem [#allocation20], %s4913_s30 }
 0x11a   : > { %1294 = vmatpush.msrb.mxu2 %v1281_v5  ;;  %1162 = vmatpush.msrb.mxu3 %v1072_v7  ;;  %v2128_v5 = vld [vmem:[#allocation13 + $0x8] sm:$0xff]  ;;  %v2127_v7 = vld [vmem:[#allocation13] sm:$0xff]  ;;  %s4632_s4 = sshll.u32 %s7412_s6, 4  ;;  %s4633_s4 = int_to_ptr.vmem [resolvable:$true] %s4632_s4 }
 0x11b   : > { %4928 = vmatmul.msk.f32.vlgmr.msra.gmra.mxu1 %vm860_vm0, %v6617_v10 }
 0x11c   : > { %1219 = vmatpush.msra.mxu3 %v1099_v8  ;;  %1295 = vmatpush.msrb.mxu2 %v1279_v17 }
 0x11d   : > { %1182 = vmatpush.msrb.mxu1 %v1073_v54 }
 0x11e   : > { %1220 = vmatpush.msra.mxu3 %v1091_v9  ;;  %1296 = vmatpush.msrb.mxu2 %v1277_v19  ;;  %v6793_v9 = vunpack.c.0.s8 %v1376_v3 }
 0x11f   : > { %1259 = vmatpush.msra.mxu1 %v1101_v57 }
 0x120   : > { %1221 = vmatpush.msra.mxu3 %v1083_v11  ;;  %1297 = vmatpush.msrb.mxu2 %v1275_v21 }
 0x121   : > { %4931 = vmatmul.msk.f32.vlgmr.msra.gmra.mxu2 %vm860_vm0, %v6617_v10  ;;  %4929 = vmatmul.msk.f32.vlgmr.msrb.gmra.mxu3 %vm860_vm0, %v6617_v10 }
 0x122   : > { %1222 = vmatpush.msra.mxu3 %v1075_v12  ;;  %1298 = vmatpush.msrb.mxu2 %v1273_v23 }
 0x123   : > { %4930 = vmatmul.msk.f32.vlgmr.msrb.gmra.mxu1 %vm860_vm0, %v6617_v10 }
 0x124   : > { %1314 = vmatpush.msrb.mxu3 %v1282_v13  ;;  %1299 = vmatpush.msrb.mxu2 %v1271_v25 }
 0x125   : > { %1260 = vmatpush.msra.mxu1 %v1093_v59 }
 0x126   : > { %1315 = vmatpush.msrb.mxu3 %v1280_v18  ;;  %1300 = vmatpush.msrb.mxu2 %v1269_v27 }
 0x127   : > { %1261 = vmatpush.msra.mxu1 %v1085_v61 }
 0x128   : > { %1316 = vmatpush.msrb.mxu3 %v1278_v20  ;;  %1301 = vmatpush.msrb.mxu2 %v1267_v29 }
 0x129   : > { %4932 = vmatmul.msk.f32.vlgmr.msra.gmra.mxu3 %vm860_vm0, %v6617_v10  ;;  %1262 = vmatpush.msra.mxu1 %v1077_v62 }
 0x12a   : > { %1317 = vmatpush.msrb.mxu3 %v1276_v22 }
 0x12b   : > { %4934 = vmatmul.msk.f32.vlgmr.msra.gmra.mxu1 %vm860_vm0, %v6617_v10 }
 0x12c   : > { %1318 = vmatpush.msrb.mxu3 %v1274_v24 }
 0x12e   : > { %1319 = vmatpush.msrb.mxu3 %v1272_v26 }
 0x130   : > { %1320 = vmatpush.msrb.mxu3 %v1270_v28  ;;  %v6233_v28 = vmov 1934713408  }
 0x131   : > { %v1424_v29 = vunpack.c.l.s4 %v6233_v28 }
 0x132   : > { %1321 = vmatpush.msrb.mxu3 %v1268_v30 }
 0x18f   : > { %v1047_v44 = vpop.f32.mrf.mxu1 }
 0x194   : > { %v937_v14 = vpop.f32.mrf.mxu2  ;;  %v965_v15 = vpop.f32.mrf.mxu3 }
 0x195   : > { %986 = vperm.xlu0 %5683, %v965_v15   ;;  %1005 = vmatmul.f32.vlgmr.msra.gmra.mxu0 %v937_v14 }
 0x196   : > { %2186 = vmatpush.msra.mxu0 %v2128_v5 }
 0x198   : > { %2187 = vmatpush.msra.mxu0 %v2127_v7 }
 0x19c   : > { %v6725_v34 = vpop.f32.mrf.mxu3  ;;  %v1067_v35 = vpop.f32.mrf.mxu2 }
 0x19d   : > { %1027 = vperm.xlu0 %5683, %v905_v16   ;;  %4933 = vmatmul.msk.f32.vlgmr.msrb.gmra.mxu0 %vm860_vm0, %v6617_v10  ;;  %v855_v10 = vld [vmem:[%s852_s10] sm:$0xff] }
 0x1a4   : > { %v6727_v36 = vpop.f32.mrf.mxu3  ;;  %v6731_v39 = vpop.f32.mrf.mxu2 }
 0x1ac   : > { %v6733_v41 = vpop.f32.mrf.mxu3 }
 0x207   : > { %v987_v31 = vpop.permute.xlu0 %986 }
 0x20f   : > { %v1028_v40 = vpop.permute.xlu0 %1027 }
 0x210   : > { %v1048_v45 = vadd.f32 %v1047_v44, %v1028_v40  ;;  %v1068_v51 = vadd.f32 %v1067_v35, %v1028_v40  ;;  %v6806_v40 = vunpack.c.0.s8 %v1424_v29 }
 0x212   : > { %v1006_v32 = vpop.f32.mrf.mxu0 }
 0x213   : > { %v1007_v33 = vadd.f32 %v1006_v32, %v987_v31 }
 0x215   : > { %4935 = vmatmul.msk.f32.vlgmr.msrb.gmra.mxu2 %vm916_vm1, %v1007_v33  ;;  %4936 = vmatmul.msk.f32.vlgmr.msrb.gmra.mxu3 %vm916_vm1, %v1007_v33 }
 0x298   : > { %v1303_v46 = vpop.f32.mrf.mxu2  ;;  %v1323_v50 = vpop.f32.mrf.mxu3 }
 0x299   : > { %v6739_v47 = vadd.f32 %v1303_v46, %v1048_v45  ;;  %v6748_v52 = vadd.f32 %v1323_v50, %v1068_v51 }
 0x29b   : > { %1327 = vrot.lane.b32.xlu0 %v6739_v47, %s6225_s13  ;;  %1339 = vrot.lane.b32.xlu2 %v6739_v47, %s6226_s15  ;;  %v1373_v53 = vrot.slane %v6739_v47, 4  ;;  %v1485_v55 = vrot.slane %v6748_v52, 4 }
 0x29c   : > { %1345 = vrot.lane.b32.xlu1 %v6739_v47, %s6227_s23 }
 0x2a3   : > { %1367 = vrot.lane.b32.xlu0 %v6748_v52, %s6227_s23  ;;  %1342 = vrot.lane.b32.xlu2 %v6739_v47, %s6228_s12 }
 0x2a4   : > { %1333 = vrot.lane.b32.xlu1 %v6739_v47, %s6229_s16 }
 0x2ab   : > { %1364 = vrot.lane.b32.xlu0 %v6748_v52, %s6228_s12  ;;  %1336 = vrot.lane.b32.xlu2 %v6739_v47, %s6230_s22 }
 0x2ac   : > { %1330 = vrot.lane.b32.xlu1 %v6739_v47, %s6231_s24 }
 0x2b3   : > { %1358 = vrot.lane.b32.xlu0 %v6748_v52, %s6230_s22  ;;  %1361 = vrot.lane.b32.xlu2 %v6748_v52, %s6226_s15 }
 0x2b4   : > { %1355 = vrot.lane.b32.xlu1 %v6748_v52, %s6229_s16 }
 0x2bb   : > { %1352 = vrot.lane.b32.xlu2 %v6748_v52, %s6231_s24 }
 0x2bc   : > { %1349 = vrot.lane.b32.xlu1 %v6748_v52, %s6225_s13  ;;  %s5444_s13 = sshll.u32 %s8481_s21, 8 }
 0x2c4   : > { %1104 = vperm.xlu1 %5684, %v855_v10  }
 0x2f5   : > { %v1340_v63 = vpop.permute.xlu2 %1339 }
 0x2f6   : > { %v1409_v13 = vrot.slane %v1340_v63, 4 }
 0x2fd   : > { %v1343_v0 = vpop.permute.xlu2 %1342 }
 0x2fe   : > { %v1395_v8 = vrot.slane %v1343_v0, 4 }
 0x305   : > { %v1337_v1 = vpop.permute.xlu2 %1336 }
 0x306   : > { %v1397_v4 = vrot.slane %v1337_v1, 4  ;;  %v1396_v11 = vsel %vm1371_vm2, %v1395_v8, %v1337_v1 }
 0x307   : > { %v1402_v15 = vperm.slane %v1396_v11, %v6793_v9 }
 0x308   : > { %v1398_v6 = vsel %vm1371_vm2, %v1343_v0, %v1397_v4 }
 0x309   : > { %v1406_v12 = vperm.slane %v1398_v6, %v6793_v9  ;;  %v1445_v23 = vrot.slane %v1402_v15, 4 }
 0x30b   : > { %v1457_v19 = vrot.slane %v1406_v12, 4 }
 0x30d   : > { %v1328_v14 = vpop.permute.xlu0 %1327  ;;  %v1362_v21 = vpop.permute.xlu2 %1361 }
 0x30e   : > { %v1346_v16 = vpop.permute.xlu1 %1345  ;;  %v1521_v27 = vrot.slane %v1362_v21, 4  ;;  %v1385_v33 = vrot.slane %v1328_v14, 4 }
 0x30f   : > { %v1407_v17 = vrot.slane %v1346_v16, 4  ;;  %v1410_v18 = vsel %vm1371_vm2, %v1346_v16, %v1409_v13 }
 0x310   : > { %v1418_v20 = vperm.slane %v1410_v18, %v6793_v9 }
 0x311   : > { %v1408_v22 = vsel %vm1371_vm2, %v1407_v17, %v1340_v63 }
 0x312   : > { %v1414_v24 = vperm.slane %v1408_v22, %v6793_v9  ;;  %v1455_v25 = vrot.slane %v1418_v20, 4  ;;  %v1458_v26 = vsel %vm1371_vm2, %v1418_v20, %v1457_v19 }
 0x313   : > { %v6811_v45 = vperm.slane %v1458_v26, %v6806_v40 }
 0x314   : > { %v1446_v30 = vsel %vm1371_vm2, %v1414_v24, %v1445_v23  ;;  %v1456_v31 = vsel %vm1371_vm2, %v1455_v25, %v1406_v12  ;;  %v1443_v42 = vrot.slane %v1414_v24, 4 }
 0x315   : > { %v1368_v32 = vpop.permute.xlu0 %1367  ;;  %v1353_v46 = vpop.permute.xlu2 %1352  ;;  %v1462_v50 = vperm.slane %v1456_v31, %v6806_v40  ;;  %v1479_v62 = vrot.slane %v6811_v45, 4  ;;  %v1454_v0 = vperm.slane %v1446_v30, %v6806_v40 }
 0x316   : > { %v1522_v35 = vsel %vm1371_vm2, %v1368_v32, %v1521_v27  ;;  %v1334_v37 = vpop.permute.xlu1 %1333  ;;  %v1444_v49 = vsel %vm1371_vm2, %v1443_v42, %v1402_v15  ;;  %v1519_v54 = vrot.slane %v1368_v32, 4  ;;  %v1483_v58 = vrot.slane %v1353_v46, 4 }
 0x317   : > { %v1383_v38 = vrot.slane %v1334_v37, 4  ;;  %v1386_v43 = vsel %vm1371_vm2, %v1334_v37, %v1385_v33  ;;  %v1450_v61 = vperm.slane %v1444_v49, %v6806_v40  ;;  %v1475_v1 = vrot.slane %v1462_v50, 4 }
 0x318   : > { %v1394_v48 = vperm.slane %v1386_v43, %v6793_v9  ;;  %v1530_v2 = vperm.slane %v1522_v35, %v6793_v9  ;;  %v1486_v3 = vsel %vm1371_vm2, %v1353_v46, %v1485_v55  ;;  %v1520_v11 = vsel %vm1371_vm2, %v1519_v54, %v1362_v21 }
 0x319   : > { %v1384_v44 = vsel %vm1371_vm2, %v1383_v38, %v1328_v14  ;;  %v1484_v12 = vsel %vm1371_vm2, %v1483_v58, %v6748_v52  ;;  %v1467_v14 = vrot.slane %v1450_v61, 4  ;;  %v1526_v52 = vperm.slane %v1520_v11, %v6793_v9 }
 0x31a   : > { %v1390_v56 = vperm.slane %v1384_v44, %v6793_v9  ;;  %v1431_v10 = vrot.slane %v1394_v48, 4  ;;  %v1471_v30 = vrot.slane %v1454_v0, 4  ;;  %v1567_v37 = vrot.slane %v1530_v2, 4 }
 0x31b   : > { %v1555_v44 = vrot.slane %v1526_v52, 4  ;;  %v1490_v55 = vperm.slane %v1484_v12, %v6793_v9 }
 0x31c   : > { %v1419_v5 = vrot.slane %v1390_v56, 4 }
 0x31d   : > { %v1365_v51 = vpop.permute.xlu0 %1364 }
 0x31e   : > { %v1331_v57 = vpop.permute.xlu1 %1330  ;;  %v1507_v15 = vrot.slane %v1365_v51, 4 }
 0x31f   : > { %v1370_v59 = vrot.slane %v1331_v57, 4  ;;  %v1374_v60 = vsel %vm1371_vm2, %v1331_v57, %v1373_v53 }
 0x320   : > { %v1382_v63 = vperm.slane %v1374_v60, %v6793_v9  ;;  %v1494_v60 = vperm.slane %v1486_v3, %v6793_v9 }
 0x321   : > { %v1372_v4 = vsel %vm1371_vm2, %v1370_v59, %v6739_v47 }
 0x322   : > { %v1378_v6 = vperm.slane %v1372_v4, %v6793_v9  ;;  %v1432_v7 = vsel %vm1371_vm2, %v1431_v10, %v1382_v63  ;;  %v1433_v8 = vrot.slane %v1382_v63, 4 }
 0x323   : > { %v1438_v13 = vperm.slane %v1432_v7, %v6806_v40 }
 0x324   : > { %v1421_v16 = vrot.slane %v1378_v6, 4  ;;  %v1434_v17 = vsel %vm1371_vm2, %v1394_v48, %v1433_v8  ;;  %v1420_v47 = vsel %vm1371_vm2, %v1419_v5, %v1378_v6 }
 0x325   : > { %v1442_v18 = vperm.slane %v1434_v17, %v6806_v40  ;;  %v1477_v19 = vrot.slane %v1438_v13, 4  ;;  %v1359_v20 = vpop.permute.xlu0 %1358  ;;  %v1426_v22 = vperm.slane %v1420_v47, %v6806_v40  ;;  %v6839_v21 = vsel %vm1371_vm2, %v1475_v1, %v1438_v13 }
 0x326   : > { %v1508_v23 = vsel %vm1371_vm2, %v1507_v15, %v1359_v20  ;;  %v1509_v24 = vrot.slane %v1359_v20, 4  ;;  %v1356_v25 = vpop.permute.xlu1 %1355  ;;  %v1422_v26 = vsel %vm1371_vm2, %v1390_v56, %v1421_v16  ;;  %v1533_v1 = vrot.slane %v1490_v55, 4 }
 0x327   : > { %v1481_v27 = vrot.slane %v1442_v18, 4  ;;  %v1514_v28 = vperm.slane %v1508_v23, %v6793_v9  ;;  %v1468_v29 = vsel %vm1371_vm2, %v1467_v14, %v1426_v22  ;;  %v1469_v32 = vrot.slane %v1426_v22, 4  ;;  %v1144_v14 = vpop.f32.mrf.mxu1 }
 0x328   : > { %v1510_v31 = vsel %vm1371_vm2, %v1365_v51, %v1509_v24  ;;  %4937 = vmatmul.msk.f32.vlgmr.msra.gmra.mxu0 %vm2165_vm3, %v1468_v29  ;;  %v1430_v33 = vperm.slane %v1422_v26, %v6806_v40  ;;  %v6850_v35 = vsel %vm1371_vm2, %v1462_v50, %v1477_v19  ;;  %v6854_v43 = vsel %vm1371_vm2, %v1479_v62, %v1442_v18 }
 0x329   : > { %8491 = vst [vmem:[#allocation37_spill] sm:$0xff] %v6850_v35  ;;  %v1518_v38 = vperm.slane %v1510_v31, %v6793_v9  ;;  %v1557_v42 = vrot.slane %v1514_v28, 4  ;;  %v6857_v46 = vsel %vm1371_vm2, %v1450_v61, %v1469_v32  ;;  %v6866_v54 = vsel %vm1371_vm2, %v6811_v45, %v1481_v27 }
 0x32a   : > { %8492 = vst [vmem:[#allocation38_spill] sm:$0xff] %v6854_v43  ;;  %v6860_v48 = vsel %vm1371_vm2, %v1471_v30, %v1430_v33  ;;  %v1473_v49 = vrot.slane %v1430_v33, 4  ;;  %v1556_v56 = vsel %vm1371_vm2, %v1555_v44, %v1514_v28  ;;  %v1495_v58 = vrot.slane %v1356_v25, 4 }
 0x32b   : > { %v1558_v51 = vsel %vm1371_vm2, %v1526_v52, %v1557_v42  ;;  %v1569_v53 = vrot.slane %v1518_v38, 4  ;;  %v1568_v50 = vsel %vm1371_vm2, %v1567_v37, %v1518_v38  ;;  %8493 = vst [vmem:[#allocation39_spill] sm:$0xff] %v6866_v54  ;;  %v1562_v63 = vperm.slane %v1556_v56, %v6806_v40 }
 0x32c   : > { %v6871_v57 = vsel %vm1371_vm2, %v1454_v0, %v1473_v49  ;;  %v1566_v45 = vperm.slane %v1558_v51, %v6806_v40  ;;  %v1545_v0 = vrot.slane %v1494_v60, 4  ;;  %v1574_v16 = vperm.slane %v1568_v50, %v6806_v40 }
 0x32d   : > { %v1570_v59 = vsel %vm1371_vm2, %v1530_v2, %v1569_v53  ;;  %v1579_v3 = vrot.slane %v1562_v63, 4 }
 0x32e   : > { %v1350_v61 = vpop.permute.xlu1 %1349  ;;  %v1583_v11 = vrot.slane %v1566_v45, 4  ;;  %v1578_v12 = vperm.slane %v1570_v59, %v6806_v40  ;;  %v1587_v30 = vrot.slane %v1574_v16, 4 }
 0x32f   : > { %v1496_v62 = vsel %vm1371_vm2, %v1495_v58, %v1350_v61  ;;  %v1497_v10 = vrot.slane %v1350_v61, 4  ;;  %v1184_v44 = vpop.f32.mrf.mxu1 }
 0x330   : > { %v1502_v4 = vperm.slane %v1496_v62, %v6793_v9  ;;  %v1591_v26 = vrot.slane %v1578_v12, 4 }
 0x331   : > { %v1498_v5 = vsel %vm1371_vm2, %v1356_v25, %v1497_v10 }
 0x332   : > { %v1506_v6 = vperm.slane %v1498_v5, %v6793_v9  ;;  %v1531_v7 = vrot.slane %v1502_v4, 4  ;;  %v1534_v2 = vsel %vm1371_vm2, %v1502_v4, %v1533_v1 }
 0x333   : > { %v1542_v8 = vperm.slane %v1534_v2, %v6806_v40 }
 0x334   : > { %v1543_v13 = vrot.slane %v1506_v6, 4  ;;  %v1532_v15 = vsel %vm1371_vm2, %v1531_v7, %v1490_v55  ;;  %v1546_v17 = vsel %vm1371_vm2, %v1506_v6, %v1545_v0 }
 0x335   : > { %v1538_v47 = vperm.slane %v1532_v15, %v6806_v40  ;;  %v6889_v18 = vsel %vm1371_vm2, %v1583_v11, %v1542_v8  ;;  %v1585_v19 = vrot.slane %v1542_v8, 4  ;;  %v1554_v20 = vperm.slane %v1546_v17, %v6806_v40 }
 0x336   : > { %v1105_v22 = vpop.permute.xlu1 %1104  ;;  %v1544_v52 = vsel %vm1371_vm2, %v1543_v13, %v1494_v60 }
 0x337   : > { %v1580_v23 = vsel %vm1371_vm2, %v1579_v3, %v1538_v47  ;;  %v1145_v24 = vadd.f32 %v1144_v14, %v1105_v22  ;;  %v6895_v25 = vadd.f32 %v6725_v34, %v1105_v22  ;;  %v1581_v27 = vrot.slane %v1538_v47, 4 }
 0x338   : > { %4938 = vmatmul.msk.f32.gmra.mxu0 %vm2165_vm3, %v1580_v23  ;;  %v6901_v28 = vsel %vm1371_vm2, %v1566_v45, %v1585_v19  ;;  %v1550_v29 = vperm.slane %v1544_v52, %v6806_v40  ;;  %v6905_v31 = vsel %vm1371_vm2, %v1591_v26, %v1554_v20  ;;  %v1593_v37 = vrot.slane %v1554_v20, 4 }
 0x339   : > { %1606 = vrot.lane.b32.xlu1 %v1145_v24, %s6231_s24  ;;  %1612 = vrot.lane.b32.xlu2 %v1145_v24, %s6228_s12  ;;  %8494 = vst [vmem:[#allocation40_spill] sm:$0xff] %v6905_v31  ;;  %v6910_v34 = vsel %vm1371_vm2, %v1562_v63, %v1581_v27  ;;  %v6926_v49 = vadd.f32 %v1184_v44, %v1105_v22  ;;  %v1701_v61 = vrot.slane %v1145_v24, 4  ;;  %v1677_v47 = vrot.slane %v6895_v25, 4 }
 0x33a   : > { %1602 = vrot.lane.b32.xlu0 %v6895_v25, %s6228_s12  ;;  %v6913_v32 = vsel %vm1371_vm2, %v1587_v30, %v1550_v29  ;;  %v1589_v33 = vrot.slane %v1550_v29, 4  ;;  %v6919_v42 = vsel %vm1371_vm2, %v1578_v12, %v1593_v37  ;;  %v6929_v51 = vadd.f32 %v6727_v36, %v1105_v22 }
 0x33b   : > { %8496 = vst [vmem:[#allocation42_spill] sm:$0xff] %v6919_v42  ;;  %v6944_v36 = vadd.f32 %v6733_v41, %v1105_v22  ;;  %v6947_v53 = vadd.f32 %v6731_v39, %v1105_v22  ;;  %v1264_v39 = vpop.f32.mrf.mxu1  ;;  %v1244_v41 = vpop.f32.mrf.mxu0  ;;  %v1813_v23 = vrot.slane %v6926_v49, 4 }
 0x33c   : > { %v6916_v38 = vsel %vm1371_vm2, %v1574_v16, %v1589_v33  ;;  %v6961_v50 = vadd.f32 %v1264_v39, %v1105_v22  ;;  %v6963_v55 = vadd.f32 %v1244_v41, %v1105_v22 }
 0x33d   : > { %8495 = vst [vmem:[#allocation41_spill] sm:$0xff] %v6916_v38 }
 0x341   : > { %1609 = vrot.lane.b32.xlu2 %v1145_v24, %s6230_s22  ;;  %1599 = vrot.lane.b32.xlu1 %v6895_v25, %s6230_s22 }
 0x342   : > { %1596 = vrot.lane.b32.xlu0 %v6895_v25, %s6231_s24 }
 0x349   : > { %1632 = vrot.lane.b32.xlu2 %v6926_v49, %s6228_s12  ;;  %1626 = vrot.lane.b32.xlu1 %v6926_v49, %s6231_s24 }
 0x34a   : > { %1622 = vrot.lane.b32.xlu0 %v6929_v51, %s6228_s12 }
 0x351   : > { %1629 = vrot.lane.b32.xlu2 %v6926_v49, %s6230_s22  ;;  %1619 = vrot.lane.b32.xlu1 %v6929_v51, %s6230_s22 }
 0x352   : > { %1616 = vrot.lane.b32.xlu0 %v6929_v51, %s6231_s24 }
 0x359   : > { %1652 = vrot.lane.b32.xlu2 %v6944_v36, %s6228_s12  ;;  %1646 = vrot.lane.b32.xlu1 %v6944_v36, %s6231_s24 }
 0x35a   : > { %1642 = vrot.lane.b32.xlu0 %v6947_v53, %s6228_s12 }
 0x361   : > { %1649 = vrot.lane.b32.xlu2 %v6944_v36, %s6230_s22  ;;  %1639 = vrot.lane.b32.xlu1 %v6947_v53, %s6230_s22 }
 0x362   : > { %1636 = vrot.lane.b32.xlu0 %v6947_v53, %s6231_s24 }
 0x369   : > { %1672 = vrot.lane.b32.xlu2 %v6961_v50, %s6228_s12  ;;  %1666 = vrot.lane.b32.xlu1 %v6961_v50, %s6231_s24 }
 0x36a   : > { %1662 = vrot.lane.b32.xlu0 %v6963_v55, %s6228_s12 }
 0x371   : > { %1669 = vrot.lane.b32.xlu2 %v6961_v50, %s6230_s22  ;;  %1659 = vrot.lane.b32.xlu1 %v6963_v55, %s6230_s22  ;;  %s8528_s22 = sld [smem:[#allocation72_spill]] }
 0x372   : > { %1656 = vrot.lane.b32.xlu0 %v6963_v55, %s6231_s24 }
 0x377   : > { %s6083_s10 = scalar_lea.hbm %s8528_s22, 4096 }
 0x393   : > { %v1613_v56 = vpop.permute.xlu2 %1612 }
 0x394   : > { %v1711_v10 = vrot.slane %v1613_v56, 4 }
 0x39b   : > { %v1610_v58 = vpop.permute.xlu2 %1609 }
 0x39c   : > { %v1699_v59 = vrot.slane %v1610_v58, 4  ;;  %v1702_v63 = vsel %vm1371_vm2, %v1610_v58, %v1701_v61 }
 0x39d   : > { %v1710_v1 = vperm.slane %v1702_v63, %v6793_v9 }
 0x39e   : > { %v1700_v62 = vsel %vm1371_vm2, %v1699_v59, %v1145_v24 }
 0x39f   : > { %v1706_v45 = vperm.slane %v1700_v62, %v6793_v9  ;;  %v1761_v12 = vrot.slane %v1710_v1, 4 }
 0x3a1   : > { %v1749_v2 = vrot.slane %v1706_v45, 4 }
 0x3a3   : > { %v6977_v60 = vpop.permute.xlu2 %1632 }
 0x3a4   : > { %v1823_v63 = vrot.slane %v6977_v60, 4 }
 0x3a5   : > { %v2189_v3 = vpop.f32.mrf.mxu0 }
 0x3ab   : > { %v1607_v4 = vpop.permute.xlu1 %1606  ;;  %v1630_v5 = vpop.permute.xlu2 %1629 }
 0x3ac   : > { %v1712_v0 = vsel %vm1371_vm2, %v1711_v10, %v1607_v4  ;;  %v1713_v6 = vrot.slane %v1607_v4, 4  ;;  %v1603_v7 = vpop.permute.xlu0 %1602  ;;  %v1811_v15 = vrot.slane %v1630_v5, 4  ;;  %v1814_v41 = vsel %vm1371_vm2, %v1630_v5, %v1813_v23 }
 0x3ad   : > { %v1718_v8 = vperm.slane %v1712_v0, %v6793_v9  ;;  %v1687_v19 = vrot.slane %v1603_v7, 4 }
 0x3ae   : > { %v1714_v11 = vsel %vm1371_vm2, %v1613_v56, %v1713_v6  ;;  %v1812_v24 = vsel %vm1371_vm2, %v1811_v15, %v6926_v49  ;;  %v7003_v49 = vld [vmem:[#allocation11] sm:$0xff]  ;;  %v1822_v6 = vperm.slane %v1814_v41, %v6793_v9  ;;  %v1789_v41 = vrot.slane %v6929_v51, 4 }
 0x3af   : > { %v1722_v13 = vperm.slane %v1714_v11, %v6793_v9  ;;  %v1750_v14 = vsel %vm1371_vm2, %v1718_v8, %v1749_v2  ;;  %v1747_v30 = vrot.slane %v1718_v8, 4  ;;  %v7006_v59 = vperm.slane %v1812_v24, %v6793_v9 }
 0x3b0   : > { %v1925_v2 = vrot.slane %v6944_v36, 4 }
 0x3b1   : > { %v1759_v16 = vrot.slane %v1722_v13, 4  ;;  %v1762_v17 = vsel %vm1371_vm2, %v1722_v13, %v1761_v12  ;;  %v1748_v5 = vsel %vm1371_vm2, %v1747_v30, %v1706_v45  ;;  %v1861_v11 = vrot.slane %v7006_v59, 4  ;;  %v7039_v30 = vld [vmem:[#allocation11 + $0x8] sm:$0xff] }
 0x3b3   : > { %v6990_v20 = vpop.permute.xlu2 %1652  ;;  %v1600_v22 = vpop.permute.xlu1 %1599  ;;  %v1760_v52 = vsel %vm1371_vm2, %v1759_v16, %v1710_v1  ;;  %v1758_v1 = vperm.slane %v1750_v14, %v6806_v40  ;;  %v7026_v14 = vperm.slane %v1762_v17, %v6806_v40 }
 0x3b4   : > { %v1675_v26 = vrot.slane %v1600_v22, 4  ;;  %v1678_v27 = vsel %vm1371_vm2, %v1600_v22, %v1677_v47  ;;  %v1597_v29 = vpop.permute.xlu0 %1596 }
 0x3b5   : > { %v1686_v33 = vperm.slane %v1678_v27, %v6793_v9  ;;  %v1688_v37 = vsel %vm1371_vm2, %v1687_v19, %v1597_v29  ;;  %v1689_v44 = vrot.slane %v1597_v29, 4  ;;  %v2192_v39 = vpop.f32.mrf.mxu0  ;;  %v7030_v19 = vperm.slane %v1748_v5, %v6806_v40 }
 0x3b6   : > { %v1676_v56 = vsel %vm1371_vm2, %v1675_v26, %v6895_v25  ;;  %v1694_v58 = vperm.slane %v1688_v37, %v6793_v9  ;;  %2221 = vmatpush.msrb.mxu1 %v2192_v39  ;;  %v1775_v22 = vrot.slane %v1758_v1, 4  ;;  %v1766_v26 = vperm.slane %v1760_v52, %v6806_v40 }
 0x3b7   : > { %v1682_v61 = vperm.slane %v1676_v56, %v6793_v9  ;;  %v1737_v62 = vrot.slane %v1686_v33, 4  ;;  %v1690_v10 = vsel %vm1371_vm2, %v1603_v7, %v1689_v44  ;;  %v1783_v52 = vrot.slane %v7026_v14, 4 }
 0x3b8   : > { %v1698_v4 = vperm.slane %v1690_v10, %v6793_v9  ;;  %v1723_v25 = vrot.slane %v1694_v58, 4  ;;  %2222 = vmatpush.msrb.mxu1 %v2189_v3  ;;  %v1873_v10 = vrot.slane %v1822_v6, 4 }
 0x3b9   : > { %v1725_v0 = vrot.slane %v1682_v61, 4  ;;  %4939 = vmatmul.msk.f32.vlgmr.msrb.gmra.mxu1 %vm2165_vm3, %v7003_v49 }
 0x3ba   : > { %v1724_v7 = vsel %vm1371_vm2, %v1723_v25, %v1682_v61  ;;  %v1738_v8 = vsel %vm1371_vm2, %v1698_v4, %v1737_v62  ;;  %v1735_v23 = vrot.slane %v1698_v4, 4  ;;  %v1779_v25 = vrot.slane %v1766_v26, 4 }
 0x3bb   : > { %v1726_v12 = vsel %vm1371_vm2, %v1694_v58, %v1725_v0  ;;  %v1650_v13 = vpop.permute.xlu2 %1649  ;;  %v1627_v3 = vpop.permute.xlu1 %1626  ;;  %v7023_v45 = vperm.slane %v1724_v7, %v6806_v40  ;;  %v7035_v27 = vperm.slane %v1738_v8, %v6806_v40 }
 0x3bc   : > { %v1824_v15 = vsel %vm1371_vm2, %v1823_v63, %v1627_v3  ;;  %v1825_v16 = vrot.slane %v1627_v3, 4  ;;  %v1623_v47 = vpop.permute.xlu0 %1622  ;;  %v1923_v29 = vrot.slane %v1650_v13, 4  ;;  %v1734_v44 = vperm.slane %v1726_v12, %v6806_v40 }
 0x3bd   : > { %v1830_v24 = vperm.slane %v1824_v15, %v6793_v9  ;;  %v1773_v37 = vrot.slane %v7023_v45, 4  ;;  %v1799_v4 = vrot.slane %v1623_v47, 4  ;;  %v1736_v7 = vsel %vm1371_vm2, %v1735_v23, %v1686_v33 }
 0x3be   : > { %v1826_v17 = vsel %vm1371_vm2, %v6977_v60, %v1825_v16  ;;  %v7053_v60 = vsel %vm1371_vm2, %v1775_v22, %v1734_v44  ;;  %v1777_v62 = vrot.slane %v1734_v44, 4  ;;  %v1924_v5 = vsel %vm1371_vm2, %v1923_v29, %v6944_v36 }
 0x3bf   : > { %v1834_v39 = vperm.slane %v1826_v17, %v6793_v9  ;;  %v1862_v58 = vsel %vm1371_vm2, %v1830_v24, %v1861_v11  ;;  %v7050_v61 = vsel %vm1371_vm2, %v7030_v19, %v1773_v37  ;;  %v7065_v8 = vsel %vm1371_vm2, %v1783_v52, %v7035_v27 }
 0x3c0   : > { %v7060_v0 = vsel %vm1371_vm2, %v1758_v1, %v1777_v62  ;;  %8497 = vst [vmem:[#allocation43_spill] sm:$0xff] %v7065_v8  ;;  %v1859_v11 = vrot.slane %v1830_v24, 4  ;;  %v1742_v15 = vperm.slane %v1736_v7, %v6806_v40  ;;  %v1926_v36 = vsel %vm1371_vm2, %v1650_v13, %v1925_v2 }
 0x3c1   : > { %v1871_v63 = vrot.slane %v1834_v39, 4  ;;  %4940 = vmatmul.msk.f32.gmra.mxu1 %vm2165_vm3, %v7039_v30  ;;  %v1874_v22 = vsel %vm1371_vm2, %v1834_v39, %v1873_v10  ;;  %v2037_v23 = vrot.slane %v6961_v50, 4  ;;  %v7088_v39 = vld [vmem:[#allocation11 + $0x10] sm:$0xff]  ;;  %v1935_v7 = vrot.slane %v6990_v20, 4 }
 0x3c2   : > { %v7080_v44 = vsel %vm1371_vm2, %v1779_v25, %v1742_v15  ;;  %v1860_v52 = vsel %vm1371_vm2, %v1859_v11, %v7006_v59  ;;  %v1785_v59 = vrot.slane %v7035_v27, 4  ;;  %v7120_v27 = vperm.slane %v1874_v22, %v6806_v40 }
 0x3c3   : > { %v7067_v12 = vpop.permute.xlu2 %1672  ;;  %v1620_v3 = vpop.permute.xlu1 %1619  ;;  %v1872_v16 = vsel %vm1371_vm2, %v1871_v63, %v1822_v6  ;;  %v7083_v6 = vperm.slane %v1924_v5, %v6793_v9  ;;  %v7108_v11 = vperm.slane %v1860_v52, %v6806_v40 }
 0x3c4   : > { %v1787_v1 = vrot.slane %v1620_v3, 4  ;;  %v1790_v29 = vsel %vm1371_vm2, %v1620_v3, %v1789_v41  ;;  %v1617_v33 = vpop.permute.xlu0 %1616  ;;  %v1781_v41 = vrot.slane %v1742_v15, 4  ;;  %v1934_v3 = vperm.slane %v1926_v36, %v6793_v9  ;;  %v7112_v36 = vld [vmem:[#allocation16 + $0x18] sm:$0xff] }
 0x3c5   : > { %v7076_v17 = vperm.slane %v1790_v29, %v6793_v9  ;;  %v1800_v24 = vsel %vm1371_vm2, %v1799_v4, %v1617_v33  ;;  %v1801_v37 = vrot.slane %v1617_v33, 4  ;;  %v1870_v4 = vperm.slane %v1862_v58, %v6806_v40  ;;  %2260 = vmatpush.msra.mxu2 %v7112_v36 }
 0x3c6   : > { %v1788_v2 = vsel %vm1371_vm2, %v1787_v1, %v6929_v51  ;;  %v1806_v13 = vperm.slane %v1800_v24, %v6793_v9  ;;  %v7098_v51 = vsel %vm1371_vm2, %v1766_v26, %v1781_v41  ;;  %v7114_v24 = vld [vmem:[#allocation16 + $0x10] sm:$0xff]  ;;  %v1878_v22 = vperm.slane %v1872_v16, %v6806_v40 }
 0x3c7   : > { %v1794_v62 = vperm.slane %v1788_v2, %v6793_v9  ;;  %v1849_v10 = vrot.slane %v7076_v17, 4  ;;  %v1802_v63 = vsel %vm1371_vm2, %v1623_v47, %v1801_v37  ;;  %8498 = vst [vmem:[#allocation44_spill] sm:$0xff] %v7098_v51  ;;  %v1973_v47 = vrot.slane %v7083_v6, 4  ;;  %2261 = vmatpush.msra.mxu2 %v7114_v24 }
 0x3c8   : > { %v1810_v25 = vperm.slane %v1802_v63, %v6793_v9  ;;  %v1835_v5 = vrot.slane %v1806_v13, 4  ;;  %v7124_v2 = vsel %vm1371_vm2, %v7026_v14, %v1785_v59  ;;  %v7133_v14 = vld [vmem:[#allocation11 + $0x18] sm:$0xff]  ;;  %v1895_v16 = vrot.slane %v7120_v27, 4 }
 0x3c9   : > { %v1837_v15 = vrot.slane %v1794_v62, 4  ;;  %4941 = vmatmul.msk.f32.gmra.mxu1 %vm2165_vm3, %v7088_v39  ;;  %8499 = vst [vmem:[#allocation45_spill] sm:$0xff] %v7124_v2 }
 0x3ca   : > { %v1836_v58 = vsel %vm1371_vm2, %v1835_v5, %v1794_v62  ;;  %v1850_v26 = vsel %vm1371_vm2, %v1810_v25, %v1849_v10  ;;  %v1887_v10 = vrot.slane %v1870_v4, 4  ;;  %v1847_v63 = vrot.slane %v1810_v25, 4 }
 0x3cb   : > { %v1838_v1 = vsel %vm1371_vm2, %v1806_v13, %v1837_v15  ;;  %v1670_v29 = vpop.permute.xlu2 %1669  ;;  %v1647_v33 = vpop.permute.xlu1 %1646  ;;  %v7117_v37 = vperm.slane %v1836_v58, %v6806_v40  ;;  %v1858_v59 = vperm.slane %v1850_v26, %v6806_v40  ;;  %v2047_v26 = vrot.slane %v7067_v12, 4 }
 0x3cc   : > { %v2038_v41 = vsel %vm1371_vm2, %v1670_v29, %v2037_v23  ;;  %v1936_v13 = vsel %vm1371_vm2, %v1935_v7, %v1647_v33  ;;  %v1937_v52 = vrot.slane %v1647_v33, 4  ;;  %v1643_v62 = vpop.permute.xlu0 %1642  ;;  %v2035_v5 = vrot.slane %v1670_v29, 4 }
 0x3cd   : > { %v1942_v15 = vperm.slane %v1936_v13, %v6793_v9  ;;  %v1885_v23 = vrot.slane %v7117_v37, 4  ;;  %v1846_v7 = vperm.slane %v1838_v1, %v6806_v40  ;;  %v1985_v33 = vrot.slane %v1934_v3, 4 }
 0x3ce   : > { %v1938_v58 = vsel %vm1371_vm2, %v6990_v20, %v1937_v52  ;;  %v7140_v25 = vperm.slane %v2038_v41, %v6793_v9  ;;  %v2036_v41 = vsel %vm1371_vm2, %v2035_v5, %v6961_v50 }
 0x3cf   : > { %v1946_v29 = vperm.slane %v1938_v58, %v6793_v9  ;;  %v1974_v20 = vsel %vm1371_vm2, %v1942_v15, %v1973_v47  ;;  %v7147_v13 = vsel %vm1371_vm2, %v7108_v11, %v1885_v23  ;;  %v7150_v52 = vsel %vm1371_vm2, %v1887_v10, %v1846_v7 }
 0x3d0   : > { %v1889_v1 = vrot.slane %v1846_v7, 4  ;;  %v1891_v58 = vrot.slane %v1878_v22, 4  ;;  %v1971_v2 = vrot.slane %v1942_v15, 4  ;;  %v1848_v23 = vsel %vm1371_vm2, %v1847_v63, %v7076_v17 }
 0x3d1   : > { %v1983_v56 = vrot.slane %v1946_v29, 4  ;;  %4942 = vmatmul.msk.f32.gmra.mxu1 %vm2165_vm3, %v7133_v14  ;;  %v7163_v10 = vsel %vm1371_vm2, %v1895_v16, %v1858_v59  ;;  %v1911_v7 = vrot.slane %v1643_v62, 4  ;;  %v1854_v54 = vperm.slane %v1848_v23, %v6806_v40 }
 0x3d2   : > { %v7158_v47 = vsel %vm1371_vm2, %v1870_v4, %v1889_v1  ;;  %8500 = vst [vmem:[#allocation46_spill] sm:$0xff] %v7163_v10  ;;  %v1986_v5 = vsel %vm1371_vm2, %v1946_v29, %v1985_v33  ;;  %v7169_v8 = vperm.slane %v2036_v41, %v6793_v9  ;;  %v2097_v4 = vrot.slane %v7140_v25, 4 }
 0x3d3   : > { %v1640_v42 = vpop.permute.xlu1 %1639  ;;  %v1984_v50 = vsel %vm1371_vm2, %v1983_v56, %v1934_v3  ;;  %v8501_v1 = vrot.slane %v6947_v53, 4  ;;  %v7178_v56 = vsel %vm1371_vm2, %v1891_v58, %v1854_v54  ;;  %v1972_v3 = vsel %vm1371_vm2, %v1971_v2, %v7083_v6 }
 0x3d4   : > { %v1899_v15 = vrot.slane %v1640_v42, 4  ;;  %v1637_v63 = vpop.permute.xlu0 %1636  ;;  %v1893_v41 = vrot.slane %v1854_v54, 4  ;;  %v1897_v6 = vrot.slane %v1858_v59, 4  ;;  %v2085_v2 = vrot.slane %v7169_v8, 4 }
 0x3d5   : > { %v1902_v17 = vsel %vm1371_vm2, %v1640_v42, %v8501_v1  ;;  %v1912_v10 = vsel %vm1371_vm2, %v1911_v7, %v1637_v63  ;;  %v1913_v23 = vrot.slane %v1637_v63, 4  ;;  %v1982_v42 = vperm.slane %v1974_v20, %v6806_v40 }
 0x3d6   : > { %v1910_v16 = vperm.slane %v1902_v17, %v6793_v9  ;;  %v1900_v33 = vsel %vm1371_vm2, %v1899_v15, %v6947_v53  ;;  %v1918_v29 = vperm.slane %v1912_v10, %v6793_v9  ;;  %v7190_v31 = vsel %vm1371_vm2, %v1878_v22, %v1893_v41 }
 0x3d7   : > { %v1906_v1 = vperm.slane %v1900_v33, %v6793_v9  ;;  %v1914_v7 = vsel %vm1371_vm2, %v1643_v62, %v1913_v23  ;;  %8502 = vst [vmem:[#allocation47_spill] sm:$0xff] %v7190_v31  ;;  %v7194_v10 = vperm.slane %v1972_v3, %v6806_v40  ;;  %v1990_v54 = vperm.slane %v1984_v50, %v6806_v40  ;;  %v2283_v31 = vld [vmem:[%s6559_s9 + $0x30] sm:$0xff] }
 0x3d8   : > { %v1961_v17 = vrot.slane %v1910_v16, 4  ;;  %v1922_v63 = vperm.slane %v1914_v7, %v6793_v9  ;;  %v1947_v58 = vrot.slane %v1918_v29, 4  ;;  %v7201_v23 = vsel %vm1371_vm2, %v7120_v27, %v1897_v6 }
 0x3d9   : > { %v1949_v53 = vrot.slane %v1906_v1, 4  ;;  %8503 = vst [vmem:[#allocation48_spill] sm:$0xff] %v7201_v23  ;;  %v1999_v41 = vrot.slane %v1982_v42, 4  ;;  %v1994_v3 = vperm.slane %v1986_v5, %v6806_v40 }
 0x3da   : > { %v1959_v20 = vrot.slane %v1922_v63, 4  ;;  %v1948_v15 = vsel %vm1371_vm2, %v1947_v58, %v1906_v1  ;;  %v1962_v62 = vsel %vm1371_vm2, %v1922_v63, %v1961_v17 }
 0x3db   : > { %v1950_v22 = vsel %vm1371_vm2, %v1918_v29, %v1949_v53  ;;  %v1667_v59 = vpop.permute.xlu1 %1666  ;;  %v7205_v33 = vperm.slane %v1948_v15, %v6806_v40  ;;  %v2003_v29 = vrot.slane %v1990_v54, 4  ;;  %v1970_v58 = vperm.slane %v1962_v62, %v6806_v40 }
 0x3dc   : > { %v2048_v50 = vsel %vm1371_vm2, %v2047_v26, %v1667_v59  ;;  %v2049_v7 = vrot.slane %v1667_v59, 4  ;;  %v1663_v43 = vpop.permute.xlu0 %1662  ;;  %v1958_v1 = vperm.slane %v1950_v22, %v6806_v40  ;;  %v1960_v17 = vsel %vm1371_vm2, %v1959_v20, %v1910_v16 }
 0x3dd   : > { %v2054_v27 = vperm.slane %v2048_v50, %v6793_v9  ;;  %v1997_v63 = vrot.slane %v7205_v33, 4  ;;  %v1966_v53 = vperm.slane %v1960_v17, %v6806_v40  ;;  %v2007_v22 = vrot.slane %v1994_v3, 4 }
 0x3de   : > { %v2050_v6 = vsel %vm1371_vm2, %v7067_v12, %v2049_v7  ;;  %v7217_v5 = vsel %vm1371_vm2, %v1999_v41, %v1958_v1  ;;  %v2001_v26 = vrot.slane %v1958_v1, 4  ;;  %v2023_v50 = vrot.slane %v1663_v43, 4 }
 0x3df   : > { %v2058_v15 = vperm.slane %v2050_v6, %v6793_v9  ;;  %v2086_v16 = vsel %vm1371_vm2, %v2054_v27, %v2085_v2  ;;  %v7224_v20 = vsel %vm1371_vm2, %v7194_v10, %v1997_v63  ;;  %v7230_v12 = vsel %vm1371_vm2, %v2003_v29, %v1966_v53 }
 0x3e0   : > { %v7227_v62 = vsel %vm1371_vm2, %v1982_v42, %v2001_v26  ;;  %v2005_v59 = vrot.slane %v1966_v53, 4  ;;  %v7233_v7 = vsel %vm1371_vm2, %v2007_v22, %v1970_v58  ;;  %v2013_v2 = vrot.slane %v6963_v55, 4 }
 0x3e1   : > { %v2095_v41 = vrot.slane %v2058_v15, 4  ;;  %8504 = vst [vmem:[#allocation49_spill] sm:$0xff] %v7233_v7  ;;  %v2098_v1 = vsel %vm1371_vm2, %v2058_v15, %v2097_v4  ;;  %v2009_v6 = vrot.slane %v1970_v58, 4  ;;  %v2083_v23 = vrot.slane %v2054_v27, 4 }
 0x3e2   : > { %v7238_v17 = vsel %vm1371_vm2, %v1990_v54, %v2005_v59  ;;  %v2106_v27 = vperm.slane %v2098_v1, %v6806_v40 }
 0x3e3   : > { %8505 = vst [vmem:[#allocation50_spill] sm:$0xff] %v7238_v17  ;;  %v1660_v63 = vpop.permute.xlu1 %1659  ;;  %v2096_v42 = vsel %vm1371_vm2, %v2095_v41, %v7140_v25  ;;  %v7249_v59 = vsel %vm1371_vm2, %v1994_v3, %v2009_v6 }
 0x3e4   : > { %v2011_v29 = vrot.slane %v1660_v63, 4  ;;  %v2014_v26 = vsel %vm1371_vm2, %v1660_v63, %v2013_v2  ;;  %v1657_v53 = vpop.permute.xlu0 %1656  ;;  %8506 = vst [vmem:[#allocation51_spill] sm:$0xff] %v7249_v59  ;;  %v2094_v2 = vperm.slane %v2086_v16, %v6806_v40 }
 0x3e5   : > { %v2022_v22 = vperm.slane %v2014_v26, %v6793_v9  ;;  %v2024_v7 = vsel %vm1371_vm2, %v2023_v50, %v1657_v53  ;;  %v2025_v4 = vrot.slane %v1657_v53, 4  ;;  %v2119_v53 = vrot.slane %v2106_v27, 4 }
 0x3e6   : > { %v2012_v15 = vsel %vm1371_vm2, %v2011_v29, %v6963_v55  ;;  %v2030_v54 = vperm.slane %v2024_v7, %v6793_v9  ;;  %v2084_v55 = vsel %vm1371_vm2, %v2083_v23, %v7169_v8  ;;  %v2102_v7 = vperm.slane %v2096_v42, %v6806_v40 }
 0x3e7   : > { %v2018_v25 = vperm.slane %v2012_v15, %v6793_v9  ;;  %v2073_v58 = vrot.slane %v2022_v22, 4  ;;  %v2026_v41 = vsel %vm1371_vm2, %v1663_v43, %v2025_v4  ;;  %v2111_v8 = vrot.slane %v2094_v2, 4 }
 0x3e8   : > { %v2034_v50 = vperm.slane %v2026_v41, %v6793_v9  ;;  %v2059_v63 = vrot.slane %v2030_v54, 4  ;;  %v2090_v9 = vperm.slane %v2084_v55, %v6806_v40 }
 0x3e9   : > { %v2061_v29 = vrot.slane %v2018_v25, 4 }
 0x3ea   : > { %v2071_v3 = vrot.slane %v2034_v50, 4  ;;  %v2060_v6 = vsel %vm1371_vm2, %v2059_v63, %v2018_v25  ;;  %v2074_v26 = vsel %vm1371_vm2, %v2034_v50, %v2073_v58  ;;  %v2115_v25 = vrot.slane %v2102_v7, 4 }
 0x3eb   : > { %v2062_v43 = vsel %vm1371_vm2, %v2030_v54, %v2061_v29  ;;  %v2066_v1 = vperm.slane %v2060_v6, %v6806_v40  ;;  %v2082_v16 = vperm.slane %v2074_v26, %v6806_v40  ;;  %v7289_v6 = vld [vmem:[#allocation16 + $0x8] sm:$0xff]  ;;  %v7291_v26 = vld [vmem:[#allocation16] sm:$0xff] }
 0x3ec   : > { %v2070_v4 = vperm.slane %v2062_v43, %v6806_v40  ;;  %v2072_v23 = vsel %vm1371_vm2, %v2071_v3, %v2022_v22  ;;  %2262 = vmatpush.msra.mxu2 %v7289_v6  ;;  %v1771_v43 = vrot.slane %v7030_v19, 4 }
 0x3ed   : > { %v2109_v42 = vrot.slane %v2066_v1, 4  ;;  %v2078_v15 = vperm.slane %v2072_v23, %v6806_v40  ;;  %v7269_v58 = vsel %vm1371_vm2, %v2119_v53, %v2082_v16  ;;  %v2121_v50 = vrot.slane %v2082_v16, 4 }
 0x3ee   : > { %8507 = vst [vmem:[#allocation52_spill] sm:$0xff] %v7269_v58  ;;  %v7272_v54 = vsel %vm1371_vm2, %v2111_v8, %v2070_v4  ;;  %v2113_v41 = vrot.slane %v2070_v4, 4  ;;  %2263 = vmatpush.msra.mxu2 %v7291_v26  ;;  %v1995_v23 = vrot.slane %v7194_v10, 4  ;;  %v7309_v10 = vld [vmem:[#allocation14] sm:$0xff]  ;;  %v2280_v58 = vld [vmem:[%s6559_s9 + $0x18] sm:$0xff] }
 0x3ef   : > { %v7275_v63 = vsel %vm1371_vm2, %v2090_v9, %v2109_v42  ;;  %v7278_v55 = vsel %vm1371_vm2, %v2115_v25, %v2078_v15  ;;  %v2117_v29 = vrot.slane %v2078_v15, 4  ;;  %v7284_v40 = vsel %vm1371_vm2, %v2106_v27, %v2121_v50 }
 0x3f0   : > { %v7281_v22 = vsel %vm1371_vm2, %v2094_v2, %v2113_v41  ;;  %8508 = vst [vmem:[#allocation53_spill] sm:$0xff] %v7284_v40  ;;  %v1772_v2 = vsel %vm1371_vm2, %v1771_v43, %v7023_v45  ;;  %v1883_v27 = vrot.slane %v7108_v11, 4  ;;  %v1996_v19 = vsel %vm1371_vm2, %v1995_v23, %v7205_v33  ;;  %v7315_v33 = vld [vmem:[#allocation14 + $0x8] sm:$0xff] }
 0x3f1   : > { %v7287_v3 = vsel %vm1371_vm2, %v2102_v7, %v2117_v29  ;;  %v2107_v15 = vrot.slane %v2090_v9, 4  ;;  %v7325_v9 = vld [vmem:[#allocation14 + $0x18] sm:$0xff]  ;;  %v7351_v23 = vld [vmem:[#allocation14 + $0x28] sm:$0xff] }
 0x3f2   : > { %8509 = vst [vmem:[#allocation54_spill] sm:$0xff] %v7287_v3  ;;  %v1884_v7 = vsel %vm1371_vm2, %v1883_v27, %v7117_v37  ;;  %v7337_v27 = vld [vmem:[#allocation19 + $0x20] sm:$0xff] }
 0x3f3   : > { %v2108_v25 = vsel %vm1371_vm2, %v2107_v15, %v2066_v1  ;;  %v7321_v1 = vld [vmem:[#allocation14 + $0x10] sm:$0xff]  ;;  %v7365_v15 = vld [vmem:[#allocation19] sm:$0xff] }
 0x436   : > { %v2224_v16 = vpop.f32.mrf.mxu1 }
 0x437   : > { %v2225_v53 = vadd.f32 %v2224_v16, %v1772_v2  ;;  %v7329_v2 = vld [vmem:[#allocation19 + $0x38] sm:$0xff]  ;;  %v7331_v16 = vld [vmem:[#allocation19 + $0x30] sm:$0xff] }
 0x438   : > { %2382 = vmatpush.msrb.mxu0 %v7329_v2 }
 0x439   : > { %4943 = vmatmul.msk.f32.vlgmr.msra.gmra.mxu2 %vm860_vm0, %v2225_v53  ;;  %v7334_v53 = vld [vmem:[#allocation19 + $0x28] sm:$0xff] }
 0x43a   : > { %2383 = vmatpush.msrb.mxu0 %v7331_v16 }
 0x43c   : > { %2384 = vmatpush.msrb.mxu0 %v7334_v53 }
 0x43e   : > { %v2227_v4 = vpop.f32.mrf.mxu1  ;;  %2385 = vmatpush.msrb.mxu0 %v7337_v27 }
 0x43f   : > { %v2228_v8 = vadd.f32 %v2227_v4, %v1884_v7  ;;  %v7339_v7 = vld [vmem:[#allocation14 + $0x20] sm:$0xff]  ;;  %v7342_v4 = vld [vmem:[#allocation19 + $0x18] sm:$0xff] }
 0x440   : > { %2386 = vmatpush.msrb.mxu0 %v7342_v4 }
 0x441   : > { %4944 = vmatmul.msk.f32.gmra.mxu2 %vm860_vm0, %v2228_v8  ;;  %v7347_v8 = vld [vmem:[#allocation19 + $0x10] sm:$0xff] }
 0x442   : > { %2387 = vmatpush.msrb.mxu0 %v7347_v8 }
 0x446   : > { %v2230_v42 = vpop.f32.mrf.mxu1 }
 0x447   : > { %v2231_v45 = vadd.f32 %v2230_v42, %v1996_v19  ;;  %v7355_v19 = vld [vmem:[#allocation14 + $0x30] sm:$0xff]  ;;  %v7359_v42 = vld [vmem:[#allocation14 + $0x38] sm:$0xff] }
 0x449   : > { %4945 = vmatmul.msk.f32.gmra.mxu2 %vm860_vm0, %v2231_v45  ;;  %v7363_v45 = vld [vmem:[#allocation19 + $0x8] sm:$0xff] }
 0x44a   : > { %2388 = vmatpush.msrb.mxu0 %v7363_v45 }
 0x44c   : > { %2389 = vmatpush.msrb.mxu0 %v7365_v15 }
 0x44e   : > { %v2233_v11 = vpop.f32.mrf.mxu1 }
 0x44f   : > { %v2234_v41 = vadd.f32 %v2233_v11, %v2108_v25  ;;  %v2277_v25 = vld [vmem:[%s6559_s9] sm:$0xff] }
 0x451   : > { %4946 = vmatmul.msk.f32.gmra.mxu2 %vm860_vm0, %v2234_v41 }
 0x4bc   : > { %v2265_v37 = vpop.f32.mrf.mxu2 }
 0x4c4   : > { %v2268_v50 = vpop.f32.mrf.mxu2 }
 0x4cc   : > { %v2271_v29 = vpop.f32.mrf.mxu2 }
 0x4d4   : > { %v2274_v43 = vpop.f32.mrf.mxu2 }
 0x4d5   : > { %2321 = vmatpush.msra.mxu3 %v2274_v43  ;;  %v2279_v43 = vld [vmem:[%s6559_s9 + $0x10] sm:$0xff] }
 0x4d7   : > { %2322 = vmatpush.msra.mxu3 %v2271_v29 }
 0x4d9   : > { %2323 = vmatpush.msra.mxu3 %v2268_v50 }
 0x4db   : > { %2324 = vmatpush.msra.mxu3 %v2265_v37  ;;  %v2278_v37 = vld [vmem:[%s6559_s9 + $0x8] sm:$0xff] }
 0x4dc   : > { %4947 = vmatmul.msk.f32.vlgmr.msra.gmra.mxu3 %vm860_vm0, %v7309_v10 }
 0x4dd   : > { %2626 = vmatpush.msrb.mxu3 %v7112_v36 }
 0x4df   : > { %2627 = vmatpush.msrb.mxu3 %v7114_v24 }
 0x4e1   : > { %2628 = vmatpush.msrb.mxu3 %v7289_v6 }
 0x4e3   : > { %2629 = vmatpush.msrb.mxu3 %v7291_v26 }
 0x4e4   : > { %4948 = vmatmul.msk.f32.gmra.mxu3 %vm860_vm0, %v7315_v33 }
 0x4ec   : > { %4949 = vmatmul.msk.f32.gmra.mxu3 %vm860_vm0, %v7321_v1 }
 0x4f4   : > { %4950 = vmatmul.msk.f32.gmra.mxu3 %vm860_vm0, %v7325_v9 }
 0x4fc   : > { %4951 = vmatmul.msk.f32.gmra.mxu3 %vm860_vm0, %v7339_v7 }
 0x504   : > { %4952 = vmatmul.msk.f32.gmra.mxu3 %vm860_vm0, %v7351_v23 }
 0x50c   : > { %4953 = vmatmul.msk.f32.gmra.mxu3 %vm860_vm0, %v7355_v19 }
 0x514   : > { %4954 = vmatmul.msk.f32.gmra.mxu3 %vm860_vm0, %v7359_v42 }
 0x55f   : > { %v2326_v11 = vpop.f32.mrf.mxu3 }
 0x560   : > { %v2327_v41 = vadd.f32 %v2326_v11, %v2277_v25  ;;  %v2281_v25 = vld [vmem:[%s6559_s9 + $0x20] sm:$0xff] }
 0x562   : > { %4955 = vmatmul.msk.f32.vlgmr.msrb.gmra.mxu0 %vm916_vm1, %v2327_v41 }
 0x567   : > { %v2329_v50 = vpop.f32.mrf.mxu3 }
 0x568   : > { %v2330_v29 = vadd.f32 %v2329_v50, %v2278_v37  ;;  %v2282_v37 = vld [vmem:[%s6559_s9 + $0x28] sm:$0xff] }
 0x56a   : > { %4956 = vmatmul.msk.f32.gmra.mxu0 %vm916_vm1, %v2330_v29 }
 0x56f   : > { %v2332_v40 = vpop.f32.mrf.mxu3 }
 0x570   : > { %v2333_v59 = vadd.f32 %v2332_v40, %v2279_v43 }
 0x572   : > { %4957 = vmatmul.msk.f32.gmra.mxu0 %vm916_vm1, %v2333_v59  ;;  %v2284_v59 = vld [vmem:[%s6559_s9 + $0x38] sm:$0xff] }
 0x577   : > { %v2335_v3 = vpop.f32.mrf.mxu3 }
 0x578   : > { %v2336_v17 = vadd.f32 %v2335_v3, %v2280_v58 }
 0x57a   : > { %4958 = vmatmul.msk.f32.gmra.mxu0 %vm916_vm1, %v2336_v17 }
 0x57f   : > { %v2338_v11 = vpop.f32.mrf.mxu3 }
 0x580   : > { %v2339_v41 = vadd.f32 %v2338_v11, %v2281_v25 }
 0x582   : > { %4959 = vmatmul.msk.f32.gmra.mxu0 %vm916_vm1, %v2339_v41 }
 0x587   : > { %v2341_v50 = vpop.f32.mrf.mxu3 }
 0x588   : > { %v2342_v29 = vadd.f32 %v2341_v50, %v2282_v37  ;;  %v7399_v50 = vld [vmem:[#allocation17 + $0x70] sm:$0xff] }
 0x58a   : > { %4960 = vmatmul.msk.f32.gmra.mxu0 %vm916_vm1, %v2342_v29  ;;  %v7403_v29 = vld [vmem:[#allocation17 + $0x78] sm:$0xff] }
 0x58f   : > { %v2344_v40 = vpop.f32.mrf.mxu3 }
 0x590   : > { %v2345_v43 = vadd.f32 %v2344_v40, %v2283_v31  ;;  %v7385_v31 = vld [vmem:[#allocation17 + $0x60] sm:$0xff] }
 0x592   : > { %4961 = vmatmul.msk.f32.gmra.mxu0 %vm916_vm1, %v2345_v43 }
 0x597   : > { %v2347_v51 = vpop.f32.mrf.mxu3 }
 0x598   : > { %v2348_v58 = vadd.f32 %v2347_v51, %v2284_v59  ;;  %v7395_v51 = vld [vmem:[#allocation17 + $0x68] sm:$0xff] }
 0x59a   : > { %4962 = vmatmul.msk.f32.gmra.mxu0 %vm916_vm1, %v2348_v58 }
 0x5df   : > { %v2391_v17 = vpop.f32.mrf.mxu0 }
 0x5e7   : > { %v2394_v3 = vpop.f32.mrf.mxu0 }
 0x5ef   : > { %v2397_v25 = vpop.f32.mrf.mxu0 }
 0x5f7   : > { %v2400_v11 = vpop.f32.mrf.mxu0 }
 0x5ff   : > { %v2403_v41 = vpop.f32.mrf.mxu0 }
 0x607   : > { %v2406_v38 = vpop.f32.mrf.mxu0 }
 0x60f   : > { %v2409_v35 = vpop.f32.mrf.mxu0 }
 0x617   : > { %v2412_v37 = vpop.f32.mrf.mxu0 }
 0x618   : > { %2471 = vmatpush.msra.mxu0 %v2412_v37  ;;  %5453 = vmatpush.msra.mxu1 %v2412_v37 }
 0x619   : > { %5454 = vmatpush.msrb.mxu2 %v2412_v37 }
 0x61a   : > { %2472 = vmatpush.msra.mxu0 %v2409_v35  ;;  %5455 = vmatpush.msra.mxu1 %v2409_v35 }
 0x61b   : > { %5456 = vmatpush.msrb.mxu2 %v2409_v35  ;;  %v7389_v35 = vld [vmem:[#allocation13 + $0x8] sm:$0xff] }
 0x61c   : > { %2473 = vmatpush.msra.mxu0 %v2406_v38  ;;  %5457 = vmatpush.msra.mxu1 %v2406_v38 }
 0x61d   : > { %5458 = vmatpush.msrb.mxu2 %v2406_v38  ;;  %v7392_v38 = vld [vmem:[#allocation13] sm:$0xff] }
 0x61e   : > { %2474 = vmatpush.msra.mxu0 %v2403_v41  ;;  %5459 = vmatpush.msra.mxu1 %v2403_v41 }
 0x61f   : > { %5460 = vmatpush.msrb.mxu2 %v2403_v41 }
 0x620   : > { %2475 = vmatpush.msra.mxu0 %v2400_v11  ;;  %5461 = vmatpush.msra.mxu1 %v2400_v11 }
 0x621   : > { %5462 = vmatpush.msrb.mxu2 %v2400_v11 }
 0x622   : > { %2476 = vmatpush.msra.mxu0 %v2397_v25  ;;  %5463 = vmatpush.msra.mxu1 %v2397_v25 }
 0x623   : > { %5464 = vmatpush.msrb.mxu2 %v2397_v25 }
 0x624   : > { %2477 = vmatpush.msra.mxu0 %v2394_v3  ;;  %5465 = vmatpush.msra.mxu1 %v2394_v3 }
 0x625   : > { %5466 = vmatpush.msrb.mxu2 %v2394_v3 }
 0x626   : > { %2478 = vmatpush.msra.mxu0 %v2391_v17  ;;  %5467 = vmatpush.msra.mxu1 %v2391_v17 }
 0x627   : > { %5468 = vmatpush.msrb.mxu2 %v2391_v17 }
 0x628   : > { %4975 = vmatmul.msk.f32.vlgmr.msrb.gmra.mxu2 %vm916_vm1, %v7385_v31 }
 0x629   : > { %2564 = vmatpush.msra.mxu2 %v7389_v35 }
 0x62b   : > { %2565 = vmatpush.msra.mxu2 %v7392_v38 }
 0x630   : > { %4976 = vmatmul.msk.f32.gmra.mxu2 %vm916_vm1, %v7395_v51 }
 0x638   : > { %4977 = vmatmul.msk.f32.gmra.mxu2 %vm916_vm1, %v7399_v50 }
 0x640   : > { %4978 = vmatmul.msk.f32.gmra.mxu2 %vm916_vm1, %v7403_v29 }
 0x648   : > { %4979 = vmatmul.msk.f32.vlgmr.msra.gmra.mxu2 %vm2165_vm3, %v6857_v46 }
 0x650   : > { %4980 = vmatmul.msk.f32.gmra.mxu2 %vm2165_vm3, %v6910_v34 }
 0x6ab   : > { %v2516_v40 = vpop.f32.mrf.mxu2 }
 0x6ac   : > { %2540 = vst [vmem:[%s7412_s6 + $0x60] sm:$0xff] %v2516_v40 }
 0x6b3   : > { %v2519_v43 = vpop.f32.mrf.mxu2 }
 0x6b4   : > { %2541 = vst [vmem:[%s7412_s6 + $0x68] sm:$0xff] %v2519_v43 }
 0x6bb   : > { %v2522_v59 = vpop.f32.mrf.mxu2 }
 0x6bc   : > { %2542 = vst [vmem:[%s7412_s6 + $0x70] sm:$0xff] %v2522_v59  ;;  %v7442_v59 = vld [vmem:[#allocation17] sm:$0xff] }
 0x6bd   : > { %4963 = vmatmul.msk.f32.vlgmr.msra.gmra.mxu0 %vm916_vm1, %v7442_v59 }
 0x6c3   : > { %v2525_v58 = vpop.f32.mrf.mxu2 }
 0x6c4   : > { %2543 = vst [vmem:[%s7412_s6 + $0x78] sm:$0xff] %v2525_v58 }
 0x6cb   : > { %v2567_v17 = vpop.f32.mrf.mxu2 }
 0x6d3   : > { %v2570_v46 = vpop.f32.mrf.mxu2 }
 0x6d4   : > { %2587 = vmatpush.msrb.mxu2 %v2570_v46 }
 0x6d6   : > { %2588 = vmatpush.msrb.mxu2 %v2567_v17 }
 0x6d7   : > { %4981 = vmatmul.msk.f32.vlgmr.msrb.gmra.mxu2 %vm2165_vm3, %v7003_v49 }
 0x6d8   : > { %2725 = vmatpush.msra.mxu2 %v7329_v2 }
 0x6da   : > { %2726 = vmatpush.msra.mxu2 %v7331_v16 }
 0x6dc   : > { %2727 = vmatpush.msra.mxu2 %v7334_v53 }
 0x6de   : > { %2728 = vmatpush.msra.mxu2 %v7337_v27 }
 0x6df   : > { %4982 = vmatmul.msk.f32.gmra.mxu2 %vm2165_vm3, %v7039_v30 }
 0x6e0   : > { %2729 = vmatpush.msra.mxu2 %v7342_v4 }
 0x6e2   : > { %2730 = vmatpush.msra.mxu2 %v7347_v8 }
 0x6e4   : > { %2731 = vmatpush.msra.mxu2 %v7363_v45 }
 0x6e6   : > { %2732 = vmatpush.msra.mxu2 %v7365_v15 }
 0x6e7   : > { %4983 = vmatmul.msk.f32.gmra.mxu2 %vm2165_vm3, %v7088_v39 }
 0x6ef   : > { %4984 = vmatmul.msk.f32.gmra.mxu2 %vm2165_vm3, %v7133_v14 }
 0x73a   : > { %v2480_v46 = vpop.f32.mrf.mxu0 }
 0x73b   : > { %2528 = vst [vmem:[%s7412_s6] sm:$0xff] %v2480_v46  ;;  %v4993_v46 = vld [vmem:[%s6559_s9 + $0x60] sm:$0xff] }
 0x75a   : > { %v2590_v34 = vpop.f32.mrf.mxu2 }
 0x75b   : > { %v2591_v3 = vadd.f32 %v2590_v34, %v7050_v61  ;;  %v7446_v61 = vld [vmem:[#allocation17 + $0x8] sm:$0xff] }
 0x75c   : > { %4964 = vmatmul.msk.f32.gmra.mxu0 %vm916_vm1, %v7446_v61 }
 0x75d   : > { %4985 = vmatmul.msk.f32.vlgmr.msrb.gmra.mxu3 %vm860_vm0, %v2591_v3 }
 0x762   : > { %v2593_v25 = vpop.f32.mrf.mxu2 }
 0x763   : > { %v2594_v11 = vadd.f32 %v2593_v25, %v7147_v13  ;;  %v7450_v13 = vld [vmem:[#allocation17 + $0x10] sm:$0xff]  ;;  %v4989_v25 = vld [vmem:[%s6559_s9 + $0x40] sm:$0xff] }
 0x764   : > { %4965 = vmatmul.msk.f32.gmra.mxu0 %vm916_vm1, %v7450_v13 }
 0x765   : > { %4986 = vmatmul.msk.f32.gmra.mxu3 %vm860_vm0, %v2594_v11 }
 0x76a   : > { %v2596_v41 = vpop.f32.mrf.mxu2 }
 0x76b   : > { %v2597_v37 = vadd.f32 %v2596_v41, %v7224_v20 }
 0x76d   : > { %4987 = vmatmul.msk.f32.gmra.mxu3 %vm860_vm0, %v2597_v37  ;;  %v4990_v37 = vld [vmem:[%s6559_s9 + $0x48] sm:$0xff] }
 0x772   : > { %v2599_v40 = vpop.f32.mrf.mxu2 }
 0x773   : > { %v2600_v43 = vadd.f32 %v2599_v40, %v7275_v63 }
 0x775   : > { %4988 = vmatmul.msk.f32.gmra.mxu3 %vm860_vm0, %v2600_v43 }
 0x7d9   : > { %v2483_v34 = vpop.f32.mrf.mxu0 }
 0x7da   : > { %2529 = vst [vmem:[%s7412_s6 + $0x8] sm:$0xff] %v2483_v34 }
 0x7e0   : > { %v2631_v20 = vpop.f32.mrf.mxu3 }
 0x7e1   : > { %v2486_v3 = vpop.f32.mrf.mxu0 }
 0x7e2   : > { %2530 = vst [vmem:[%s7412_s6 + $0x10] sm:$0xff] %v2486_v3 }
 0x7e8   : > { %v2634_v58 = vpop.f32.mrf.mxu3 }
 0x7f0   : > { %v2637_v63 = vpop.f32.mrf.mxu3 }
 0x7f8   : > { %v2640_v17 = vpop.f32.mrf.mxu3 }
 0x7f9   : > { %2664 = vmatpush.msrb.mxu0 %v2640_v17 }
 0x7fb   : > { %2665 = vmatpush.msrb.mxu0 %v2637_v63 }
 0x7fd   : > { %2666 = vmatpush.msrb.mxu0 %v2634_v58 }
 0x7ff   : > { %2667 = vmatpush.msrb.mxu0 %v2631_v20 }
 0x800   : > { %4997 = vmatmul.msk.f32.vlgmr.msrb.gmra.mxu0 %vm860_vm0, %v7309_v10 }
 0x801   : > { %2860 = vmatpush.msra.mxu0 %v7389_v35 }
 0x803   : > { %2861 = vmatpush.msra.mxu0 %v7392_v38 }
 0x805   : > { %2922 = vmatpush.msrb.mxu0 %v7112_v36 }
 0x807   : > { %2923 = vmatpush.msrb.mxu0 %v7114_v24 }
 0x808   : > { %4998 = vmatmul.msk.f32.gmra.mxu0 %vm860_vm0, %v7315_v33 }
 0x809   : > { %2924 = vmatpush.msrb.mxu0 %v7289_v6 }
 0x80b   : > { %2925 = vmatpush.msrb.mxu0 %v7291_v26 }
 0x810   : > { %4999 = vmatmul.msk.f32.gmra.mxu0 %vm860_vm0, %v7321_v1 }
 0x818   : > { %5000 = vmatmul.msk.f32.gmra.mxu0 %vm860_vm0, %v7325_v9 }
 0x820   : > { %5001 = vmatmul.msk.f32.gmra.mxu0 %vm860_vm0, %v7339_v7 }
 0x828   : > { %5002 = vmatmul.msk.f32.gmra.mxu0 %vm860_vm0, %v7351_v23 }
 0x830   : > { %5003 = vmatmul.msk.f32.gmra.mxu0 %vm860_vm0, %v7355_v19 }
 0x838   : > { %5004 = vmatmul.msk.f32.gmra.mxu0 %vm860_vm0, %v7359_v42 }
 0x840   : > { %5045 = vmatmul.msk.f32.vlgmr.msra.gmra.mxu0 %vm2165_vm3, %v6860_v48  ;;  %v4991_v48 = vld [vmem:[%s6559_s9 + $0x50] sm:$0xff] }
 0x848   : > { %5046 = vmatmul.msk.f32.gmra.mxu0 %vm2165_vm3, %v6889_v18  ;;  %v4992_v18 = vld [vmem:[%s6559_s9 + $0x58] sm:$0xff] }
 0x87d   : > { %v2669_v11 = vpop.f32.mrf.mxu0 }
 0x87e   : > { %v2670_v41 = vadd.f32 %v4989_v25, %v2669_v11  ;;  %v4994_v25 = vld [vmem:[%s6559_s9 + $0x68] sm:$0xff] }
 0x880   : > { %5005 = vmatmul.msk.f32.vlgmr.msra.gmra.mxu2 %vm916_vm1, %v2670_v41 }
 0x885   : > { %v2672_v40 = vpop.f32.mrf.mxu0 }
 0x886   : > { %v2673_v43 = vadd.f32 %v4990_v37, %v2672_v40  ;;  %v4995_v37 = vld [vmem:[%s6559_s9 + $0x70] sm:$0xff] }
 0x888   : > { %5006 = vmatmul.msk.f32.gmra.mxu2 %vm916_vm1, %v2673_v43 }
 0x88d   : > { %v2675_v20 = vpop.f32.mrf.mxu0 }
 0x88e   : > { %v2676_v58 = vadd.f32 %v4991_v48, %v2675_v20  ;;  %v4996_v48 = vld [vmem:[%s6559_s9 + $0x78] sm:$0xff] }
 0x890   : > { %5007 = vmatmul.msk.f32.gmra.mxu2 %vm916_vm1, %v2676_v58 }
 0x895   : > { %v2678_v63 = vpop.f32.mrf.mxu0 }
 0x896   : > { %v2679_v17 = vadd.f32 %v4992_v18, %v2678_v63 }
 0x898   : > { %5008 = vmatmul.msk.f32.gmra.mxu2 %vm916_vm1, %v2679_v17 }
 0x89d   : > { %v2681_v34 = vpop.f32.mrf.mxu0 }
 0x89e   : > { %v2682_v3 = vadd.f32 %v4993_v46, %v2681_v34 }
 0x8a0   : > { %5009 = vmatmul.msk.f32.gmra.mxu2 %vm916_vm1, %v2682_v3 }
 0x8a5   : > { %v2684_v11 = vpop.f32.mrf.mxu0 }
 0x8a6   : > { %v2685_v41 = vadd.f32 %v4994_v25, %v2684_v11 }
 0x8a8   : > { %5010 = vmatmul.msk.f32.gmra.mxu2 %vm916_vm1, %v2685_v41  ;;  %v7515_v41 = vld [vmem:[#allocation17 + $0x18] sm:$0xff] }
 0x8a9   : > { %4966 = vmatmul.msk.f32.vlgmr.msra.gmra.mxu1 %vm916_vm1, %v7515_v41 }
 0x8ad   : > { %v2687_v40 = vpop.f32.mrf.mxu0 }
 0x8ae   : > { %v2688_v43 = vadd.f32 %v4995_v37, %v2687_v40  ;;  %v7522_v37 = vld [vmem:[#allocation17 + $0x20] sm:$0xff] }
 0x8b0   : > { %5011 = vmatmul.msk.f32.gmra.mxu2 %vm916_vm1, %v2688_v43 }
 0x8b1   : > { %4967 = vmatmul.msk.f32.gmra.mxu1 %vm916_vm1, %v7522_v37 }
 0x8b5   : > { %v2690_v20 = vpop.f32.mrf.mxu0 }
 0x8b6   : > { %v2691_v58 = vadd.f32 %v4996_v48, %v2690_v20  ;;  %v7530_v48 = vld [vmem:[#allocation17 + $0x28] sm:$0xff] }
 0x8b8   : > { %5012 = vmatmul.msk.f32.gmra.mxu2 %vm916_vm1, %v2691_v58  ;;  %v7538_v58 = vld [vmem:[#allocation17 + $0x30] sm:$0xff] }
 0x8b9   : > { %4968 = vmatmul.msk.f32.gmra.mxu1 %vm916_vm1, %v7530_v48 }
 0x8bd   : > { %v2863_v18 = vpop.f32.mrf.mxu0 }
 0x8c1   : > { %4969 = vmatmul.msk.f32.gmra.mxu1 %vm916_vm1, %v7538_v58 }
 0x8c5   : > { %v2866_v63 = vpop.f32.mrf.mxu0 }
 0x8c6   : > { %2883 = vmatpush.msrb.mxu2 %v2866_v63  ;;  %v7546_v63 = vld [vmem:[#allocation17 + $0x38] sm:$0xff] }
 0x8c8   : > { %2884 = vmatpush.msrb.mxu2 %v2863_v18 }
 0x8c9   : > { %5047 = vmatmul.msk.f32.vlgmr.msrb.gmra.mxu2 %vm2165_vm3, %v7003_v49  ;;  %4970 = vmatmul.msk.f32.gmra.mxu1 %vm916_vm1, %v7546_v63 }
 0x8ca   : > { %3021 = vmatpush.msra.mxu2 %v7329_v2 }
 0x8cc   : > { %3022 = vmatpush.msra.mxu2 %v7331_v16 }
 0x8ce   : > { %3023 = vmatpush.msra.mxu2 %v7334_v53 }
 0x8d0   : > { %3024 = vmatpush.msra.mxu2 %v7337_v27 }
 0x8d1   : > { %5048 = vmatmul.msk.f32.gmra.mxu2 %vm2165_vm3, %v7039_v30 }
 0x8d2   : > { %3025 = vmatpush.msra.mxu2 %v7342_v4 }
 0x8d4   : > { %3026 = vmatpush.msra.mxu2 %v7347_v8 }
 0x8d6   : > { %3027 = vmatpush.msra.mxu2 %v7363_v45 }
 0x8d8   : > { %3028 = vmatpush.msra.mxu2 %v7365_v15 }
 0x8d9   : > { %5049 = vmatmul.msk.f32.gmra.mxu2 %vm2165_vm3, %v7088_v39 }
 0x8e1   : > { %5050 = vmatmul.msk.f32.gmra.mxu2 %vm2165_vm3, %v7133_v14 }
 0x903   : > { %v2734_v49 = vpop.f32.mrf.mxu2 }
 0x90b   : > { %v2737_v17 = vpop.f32.mrf.mxu2 }
 0x913   : > { %v2740_v46 = vpop.f32.mrf.mxu2 }
 0x91b   : > { %v2743_v34 = vpop.f32.mrf.mxu2 }
 0x923   : > { %v2746_v3 = vpop.f32.mrf.mxu2 }
 0x92b   : > { %v2749_v30 = vpop.f32.mrf.mxu2 }
 0x933   : > { %v2752_v25 = vpop.f32.mrf.mxu2 }
 0x93b   : > { %v2755_v11 = vpop.f32.mrf.mxu2 }
 0x93c   : > { %2766 = vmatpush.msra.mxu3 %v2755_v11 }
 0x93e   : > { %2767 = vmatpush.msra.mxu3 %v2752_v25  ;;  %v2489_v25 = vpop.f32.mrf.mxu1 }
 0x93f   : > { %2531 = vst [vmem:[%s7412_s6 + $0x18] sm:$0xff] %v2489_v25  ;;  %v5058_v25 = vld [vmem:[%s6559_s9 + $0x98] sm:$0xff] }
 0x940   : > { %2768 = vmatpush.msra.mxu3 %v2749_v30 }
 0x942   : > { %2769 = vmatpush.msra.mxu3 %v2746_v3 }
 0x944   : > { %2770 = vmatpush.msra.mxu3 %v2743_v34 }
 0x946   : > { %2771 = vmatpush.msra.mxu3 %v2740_v46 }
 0x948   : > { %2772 = vmatpush.msra.mxu3 %v2737_v17  ;;  %v7577_v17 = vld [vmem:[#allocation17 + $0x58] sm:$0xff] }
 0x94a   : > { %2773 = vmatpush.msra.mxu3 %v2734_v49  ;;  %v7571_v49 = vld [vmem:[#allocation17 + $0x50] sm:$0xff] }
 0x94b   : > { %5013 = vmatmul.msk.f32.vlgmr.msra.gmra.mxu3 %vm916_vm1, %v7442_v59 }
 0x94c   : > { %v2886_v39 = vpop.f32.mrf.mxu2 }
 0x94d   : > { %v2887_v14 = vadd.f32 %v2886_v39, %v7053_v60 }
 0x94f   : > { %5051 = vmatmul.msk.f32.vlgmr.msrb.gmra.mxu0 %vm860_vm0, %v2887_v14 }
 0x953   : > { %5014 = vmatmul.msk.f32.gmra.mxu3 %vm916_vm1, %v7446_v61 }
 0x954   : > { %v2889_v40 = vpop.f32.mrf.mxu2 }
 0x955   : > { %v2890_v43 = vadd.f32 %v2889_v40, %v7150_v52 }
 0x957   : > { %5052 = vmatmul.msk.f32.gmra.mxu0 %vm860_vm0, %v2890_v43 }
 0x95b   : > { %5015 = vmatmul.msk.f32.gmra.mxu3 %vm916_vm1, %v7450_v13 }
 0x95c   : > { %v2892_v60 = vpop.f32.mrf.mxu2 }
 0x95d   : > { %v2893_v20 = vadd.f32 %v2892_v60, %v7217_v5  ;;  %v7553_v5 = vld [vmem:[#allocation17 + $0x40] sm:$0xff] }
 0x95e   : > { %4971 = vmatmul.msk.f32.gmra.mxu1 %vm916_vm1, %v7553_v5 }
 0x95f   : > { %5053 = vmatmul.msk.f32.gmra.mxu0 %vm860_vm0, %v2893_v20  ;;  %v5055_v20 = vld [vmem:[%s6559_s9 + $0x80] sm:$0xff] }
 0x963   : > { %5016 = vmatmul.msk.f32.gmra.mxu3 %vm916_vm1, %v7515_v41 }
 0x964   : > { %v2895_v52 = vpop.f32.mrf.mxu2 }
 0x965   : > { %v2896_v18 = vadd.f32 %v2895_v52, %v7272_v54  ;;  %v7565_v54 = vld [vmem:[#allocation17 + $0x48] sm:$0xff] }
 0x966   : > { %4972 = vmatmul.msk.f32.gmra.mxu1 %vm916_vm1, %v7565_v54 }
 0x967   : > { %5054 = vmatmul.msk.f32.gmra.mxu0 %vm860_vm0, %v2896_v18 }
 0x96b   : > { %5017 = vmatmul.msk.f32.gmra.mxu3 %vm916_vm1, %v7522_v37 }
 0x96e   : > { %4973 = vmatmul.msk.f32.gmra.mxu1 %vm916_vm1, %v7571_v49 }
 0x973   : > { %5018 = vmatmul.msk.f32.gmra.mxu3 %vm916_vm1, %v7530_v48 }
 0x976   : > { %4974 = vmatmul.msk.f32.gmra.mxu1 %vm916_vm1, %v7577_v17 }
 0x97b   : > { %5019 = vmatmul.msk.f32.gmra.mxu3 %vm916_vm1, %v7538_v58 }
 0x983   : > { %5020 = vmatmul.msk.f32.gmra.mxu3 %vm916_vm1, %v7546_v63 }
 0x98b   : > { %5021 = vmatmul.msk.f32.gmra.mxu3 %vm916_vm1, %v7553_v5 }
 0x993   : > { %5022 = vmatmul.msk.f32.gmra.mxu3 %vm916_vm1, %v7565_v54 }
 0x99b   : > { %5023 = vmatmul.msk.f32.gmra.mxu3 %vm916_vm1, %v7571_v49 }
 0x9a3   : > { %5024 = vmatmul.msk.f32.gmra.mxu3 %vm916_vm1, %v7577_v17 }
 0x9ab   : > { %5025 = vmatmul.msk.f32.gmra.mxu3 %vm916_vm1, %v7385_v31 }
 0x9b3   : > { %5026 = vmatmul.msk.f32.gmra.mxu3 %vm916_vm1, %v7395_v51 }
 0x9bb   : > { %5027 = vmatmul.msk.f32.gmra.mxu3 %vm916_vm1, %v7399_v50 }
 0x9c3   : > { %5028 = vmatmul.msk.f32.gmra.mxu3 %vm916_vm1, %v7403_v29 }
 0x9cc   : > { %v2927_v46 = vpop.f32.mrf.mxu0 }
 0x9d4   : > { %v2930_v34 = vpop.f32.mrf.mxu0 }
 0x9dc   : > { %v2933_v3 = vpop.f32.mrf.mxu0 }
 0x9e4   : > { %v2936_v30 = vpop.f32.mrf.mxu0 }
 0x9e5   : > { %2960 = vmatpush.msrb.mxu1 %v2936_v30 }
 0x9e7   : > { %2961 = vmatpush.msrb.mxu1 %v2933_v3  ;;  %v5057_v3 = vld [vmem:[%s6559_s9 + $0x90] sm:$0xff] }
 0x9e9   : > { %2962 = vmatpush.msrb.mxu1 %v2930_v34 }
 0x9eb   : > { %2963 = vmatpush.msrb.mxu1 %v2927_v46  ;;  %v5056_v46 = vld [vmem:[%s6559_s9 + $0x88] sm:$0xff] }
 0x9ec   : > { %5063 = vmatmul.msk.f32.vlgmr.msrb.gmra.mxu1 %vm860_vm0, %v7309_v10 }
 0x9ed   : > { %3156 = vmatpush.msra.mxu1 %v7389_v35 }
 0x9ef   : > { %3157 = vmatpush.msra.mxu1 %v7392_v38 }
 0x9f1   : > { %3218 = vmatpush.msrb.mxu1 %v7112_v36  ;;  %v2492_v36 = vpop.f32.mrf.mxu1 }
 0x9f2   : > { %2532 = vst [vmem:[%s7412_s6 + $0x20] sm:$0xff] %v2492_v36 }
 0x9f3   : > { %3219 = vmatpush.msrb.mxu1 %v7114_v24 }
 0x9f4   : > { %5064 = vmatmul.msk.f32.gmra.mxu1 %vm860_vm0, %v7315_v33 }
 0x9f5   : > { %3220 = vmatpush.msrb.mxu1 %v7289_v6 }
 0x9f7   : > { %3221 = vmatpush.msrb.mxu1 %v7291_v26 }
 0x9f9   : > { %v2495_v24 = vpop.f32.mrf.mxu1 }
 0x9fa   : > { %2533 = vst [vmem:[%s7412_s6 + $0x28] sm:$0xff] %v2495_v24 }
 0x9fc   : > { %5065 = vmatmul.msk.f32.gmra.mxu1 %vm860_vm0, %v7321_v1 }
 0xa01   : > { %v2498_v11 = vpop.f32.mrf.mxu1 }
 0xa02   : > { %2534 = vst [vmem:[%s7412_s6 + $0x30] sm:$0xff] %v2498_v11  ;;  %v5059_v11 = vld [vmem:[%s6559_s9 + $0xa0] sm:$0xff] }
 0xa04   : > { %5066 = vmatmul.msk.f32.gmra.mxu1 %vm860_vm0, %v7325_v9 }
 0xa09   : > { %v2501_v39 = vpop.f32.mrf.mxu1 }
 0xa0a   : > { %2535 = vst [vmem:[%s7412_s6 + $0x38] sm:$0xff] %v2501_v39 }
 0xa0c   : > { %5067 = vmatmul.msk.f32.gmra.mxu1 %vm860_vm0, %v7339_v7 }
 0xa11   : > { %v2504_v14 = vpop.f32.mrf.mxu1 }
 0xa12   : > { %2536 = vst [vmem:[%s7412_s6 + $0x40] sm:$0xff] %v2504_v14 }
 0xa14   : > { %5068 = vmatmul.msk.f32.gmra.mxu1 %vm860_vm0, %v7351_v23 }
 0xa19   : > { %v2507_v40 = vpop.f32.mrf.mxu1 }
 0xa1a   : > { %2537 = vst [vmem:[%s7412_s6 + $0x48] sm:$0xff] %v2507_v40  ;;  %v5060_v40 = vld [vmem:[%s6559_s9 + $0xa8] sm:$0xff] }
 0xa1c   : > { %5069 = vmatmul.msk.f32.gmra.mxu1 %vm860_vm0, %v7355_v19 }
 0xa21   : > { %v2510_v43 = vpop.f32.mrf.mxu1 }
 0xa22   : > { %2538 = vst [vmem:[%s7412_s6 + $0x50] sm:$0xff] %v2510_v43 }
 0xa24   : > { %5070 = vmatmul.msk.f32.gmra.mxu1 %vm860_vm0, %v7359_v42 }
 0xa29   : > { %v2513_v60 = vpop.f32.mrf.mxu1 }
 0xa2a   : > { %2539 = vst [vmem:[%s7412_s6 + $0x58] sm:$0xff] %v2513_v60 }
 0xa2c   : > { %5111 = vmatmul.msk.f32.vlgmr.msra.gmra.mxu1 %vm2165_vm3, %v6871_v57 }
 0xa34   : > { %5112 = vmatmul.msk.f32.gmra.mxu1 %vm2165_vm3, %v6901_v28 }
 0xa69   : > { %v2965_v52 = vpop.f32.mrf.mxu1 }
 0xa6a   : > { %v2966_v18 = vadd.f32 %v5055_v20, %v2965_v52  ;;  %v2775_v20 = vpop.f32.mrf.mxu3  ;;  %v5061_v52 = vld [vmem:[%s6559_s9 + $0xb0] sm:$0xff] }
 0xa6b   : > { %5029 = vst [vmem:[%s7412_s6 + $0x80] sm:$0xff] %v2775_v20 }
 0xa6c   : > { %5071 = vmatmul.msk.f32.vlgmr.msra.gmra.mxu2 %vm916_vm1, %v2966_v18 }
 0xa71   : > { %v2968_v57 = vpop.f32.mrf.mxu1 }
 0xa72   : > { %v2969_v34 = vadd.f32 %v5056_v46, %v2968_v57  ;;  %v2778_v57 = vpop.f32.mrf.mxu3 }
 0xa73   : > { %5030 = vst [vmem:[%s7412_s6 + $0x88] sm:$0xff] %v2778_v57 }
 0xa74   : > { %5072 = vmatmul.msk.f32.gmra.mxu2 %vm916_vm1, %v2969_v34  ;;  %v5062_v34 = vld [vmem:[%s6559_s9 + $0xb8] sm:$0xff] }
 0xa79   : > { %v2971_v30 = vpop.f32.mrf.mxu1 }
 0xa7a   : > { %v2972_v28 = vadd.f32 %v5057_v3, %v2971_v30 }
 0xa7c   : > { %5073 = vmatmul.msk.f32.gmra.mxu2 %vm916_vm1, %v2972_v28  ;;  %v2781_v28 = vpop.f32.mrf.mxu3 }
 0xa7d   : > { %5031 = vst [vmem:[%s7412_s6 + $0x90] sm:$0xff] %v2781_v28 }
 0xa81   : > { %v2974_v36 = vpop.f32.mrf.mxu1 }
 0xa82   : > { %v2975_v24 = vadd.f32 %v5058_v25, %v2974_v36 }
 0xa84   : > { %5074 = vmatmul.msk.f32.gmra.mxu2 %vm916_vm1, %v2975_v24  ;;  %v2784_v36 = vpop.f32.mrf.mxu3 }
 0xa85   : > { %5032 = vst [vmem:[%s7412_s6 + $0x98] sm:$0xff] %v2784_v36 }
 0xa89   : > { %v2977_v39 = vpop.f32.mrf.mxu1 }
 0xa8a   : > { %v2978_v14 = vadd.f32 %v5059_v11, %v2977_v39  ;;  %v7646_v11 = vld [vmem:[#allocation11] sm:$0xff] }
 0xa8c   : > { %5075 = vmatmul.msk.f32.gmra.mxu2 %vm916_vm1, %v2978_v14  ;;  %v2787_v39 = vpop.f32.mrf.mxu3  ;;  %v7655_v14 = vld [vmem:[#allocation11 + $0x8] sm:$0xff] }
 0xa8d   : > { %5033 = vst [vmem:[%s7412_s6 + $0xa0] sm:$0xff] %v2787_v39 }
 0xa91   : > { %v2980_v43 = vpop.f32.mrf.mxu1 }
 0xa92   : > { %v2981_v60 = vadd.f32 %v5060_v40, %v2980_v43 }
 0xa94   : > { %5076 = vmatmul.msk.f32.gmra.mxu2 %vm916_vm1, %v2981_v60  ;;  %v2790_v40 = vpop.f32.mrf.mxu3 }
 0xa95   : > { %5034 = vst [vmem:[%s7412_s6 + $0xa8] sm:$0xff] %v2790_v40 }
 0xa99   : > { %v2983_v18 = vpop.f32.mrf.mxu1 }
 0xa9a   : > { %v2984_v46 = vadd.f32 %v5061_v52, %v2983_v18 }
 0xa9c   : > { %5077 = vmatmul.msk.f32.gmra.mxu2 %vm916_vm1, %v2984_v46 }
 0xaa1   : > { %v2986_v3 = vpop.f32.mrf.mxu1 }
 0xaa2   : > { %v2987_v30 = vadd.f32 %v5062_v34, %v2986_v3 }
 0xaa4   : > { %5078 = vmatmul.msk.f32.gmra.mxu2 %vm916_vm1, %v2987_v30 }
 0xaa9   : > { %v3159_v25 = vpop.f32.mrf.mxu1 }
 0xab1   : > { %v3162_v24 = vpop.f32.mrf.mxu1 }
 0xab2   : > { %3179 = vmatpush.msrb.mxu3 %v3162_v24 }
 0xab4   : > { %3180 = vmatpush.msrb.mxu3 %v3159_v25 }
 0xab5   : > { %5113 = vmatmul.msk.f32.vlgmr.msrb.gmra.mxu3 %vm2165_vm3, %v7646_v11 }
 0xab6   : > { %3317 = vmatpush.msra.mxu3 %v7329_v2  ;;  %v7664_v2 = vld [vmem:[#allocation11 + $0x10] sm:$0xff] }
 0xab8   : > { %3318 = vmatpush.msra.mxu3 %v7331_v16  ;;  %v2793_v16 = vpop.f32.mrf.mxu3 }
 0xab9   : > { %5035 = vst [vmem:[%s7412_s6 + $0xb0] sm:$0xff] %v2793_v16 }
 0xaba   : > { %3319 = vmatpush.msra.mxu3 %v7334_v53  ;;  %v7669_v53 = vld [vmem:[#allocation11 + $0x18] sm:$0xff] }
 0xabc   : > { %3320 = vmatpush.msra.mxu3 %v7337_v27 }
 0xabd   : > { %5114 = vmatmul.msk.f32.gmra.mxu3 %vm2165_vm3, %v7655_v14 }
 0xabe   : > { %3321 = vmatpush.msra.mxu3 %v7342_v4 }
 0xac0   : > { %3322 = vmatpush.msra.mxu3 %v7347_v8  ;;  %v2796_v27 = vpop.f32.mrf.mxu3 }
 0xac1   : > { %5036 = vst [vmem:[%s7412_s6 + $0xb8] sm:$0xff] %v2796_v27 }
 0xac2   : > { %3323 = vmatpush.msra.mxu3 %v7363_v45 }
 0xac4   : > { %3324 = vmatpush.msra.mxu3 %v7365_v15 }
 0xac5   : > { %5115 = vmatmul.msk.f32.gmra.mxu3 %vm2165_vm3, %v7664_v2 }
 0xac8   : > { %v2799_v4 = vpop.f32.mrf.mxu3 }
 0xac9   : > { %5037 = vst [vmem:[%s7412_s6 + $0xc0] sm:$0xff] %v2799_v4 }
 0xacd   : > { %5116 = vmatmul.msk.f32.gmra.mxu3 %vm2165_vm3, %v7669_v53 }
 0xad0   : > { %v2802_v8 = vpop.f32.mrf.mxu3 }
 0xad1   : > { %5038 = vst [vmem:[%s7412_s6 + $0xc8] sm:$0xff] %v2802_v8 }
 0xad8   : > { %v2805_v45 = vpop.f32.mrf.mxu3 }
 0xad9   : > { %5039 = vst [vmem:[%s7412_s6 + $0xd0] sm:$0xff] %v2805_v45  ;;  %v7726_v45 = vld [vmem:[#allocation16 + $0x18] sm:$0xff] }
 0xae0   : > { %v2808_v43 = vpop.f32.mrf.mxu3 }
 0xae1   : > { %5040 = vst [vmem:[%s7412_s6 + $0xd8] sm:$0xff] %v2808_v43 }
 0xae8   : > { %v2811_v20 = vpop.f32.mrf.mxu3 }
 0xae9   : > { %5041 = vst [vmem:[%s7412_s6 + $0xe0] sm:$0xff] %v2811_v20 }
 0xaef   : > { %v3030_v15 = vpop.f32.mrf.mxu2 }
 0xaf0   : > { %v2814_v18 = vpop.f32.mrf.mxu3 }
 0xaf1   : > { %5042 = vst [vmem:[%s7412_s6 + $0xe8] sm:$0xff] %v2814_v18 }
 0xaf7   : > { %v3033_v60 = vpop.f32.mrf.mxu2 }
 0xaf8   : > { %v2817_v57 = vpop.f32.mrf.mxu3 }
 0xaf9   : > { %5043 = vst [vmem:[%s7412_s6 + $0xf0] sm:$0xff] %v2817_v57 }
 0xaff   : > { %v3036_v52 = vpop.f32.mrf.mxu2 }
 0xb00   : > { %v2820_v3 = vpop.f32.mrf.mxu3 }
 0xb01   : > { %5044 = vst [vmem:[%s7412_s6 + $0xf8] sm:$0xff] %v2820_v3 }
 0xb07   : > { %v3039_v46 = vpop.f32.mrf.mxu2 }
 0xb0f   : > { %v3042_v34 = vpop.f32.mrf.mxu2 }
 0xb17   : > { %v3045_v30 = vpop.f32.mrf.mxu2 }
 0xb1f   : > { %v3048_v28 = vpop.f32.mrf.mxu2 }
 0xb27   : > { %v3051_v25 = vpop.f32.mrf.mxu2 }
 0xb28   : > { %3062 = vmatpush.msra.mxu0 %v3051_v25 }
 0xb2a   : > { %3063 = vmatpush.msra.mxu0 %v3048_v28 }
 0xb2c   : > { %3064 = vmatpush.msra.mxu0 %v3045_v30  ;;  %v5128_v30 = vld [vmem:[%s6559_s9 + $0xf8] sm:$0xff] }
 0xb2e   : > { %3065 = vmatpush.msra.mxu0 %v3042_v34 }
 0xb30   : > { %3066 = vmatpush.msra.mxu0 %v3039_v46  ;;  %v5127_v46 = vld [vmem:[%s6559_s9 + $0xf0] sm:$0xff] }
 0xb32   : > { %3067 = vmatpush.msra.mxu0 %v3036_v52 }
 0xb34   : > { %3068 = vmatpush.msra.mxu0 %v3033_v60  ;;  %v5126_v60 = vld [vmem:[%s6559_s9 + $0xe8] sm:$0xff] }
 0xb36   : > { %3069 = vmatpush.msra.mxu0 %v3030_v15  ;;  %v7729_v15 = vld [vmem:[#allocation16 + $0x10] sm:$0xff] }
 0xb37   : > { %5079 = vmatmul.msk.f32.vlgmr.msra.gmra.mxu0 %vm916_vm1, %v7442_v59 }
 0xb38   : > { %v3182_v36 = vpop.f32.mrf.mxu3 }
 0xb39   : > { %v3183_v24 = vadd.f32 %v3182_v36, %v7060_v0 }
 0xb3b   : > { %5117 = vmatmul.msk.f32.vlgmr.msrb.gmra.mxu1 %vm860_vm0, %v3183_v24 }
 0xb3f   : > { %5080 = vmatmul.msk.f32.gmra.mxu0 %vm916_vm1, %v7446_v61 }
 0xb40   : > { %v3185_v39 = vpop.f32.mrf.mxu3 }
 0xb41   : > { %v3186_v40 = vadd.f32 %v3185_v39, %v7158_v47 }
 0xb43   : > { %5118 = vmatmul.msk.f32.gmra.mxu1 %vm860_vm0, %v3186_v40 }
 0xb47   : > { %5081 = vmatmul.msk.f32.gmra.mxu0 %vm916_vm1, %v7450_v13 }
 0xb48   : > { %v3188_v16 = vpop.f32.mrf.mxu3 }
 0xb49   : > { %v3189_v27 = vadd.f32 %v3188_v16, %v7227_v62 }
 0xb4b   : > { %5119 = vmatmul.msk.f32.gmra.mxu1 %vm860_vm0, %v3189_v27  ;;  %v7775_v27 = vld [vmem:[#allocation19 + $0x38] sm:$0xff] }
 0xb4f   : > { %5082 = vmatmul.msk.f32.gmra.mxu0 %vm916_vm1, %v7515_v41 }
 0xb50   : > { %v3191_v0 = vpop.f32.mrf.mxu3 }
 0xb51   : > { %v3192_v4 = vadd.f32 %v3191_v0, %v7281_v22  ;;  %v7778_v0 = vld [vmem:[#allocation19 + $0x30] sm:$0xff] }
 0xb53   : > { %5120 = vmatmul.msk.f32.gmra.mxu1 %vm860_vm0, %v3192_v4 }
 0xb57   : > { %5083 = vmatmul.msk.f32.gmra.mxu0 %vm916_vm1, %v7522_v37 }
 0xb5f   : > { %5084 = vmatmul.msk.f32.gmra.mxu0 %vm916_vm1, %v7530_v48 }
 0xb67   : > { %5085 = vmatmul.msk.f32.gmra.mxu0 %vm916_vm1, %v7538_v58 }
 0xb6f   : > { %5086 = vmatmul.msk.f32.gmra.mxu0 %vm916_vm1, %v7546_v63 }
 0xb77   : > { %5087 = vmatmul.msk.f32.gmra.mxu0 %vm916_vm1, %v7553_v5 }
 0xb7f   : > { %5088 = vmatmul.msk.f32.gmra.mxu0 %vm916_vm1, %v7565_v54 }
 0xb87   : > { %5089 = vmatmul.msk.f32.gmra.mxu0 %vm916_vm1, %v7571_v49 }
 0xb8f   : > { %5090 = vmatmul.msk.f32.gmra.mxu0 %vm916_vm1, %v7577_v17 }
 0xb97   : > { %5091 = vmatmul.msk.f32.gmra.mxu0 %vm916_vm1, %v7385_v31 }
 0xb9f   : > { %5092 = vmatmul.msk.f32.gmra.mxu0 %vm916_vm1, %v7395_v51 }
 0xba7   : > { %5093 = vmatmul.msk.f32.gmra.mxu0 %vm916_vm1, %v7399_v50 }
 0xbaf   : > { %5094 = vmatmul.msk.f32.gmra.mxu0 %vm916_vm1, %v7403_v29 }
 0xbb4   : > { %v3071_v52 = vpop.f32.mrf.mxu0 }
 0xbb5   : > { %5095 = vst [vmem:[%s7412_s6 + $0x100] sm:$0xff] %v3071_v52 }
 0xbb8   : > { %v3223_v47 = vpop.f32.mrf.mxu1 }
 0xbbc   : > { %v3074_v34 = vpop.f32.mrf.mxu0 }
 0xbbd   : > { %5096 = vst [vmem:[%s7412_s6 + $0x108] sm:$0xff] %v3074_v34 }
 0xbc0   : > { %v3226_v62 = vpop.f32.mrf.mxu1 }
 0xbc4   : > { %v3077_v25 = vpop.f32.mrf.mxu0 }
 0xbc5   : > { %5097 = vst [vmem:[%s7412_s6 + $0x110] sm:$0xff] %v3077_v25 }
 0xbc8   : > { %v3229_v22 = vpop.f32.mrf.mxu1 }
 0xbcc   : > { %v3080_v39 = vpop.f32.mrf.mxu0 }
 0xbcd   : > { %5098 = vst [vmem:[%s7412_s6 + $0x118] sm:$0xff] %v3080_v39  ;;  %v7882_v39 = vld [vmem:[#allocation14 + $0x18] sm:$0xff] }
 0xbd0   : > { %v3232_v8 = vpop.f32.mrf.mxu1 }
 0xbd1   : > { %3256 = vmatpush.msrb.mxu2 %v3232_v8  ;;  %v7793_v8 = vld [vmem:[#allocation19 + $0x10] sm:$0xff] }
 0xbd3   : > { %3257 = vmatpush.msrb.mxu2 %v3229_v22  ;;  %v7790_v22 = vld [vmem:[#allocation19 + $0x18] sm:$0xff] }
 0xbd4   : > { %v3083_v16 = vpop.f32.mrf.mxu0 }
 0xbd5   : > { %3258 = vmatpush.msrb.mxu2 %v3226_v62  ;;  %5099 = vst [vmem:[%s7412_s6 + $0x120] sm:$0xff] %v3083_v16  ;;  %v7785_v62 = vld [vmem:[#allocation19 + $0x20] sm:$0xff]  ;;  %v7890_v16 = vld [vmem:[#allocation14 + $0x28] sm:$0xff] }
 0xbd7   : > { %3259 = vmatpush.msrb.mxu2 %v3223_v47  ;;  %v7782_v47 = vld [vmem:[#allocation19 + $0x28] sm:$0xff] }
 0xbd8   : > { %5129 = vmatmul.msk.f32.vlgmr.msrb.gmra.mxu2 %vm860_vm0, %v7309_v10 }
 0xbd9   : > { %3452 = vmatpush.msra.mxu2 %v7389_v35  ;;  %v5125_v35 = vld [vmem:[%s6559_s9 + $0xe0] sm:$0xff] }
 0xbdb   : > { %3453 = vmatpush.msra.mxu2 %v7392_v38 }
 0xbdc   : > { %v3086_v4 = vpop.f32.mrf.mxu0 }
 0xbdd   : > { %3514 = vmatpush.msrb.mxu2 %v7726_v45  ;;  %5100 = vst [vmem:[%s7412_s6 + $0x128] sm:$0xff] %v3086_v4  ;;  %v7894_v4 = vld [vmem:[#allocation14 + $0x30] sm:$0xff] }
 0xbdf   : > { %3515 = vmatpush.msrb.mxu2 %v7729_v15 }
 0xbe0   : > { %5130 = vmatmul.msk.f32.gmra.mxu2 %vm860_vm0, %v7315_v33  ;;  %v5122_v33 = vld [vmem:[%s6559_s9 + $0xc8] sm:$0xff] }
 0xbe1   : > { %3516 = vmatpush.msrb.mxu2 %v7289_v6  ;;  %v5121_v6 = vld [vmem:[%s6559_s9 + $0xc0] sm:$0xff] }
 0xbe3   : > { %3517 = vmatpush.msrb.mxu2 %v7291_v26 }
 0xbe8   : > { %5131 = vmatmul.msk.f32.gmra.mxu2 %vm860_vm0, %v7321_v1 }
 0xbf0   : > { %5132 = vmatmul.msk.f32.gmra.mxu2 %vm860_vm0, %v7325_v9 }
 0xbf8   : > { %5133 = vmatmul.msk.f32.gmra.mxu2 %vm860_vm0, %v7339_v7  ;;  %v5123_v7 = vld [vmem:[%s6559_s9 + $0xd0] sm:$0xff] }
 0xc00   : > { %5134 = vmatmul.msk.f32.gmra.mxu2 %vm860_vm0, %v7351_v23 }
 0xc08   : > { %5135 = vmatmul.msk.f32.gmra.mxu2 %vm860_vm0, %v7355_v19 }
 0xc10   : > { %5136 = vmatmul.msk.f32.gmra.mxu2 %vm860_vm0, %v7359_v42 }
 0xc18   : > { %5177 = vmatmul.msk.f32.vlgmr.msra.gmra.mxu2 %vm2165_vm3, %v6839_v21  ;;  %v5124_v21 = vld [vmem:[%s6559_s9 + $0xd8] sm:$0xff] }
 0xc20   : > { %5178 = vmatmul.msk.f32.gmra.mxu2 %vm2165_vm3, %v6913_v32 }
 0xc5b   : > { %v3261_v26 = vpop.f32.mrf.mxu2 }
 0xc5c   : > { %v3262_v10 = vadd.f32 %v5121_v6, %v3261_v26  ;;  %v3089_v6 = vpop.f32.mrf.mxu0  ;;  %v7797_v26 = vld [vmem:[#allocation19 + $0x8] sm:$0xff] }
 0xc5d   : > { %5101 = vst [vmem:[%s7412_s6 + $0x130] sm:$0xff] %v3089_v6  ;;  %v7898_v6 = vld [vmem:[#allocation14 + $0x38] sm:$0xff] }
 0xc5e   : > { %5137 = vmatmul.msk.f32.vlgmr.msra.gmra.mxu3 %vm916_vm1, %v3262_v10  ;;  %v7800_v10 = vld [vmem:[#allocation19] sm:$0xff] }
 0xc63   : > { %v3264_v1 = vpop.f32.mrf.mxu2 }
 0xc64   : > { %v3265_v9 = vadd.f32 %v5122_v33, %v3264_v1  ;;  %v3092_v33 = vpop.f32.mrf.mxu0 }
 0xc65   : > { %5102 = vst [vmem:[%s7412_s6 + $0x138] sm:$0xff] %v3092_v33  ;;  %v8510_v33 = vld [vmem:[#allocation37_spill] sm:$0xff] }
 0xc66   : > { %5138 = vmatmul.msk.f32.gmra.mxu3 %vm916_vm1, %v3265_v9 }
 0xc6b   : > { %v3267_v23 = vpop.f32.mrf.mxu2 }
 0xc6c   : > { %v3268_v19 = vadd.f32 %v5123_v7, %v3267_v23  ;;  %v3095_v1 = vpop.f32.mrf.mxu0 }
 0xc6d   : > { %5103 = vst [vmem:[%s7412_s6 + $0x140] sm:$0xff] %v3095_v1  ;;  %v8511_v1 = vld [vmem:[#allocation41_spill] sm:$0xff] }
 0xc6e   : > { %5139 = vmatmul.msk.f32.gmra.mxu3 %vm916_vm1, %v3268_v19 }
 0xc73   : > { %v3270_v32 = vpop.f32.mrf.mxu2 }
 0xc74   : > { %v3271_v42 = vadd.f32 %v5124_v21, %v3270_v32  ;;  %v3098_v9 = vpop.f32.mrf.mxu0 }
 0xc75   : > { %5104 = vst [vmem:[%s7412_s6 + $0x148] sm:$0xff] %v3098_v9  ;;  %v5187_v9 = vld [vmem:[%s6559_s9 + $0x100] sm:$0xff] }
 0xc76   : > { %5140 = vmatmul.msk.f32.gmra.mxu3 %vm916_vm1, %v3271_v42 }
 0xc7b   : > { %v3273_v38 = vpop.f32.mrf.mxu2 }
 0xc7c   : > { %v3274_v43 = vadd.f32 %v5125_v35, %v3273_v38  ;;  %v3101_v7 = vpop.f32.mrf.mxu0 }
 0xc7d   : > { %5105 = vst [vmem:[%s7412_s6 + $0x150] sm:$0xff] %v3101_v7 }
 0xc7e   : > { %5141 = vmatmul.msk.f32.gmra.mxu3 %vm916_vm1, %v3274_v43 }
 0xc83   : > { %v3276_v20 = vpop.f32.mrf.mxu2 }
 0xc84   : > { %v3277_v18 = vadd.f32 %v5126_v60, %v3276_v20  ;;  %v3104_v23 = vpop.f32.mrf.mxu0 }
 0xc85   : > { %5106 = vst [vmem:[%s7412_s6 + $0x158] sm:$0xff] %v3104_v23 }
 0xc86   : > { %5142 = vmatmul.msk.f32.gmra.mxu3 %vm916_vm1, %v3277_v18 }
 0xc8b   : > { %v3279_v57 = vpop.f32.mrf.mxu2 }
 0xc8c   : > { %v3280_v3 = vadd.f32 %v5127_v46, %v3279_v57  ;;  %v3107_v21 = vpop.f32.mrf.mxu0 }
 0xc8d   : > { %5107 = vst [vmem:[%s7412_s6 + $0x160] sm:$0xff] %v3107_v21 }
 0xc8e   : > { %5143 = vmatmul.msk.f32.gmra.mxu3 %vm916_vm1, %v3280_v3 }
 0xc93   : > { %v3282_v28 = vpop.f32.mrf.mxu2 }
 0xc94   : > { %v3283_v36 = vadd.f32 %v5128_v30, %v3282_v28  ;;  %v3110_v42 = vpop.f32.mrf.mxu0 }
 0xc95   : > { %5108 = vst [vmem:[%s7412_s6 + $0x168] sm:$0xff] %v3110_v42  ;;  %v5189_v42 = vld [vmem:[%s6559_s9 + $0x110] sm:$0xff] }
 0xc96   : > { %5144 = vmatmul.msk.f32.gmra.mxu3 %vm916_vm1, %v3283_v36 }
 0xc9b   : > { %v3455_v24 = vpop.f32.mrf.mxu2 }
 0xc9c   : > { %v3113_v38 = vpop.f32.mrf.mxu0 }
 0xc9d   : > { %5109 = vst [vmem:[%s7412_s6 + $0x170] sm:$0xff] %v3113_v38 }
 0xca3   : > { %v3458_v40 = vpop.f32.mrf.mxu2 }
 0xca4   : > { %3475 = vmatpush.msrb.mxu0 %v3458_v40  ;;  %v3116_v60 = vpop.f32.mrf.mxu0  ;;  %v7886_v40 = vld [vmem:[#allocation14 + $0x20] sm:$0xff] }
 0xca5   : > { %5110 = vst [vmem:[%s7412_s6 + $0x178] sm:$0xff] %v3116_v60 }
 0xca6   : > { %3476 = vmatpush.msrb.mxu0 %v3455_v24  ;;  %v7878_v24 = vld [vmem:[#allocation14 + $0x10] sm:$0xff] }
 0xca7   : > { %5179 = vmatmul.msk.f32.vlgmr.msrb.gmra.mxu0 %vm2165_vm3, %v7646_v11 }
 0xca8   : > { %3613 = vmatpush.msra.mxu0 %v7775_v27 }
 0xcaa   : > { %3614 = vmatpush.msra.mxu0 %v7778_v0 }
 0xcac   : > { %3615 = vmatpush.msra.mxu0 %v7782_v47 }
 0xcae   : > { %3616 = vmatpush.msra.mxu0 %v7785_v62 }
 0xcaf   : > { %5180 = vmatmul.msk.f32.gmra.mxu0 %vm2165_vm3, %v7655_v14 }
 0xcb0   : > { %3617 = vmatpush.msra.mxu0 %v7790_v22 }
 0xcb2   : > { %3618 = vmatpush.msra.mxu0 %v7793_v8 }
 0xcb4   : > { %3619 = vmatpush.msra.mxu0 %v7797_v26 }
 0xcb6   : > { %3620 = vmatpush.msra.mxu0 %v7800_v10 }
 0xcb7   : > { %5181 = vmatmul.msk.f32.gmra.mxu0 %vm2165_vm3, %v7664_v2 }
 0xcbf   : > { %5182 = vmatmul.msk.f32.gmra.mxu0 %vm2165_vm3, %v7669_v53 }
 0xce1   : > { %v3326_v19 = vpop.f32.mrf.mxu3 }
 0xce9   : > { %v3329_v32 = vpop.f32.mrf.mxu3 }
 0xcf1   : > { %v3332_v35 = vpop.f32.mrf.mxu3 }
 0xcf9   : > { %v3335_v43 = vpop.f32.mrf.mxu3 }
 0xd01   : > { %v3338_v20 = vpop.f32.mrf.mxu3 }
 0xd09   : > { %v3341_v52 = vpop.f32.mrf.mxu3 }
 0xd11   : > { %v3344_v18 = vpop.f32.mrf.mxu3 }
 0xd19   : > { %v3347_v46 = vpop.f32.mrf.mxu3 }
 0xd1a   : > { %3358 = vmatpush.msra.mxu1 %v3347_v46 }
 0xd1c   : > { %3359 = vmatpush.msra.mxu1 %v3344_v18 }
 0xd1e   : > { %3360 = vmatpush.msra.mxu1 %v3341_v52  ;;  %v5191_v52 = vld [vmem:[%s6559_s9 + $0x120] sm:$0xff] }
 0xd20   : > { %3361 = vmatpush.msra.mxu1 %v3338_v20 }
 0xd22   : > { %3362 = vmatpush.msra.mxu1 %v3335_v43  ;;  %v5190_v43 = vld [vmem:[%s6559_s9 + $0x118] sm:$0xff] }
 0xd24   : > { %3363 = vmatpush.msra.mxu1 %v3332_v35  ;;  %v3478_v57 = vpop.f32.mrf.mxu0 }
 0xd25   : > { %v3479_v34 = vadd.f32 %v3478_v57, %v7080_v44  ;;  %v5192_v57 = vld [vmem:[%s6559_s9 + $0x128] sm:$0xff] }
 0xd26   : > { %3364 = vmatpush.msra.mxu1 %v3329_v32 }
 0xd27   : > { %5183 = vmatmul.msk.f32.vlgmr.msrb.gmra.mxu2 %vm860_vm0, %v3479_v34 }
 0xd28   : > { %3365 = vmatpush.msra.mxu1 %v3326_v19  ;;  %v5188_v19 = vld [vmem:[%s6559_s9 + $0x108] sm:$0xff] }
 0xd29   : > { %5145 = vmatmul.msk.f32.vlgmr.msra.gmra.mxu1 %vm916_vm1, %v7442_v59 }
 0xd2c   : > { %v3481_v3 = vpop.f32.mrf.mxu0 }
 0xd2d   : > { %v3482_v30 = vadd.f32 %v3481_v3, %v7178_v56 }
 0xd2f   : > { %5184 = vmatmul.msk.f32.gmra.mxu2 %vm860_vm0, %v3482_v30 }
 0xd31   : > { %5146 = vmatmul.msk.f32.gmra.mxu1 %vm916_vm1, %v7446_v61  ;;  %v7856_v61 = vld [vmem:[#allocation14] sm:$0xff] }
 0xd34   : > { %v3484_v28 = vpop.f32.mrf.mxu0 }
 0xd35   : > { %v3485_v25 = vadd.f32 %v3484_v28, %v7230_v12  ;;  %v5193_v28 = vld [vmem:[%s6559_s9 + $0x130] sm:$0xff] }
 0xd37   : > { %5185 = vmatmul.msk.f32.gmra.mxu2 %vm860_vm0, %v3485_v25 }
 0xd39   : > { %5147 = vmatmul.msk.f32.gmra.mxu1 %vm916_vm1, %v7450_v13  ;;  %v7875_v13 = vld [vmem:[#allocation16] sm:$0xff] }
 0xd3c   : > { %v3487_v44 = vpop.f32.mrf.mxu0 }
 0xd3d   : > { %v3488_v36 = vadd.f32 %v3487_v44, %v7278_v55 }
 0xd3f   : > { %5186 = vmatmul.msk.f32.gmra.mxu2 %vm860_vm0, %v3488_v36 }
 0xd41   : > { %5148 = vmatmul.msk.f32.gmra.mxu1 %vm916_vm1, %v7515_v41 }
 0xd49   : > { %5149 = vmatmul.msk.f32.gmra.mxu1 %vm916_vm1, %v7522_v37 }
 0xd51   : > { %5150 = vmatmul.msk.f32.gmra.mxu1 %vm916_vm1, %v7530_v48 }
 0xd59   : > { %5151 = vmatmul.msk.f32.gmra.mxu1 %vm916_vm1, %v7538_v58 }
 0xd61   : > { %5152 = vmatmul.msk.f32.gmra.mxu1 %vm916_vm1, %v7546_v63 }
 0xd69   : > { %5153 = vmatmul.msk.f32.gmra.mxu1 %vm916_vm1, %v7553_v5 }
 0xd71   : > { %5154 = vmatmul.msk.f32.gmra.mxu1 %vm916_vm1, %v7565_v54 }
 0xd79   : > { %5155 = vmatmul.msk.f32.gmra.mxu1 %vm916_vm1, %v7571_v49 }
 0xd81   : > { %5156 = vmatmul.msk.f32.gmra.mxu1 %vm916_vm1, %v7577_v17 }
 0xd89   : > { %5157 = vmatmul.msk.f32.gmra.mxu1 %vm916_vm1, %v7385_v31  ;;  %v7860_v31 = vld [vmem:[#allocation13 + $0x8] sm:$0xff] }
 0xd91   : > { %5158 = vmatmul.msk.f32.gmra.mxu1 %vm916_vm1, %v7395_v51  ;;  %v7863_v51 = vld [vmem:[#allocation13] sm:$0xff] }
 0xd99   : > { %5159 = vmatmul.msk.f32.gmra.mxu1 %vm916_vm1, %v7399_v50  ;;  %v7868_v50 = vld [vmem:[#allocation14 + $0x8] sm:$0xff] }
 0xda1   : > { %5160 = vmatmul.msk.f32.gmra.mxu1 %vm916_vm1, %v7403_v29  ;;  %v7872_v29 = vld [vmem:[#allocation16 + $0x8] sm:$0xff] }
 0xda6   : > { %v3367_v3 = vpop.f32.mrf.mxu1 }
 0xda7   : > { %5161 = vst [vmem:[%s7412_s6 + $0x180] sm:$0xff] %v3367_v3 }
 0xdaa   : > { %v3519_v56 = vpop.f32.mrf.mxu2 }
 0xdae   : > { %v3370_v44 = vpop.f32.mrf.mxu1 }
 0xdaf   : > { %5162 = vst [vmem:[%s7412_s6 + $0x188] sm:$0xff] %v3370_v44  ;;  %v7954_v44 = vld [vmem:[#allocation17] sm:$0xff] }
 0xdb2   : > { %v3522_v12 = vpop.f32.mrf.mxu2 }
 0xdba   : > { %v3525_v55 = vpop.f32.mrf.mxu2 }
 0xdc2   : > { %v3528_v59 = vpop.f32.mrf.mxu2 }
 0xdc3   : > { %3552 = vmatpush.msrb.mxu3 %v3528_v59 }
 0xdc5   : > { %3553 = vmatpush.msrb.mxu3 %v3525_v55  ;;  %v3373_v55 = vpop.f32.mrf.mxu1 }
 0xdc6   : > { %5163 = vst [vmem:[%s7412_s6 + $0x190] sm:$0xff] %v3373_v55  ;;  %v7960_v55 = vld [vmem:[#allocation17 + $0x8] sm:$0xff] }
 0xdc7   : > { %3554 = vmatpush.msrb.mxu3 %v3522_v12 }
 0xdc9   : > { %3555 = vmatpush.msrb.mxu3 %v3519_v56  ;;  %v5194_v56 = vld [vmem:[%s6559_s9 + $0x138] sm:$0xff] }
 0xdca   : > { %5195 = vmatmul.msk.f32.vlgmr.msrb.gmra.mxu3 %vm860_vm0, %v7856_v61 }
 0xdcb   : > { %3748 = vmatpush.msra.mxu3 %v7860_v31 }
 0xdcd   : > { %3749 = vmatpush.msra.mxu3 %v7863_v51 }
 0xdcf   : > { %3810 = vmatpush.msrb.mxu3 %v7726_v45 }
 0xdd1   : > { %3811 = vmatpush.msrb.mxu3 %v7729_v15 }
 0xdd2   : > { %5196 = vmatmul.msk.f32.gmra.mxu3 %vm860_vm0, %v7868_v50 }
 0xdd3   : > { %3812 = vmatpush.msrb.mxu3 %v7872_v29 }
 0xdd5   : > { %3813 = vmatpush.msrb.mxu3 %v7875_v13 }
 0xdda   : > { %5197 = vmatmul.msk.f32.gmra.mxu3 %vm860_vm0, %v7878_v24 }
 0xde2   : > { %5198 = vmatmul.msk.f32.gmra.mxu3 %vm860_vm0, %v7882_v39 }
 0xdea   : > { %5199 = vmatmul.msk.f32.gmra.mxu3 %vm860_vm0, %v7886_v40 }
 0xdf2   : > { %5200 = vmatmul.msk.f32.gmra.mxu3 %vm860_vm0, %v7890_v16 }
 0xdfa   : > { %5201 = vmatmul.msk.f32.gmra.mxu3 %vm860_vm0, %v7894_v4 }
 0xe02   : > { %5202 = vmatmul.msk.f32.gmra.mxu3 %vm860_vm0, %v7898_v6 }
 0xe0a   : > { %5243 = vmatmul.msk.f32.vlgmr.msra.gmra.mxu3 %vm2165_vm3, %v8510_v33 }
 0xe12   : > { %5244 = vmatmul.msk.f32.gmra.mxu3 %vm2165_vm3, %v8511_v1  ;;  %v3376_v1 = vpop.f32.mrf.mxu1 }
 0xe13   : > { %5164 = vst [vmem:[%s7412_s6 + $0x198] sm:$0xff] %v3376_v1 }
 0xe4d   : > { %v3557_v7 = vpop.f32.mrf.mxu3 }
 0xe4e   : > { %v3558_v23 = vadd.f32 %v5187_v9, %v3557_v7  ;;  %v3379_v7 = vpop.f32.mrf.mxu1 }
 0xe4f   : > { %5165 = vst [vmem:[%s7412_s6 + $0x1a0] sm:$0xff] %v3379_v7 }
 0xe50   : > { %5203 = vmatmul.msk.f32.vlgmr.msra.gmra.mxu0 %vm916_vm1, %v3558_v23 }
 0xe55   : > { %v3560_v21 = vpop.f32.mrf.mxu3 }
 0xe56   : > { %v3561_v32 = vadd.f32 %v5188_v19, %v3560_v21  ;;  %v3382_v23 = vpop.f32.mrf.mxu1 }
 0xe57   : > { %5166 = vst [vmem:[%s7412_s6 + $0x1a8] sm:$0xff] %v3382_v23  ;;  %v8514_v23 = vld [vmem:[#allocation50_spill] sm:$0xff] }
 0xe58   : > { %5204 = vmatmul.msk.f32.gmra.mxu0 %vm916_vm1, %v3561_v32 }
 0xe5d   : > { %v3563_v35 = vpop.f32.mrf.mxu3 }
 0xe5e   : > { %v3564_v38 = vadd.f32 %v5189_v42, %v3563_v35  ;;  %v3385_v19 = vpop.f32.mrf.mxu1 }
 0xe5f   : > { %5167 = vst [vmem:[%s7412_s6 + $0x1b0] sm:$0xff] %v3385_v19 }
 0xe60   : > { %5205 = vmatmul.msk.f32.gmra.mxu0 %vm916_vm1, %v3564_v38 }
 0xe65   : > { %v3566_v60 = vpop.f32.mrf.mxu3 }
 0xe66   : > { %v3567_v20 = vadd.f32 %v5190_v43, %v3566_v60  ;;  %v3388_v21 = vpop.f32.mrf.mxu1 }
 0xe67   : > { %5168 = vst [vmem:[%s7412_s6 + $0x1b8] sm:$0xff] %v3388_v21 }
 0xe68   : > { %5206 = vmatmul.msk.f32.gmra.mxu0 %vm916_vm1, %v3567_v20 }
 0xe6d   : > { %v3569_v18 = vpop.f32.mrf.mxu3 }
 0xe6e   : > { %v3570_v46 = vadd.f32 %v5191_v52, %v3569_v18  ;;  %v3391_v32 = vpop.f32.mrf.mxu1 }
 0xe6f   : > { %5169 = vst [vmem:[%s7412_s6 + $0x1c0] sm:$0xff] %v3391_v32  ;;  %v8515_v32 = vld [vmem:[#allocation54_spill] sm:$0xff] }
 0xe70   : > { %5207 = vmatmul.msk.f32.gmra.mxu0 %vm916_vm1, %v3570_v46 }
 0xe75   : > { %v3572_v34 = vpop.f32.mrf.mxu3 }
 0xe76   : > { %v3573_v30 = vadd.f32 %v5192_v57, %v3572_v34  ;;  %v3394_v42 = vpop.f32.mrf.mxu1 }
 0xe77   : > { %5170 = vst [vmem:[%s7412_s6 + $0x1c8] sm:$0xff] %v3394_v42 }
 0xe78   : > { %5208 = vmatmul.msk.f32.gmra.mxu0 %vm916_vm1, %v3573_v30 }
 0xe7d   : > { %v3575_v25 = vpop.f32.mrf.mxu3 }
 0xe7e   : > { %v3576_v36 = vadd.f32 %v5193_v28, %v3575_v25  ;;  %v3397_v35 = vpop.f32.mrf.mxu1 }
 0xe7f   : > { %5171 = vst [vmem:[%s7412_s6 + $0x1d0] sm:$0xff] %v3397_v35  ;;  %v8517_v35 = vld [vmem:[#allocation40_spill] sm:$0xff] }
 0xe80   : > { %5209 = vmatmul.msk.f32.gmra.mxu0 %vm916_vm1, %v3576_v36 }
 0xe85   : > { %v3578_v12 = vpop.f32.mrf.mxu3 }
 0xe86   : > { %v3579_v59 = vadd.f32 %v5194_v56, %v3578_v12  ;;  %v3400_v43 = vpop.f32.mrf.mxu1  ;;  %v8512_v56 = vld [vmem:[#allocation44_spill] sm:$0xff] }
 0xe87   : > { %5172 = vst [vmem:[%s7412_s6 + $0x1d8] sm:$0xff] %v3400_v43 }
 0xe88   : > { %5210 = vmatmul.msk.f32.gmra.mxu0 %vm916_vm1, %v3579_v59 }
 0xe8d   : > { %v3751_v33 = vpop.f32.mrf.mxu3 }
 0xe8e   : > { %v3403_v20 = vpop.f32.mrf.mxu1 }
 0xe8f   : > { %5173 = vst [vmem:[%s7412_s6 + $0x1e0] sm:$0xff] %v3403_v20  ;;  %v5254_v20 = vld [vmem:[%s6559_s9 + $0x148] sm:$0xff] }
 0xe95   : > { %v3754_v9 = vpop.f32.mrf.mxu3 }
 0xe96   : > { %3771 = vmatpush.msrb.mxu1 %v3754_v9  ;;  %v3406_v18 = vpop.f32.mrf.mxu1  ;;  %v7966_v9 = vld [vmem:[#allocation17 + $0x10] sm:$0xff] }
 0xe97   : > { %5174 = vst [vmem:[%s7412_s6 + $0x1e8] sm:$0xff] %v3406_v18 }
 0xe98   : > { %3772 = vmatpush.msrb.mxu1 %v3751_v33  ;;  %v8513_v33 = vld [vmem:[#allocation47_spill] sm:$0xff] }
 0xe99   : > { %5245 = vmatmul.msk.f32.vlgmr.msrb.gmra.mxu1 %vm2165_vm3, %v7646_v11 }
 0xe9a   : > { %3909 = vmatpush.msra.mxu1 %v7775_v27 }
 0xe9c   : > { %3910 = vmatpush.msra.mxu1 %v7778_v0 }
 0xe9e   : > { %3911 = vmatpush.msra.mxu1 %v7782_v47  ;;  %v3409_v57 = vpop.f32.mrf.mxu1 }
 0xe9f   : > { %5175 = vst [vmem:[%s7412_s6 + $0x1f0] sm:$0xff] %v3409_v57 }
 0xea0   : > { %3912 = vmatpush.msra.mxu1 %v7785_v62 }
 0xea1   : > { %5246 = vmatmul.msk.f32.gmra.mxu1 %vm2165_vm3, %v7655_v14 }
 0xea2   : > { %3913 = vmatpush.msra.mxu1 %v7790_v22 }
 0xea4   : > { %3914 = vmatpush.msra.mxu1 %v7793_v8 }
 0xea6   : > { %3915 = vmatpush.msra.mxu1 %v7797_v26  ;;  %v3412_v3 = vpop.f32.mrf.mxu1 }
 0xea7   : > { %5176 = vst [vmem:[%s7412_s6 + $0x1f8] sm:$0xff] %v3412_v3  ;;  %v5256_v3 = vld [vmem:[%s6559_s9 + $0x158] sm:$0xff] }
 0xea8   : > { %3916 = vmatpush.msra.mxu1 %v7800_v10 }
 0xea9   : > { %5247 = vmatmul.msk.f32.gmra.mxu1 %vm2165_vm3, %v7664_v2 }
 0xeb1   : > { %5248 = vmatmul.msk.f32.gmra.mxu1 %vm2165_vm3, %v7669_v53 }
 0xecd   : > { %v3622_v38 = vpop.f32.mrf.mxu0 }
 0xed5   : > { %v3625_v60 = vpop.f32.mrf.mxu0 }
 0xedd   : > { %v3628_v52 = vpop.f32.mrf.mxu0 }
 0xee5   : > { %v3631_v46 = vpop.f32.mrf.mxu0 }
 0xeed   : > { %v3634_v34 = vpop.f32.mrf.mxu0 }
 0xef5   : > { %v3637_v30 = vpop.f32.mrf.mxu0 }
 0xefd   : > { %v3640_v28 = vpop.f32.mrf.mxu0 }
 0xf05   : > { %v3643_v25 = vpop.f32.mrf.mxu0 }
 0xf06   : > { %3654 = vmatpush.msra.mxu2 %v3643_v25  ;;  %v5257_v25 = vld [vmem:[%s6559_s9 + $0x160] sm:$0xff] }
 0xf08   : > { %3655 = vmatpush.msra.mxu2 %v3640_v28 }
 0xf0a   : > { %3656 = vmatpush.msra.mxu2 %v3637_v30 }
 0xf0c   : > { %3657 = vmatpush.msra.mxu2 %v3634_v34 }
 0xf0e   : > { %3658 = vmatpush.msra.mxu2 %v3631_v46  ;;  %v5255_v46 = vld [vmem:[%s6559_s9 + $0x150] sm:$0xff] }
 0xf10   : > { %3659 = vmatpush.msra.mxu2 %v3628_v52 }
 0xf12   : > { %3660 = vmatpush.msra.mxu2 %v3625_v60 }
 0xf14   : > { %3661 = vmatpush.msra.mxu2 %v3622_v38  ;;  %v5253_v38 = vld [vmem:[%s6559_s9 + $0x140] sm:$0xff] }
 0xf15   : > { %5211 = vmatmul.msk.f32.vlgmr.msra.gmra.mxu2 %vm916_vm1, %v7954_v44 }
 0xf16   : > { %v3774_v36 = vpop.f32.mrf.mxu1 }
 0xf17   : > { %v3775_v12 = vadd.f32 %v3774_v36, %v8512_v56 }
 0xf19   : > { %5249 = vmatmul.msk.f32.vlgmr.msrb.gmra.mxu3 %vm860_vm0, %v3775_v12  ;;  %v5258_v12 = vld [vmem:[%s6559_s9 + $0x168] sm:$0xff] }
 0xf1d   : > { %5212 = vmatmul.msk.f32.gmra.mxu2 %vm916_vm1, %v7960_v55 }
 0xf1e   : > { %v3777_v59 = vpop.f32.mrf.mxu1 }
 0xf1f   : > { %v3778_v1 = vadd.f32 %v3777_v59, %v8513_v33 }
 0xf21   : > { %5250 = vmatmul.msk.f32.gmra.mxu3 %vm860_vm0, %v3778_v1 }
 0xf25   : > { %5213 = vmatmul.msk.f32.gmra.mxu2 %vm916_vm1, %v7966_v9 }
 0xf26   : > { %v3780_v7 = vpop.f32.mrf.mxu1 }
 0xf27   : > { %v3781_v19 = vadd.f32 %v3780_v7, %v8514_v23  ;;  %v5259_v7 = vld [vmem:[%s6559_s9 + $0x170] sm:$0xff] }
 0xf29   : > { %5251 = vmatmul.msk.f32.gmra.mxu3 %vm860_vm0, %v3781_v19 }
 0xf2d   : > { %5214 = vmatmul.msk.f32.gmra.mxu2 %vm916_vm1, %v7515_v41  ;;  %v7992_v41 = vld [vmem:[#allocation17 + $0x60] sm:$0xff] }
 0xf2e   : > { %v3783_v21 = vpop.f32.mrf.mxu1 }
 0xf2f   : > { %v3784_v42 = vadd.f32 %v3783_v21, %v8515_v32  ;;  %v5260_v32 = vld [vmem:[%s6559_s9 + $0x178] sm:$0xff] }
 0xf31   : > { %5252 = vmatmul.msk.f32.gmra.mxu3 %vm860_vm0, %v3784_v42 }
 0xf35   : > { %5215 = vmatmul.msk.f32.gmra.mxu2 %vm916_vm1, %v7522_v37  ;;  %v7996_v37 = vld [vmem:[#allocation17 + $0x68] sm:$0xff] }
 0xf3d   : > { %5216 = vmatmul.msk.f32.gmra.mxu2 %vm916_vm1, %v7530_v48  ;;  %v8000_v48 = vld [vmem:[#allocation17 + $0x70] sm:$0xff] }
 0xf45   : > { %5217 = vmatmul.msk.f32.gmra.mxu2 %vm916_vm1, %v7538_v58  ;;  %v8004_v58 = vld [vmem:[#allocation17 + $0x78] sm:$0xff] }
 0xf4d   : > { %5218 = vmatmul.msk.f32.gmra.mxu2 %vm916_vm1, %v7546_v63 }
 0xf55   : > { %5219 = vmatmul.msk.f32.gmra.mxu2 %vm916_vm1, %v7553_v5 }
 0xf5d   : > { %5220 = vmatmul.msk.f32.gmra.mxu2 %vm916_vm1, %v7565_v54 }
 0xf65   : > { %5221 = vmatmul.msk.f32.gmra.mxu2 %vm916_vm1, %v7571_v49 }
 0xf6d   : > { %5222 = vmatmul.msk.f32.gmra.mxu2 %vm916_vm1, %v7577_v17  ;;  %v8516_v17 = vld [vmem:[#allocation38_spill] sm:$0xff] }
 0xf75   : > { %5223 = vmatmul.msk.f32.gmra.mxu2 %vm916_vm1, %v7992_v41 }
 0xf7d   : > { %5224 = vmatmul.msk.f32.gmra.mxu2 %vm916_vm1, %v7996_v37 }
 0xf85   : > { %5225 = vmatmul.msk.f32.gmra.mxu2 %vm916_vm1, %v8000_v48 }
 0xf8d   : > { %5226 = vmatmul.msk.f32.gmra.mxu2 %vm916_vm1, %v8004_v58 }
 0xf98   : > { %v3663_v1 = vpop.f32.mrf.mxu2 }
 0xf99   : > { %5227 = vst [vmem:[%s7412_s6 + $0x200] sm:$0xff] %v3663_v1 }
 0xf9c   : > { %v3815_v63 = vpop.f32.mrf.mxu3 }
 0xfa0   : > { %v3666_v21 = vpop.f32.mrf.mxu2 }
 0xfa1   : > { %5228 = vst [vmem:[%s7412_s6 + $0x208] sm:$0xff] %v3666_v21  ;;  %v8520_v21 = vld [vmem:[#allocation49_spill] sm:$0xff] }
 0xfa4   : > { %v3818_v5 = vpop.f32.mrf.mxu3 }
 0xfac   : > { %v3821_v54 = vpop.f32.mrf.mxu3 }
 0xfb4   : > { %v3824_v49 = vpop.f32.mrf.mxu3 }
 0xfb5   : > { %3848 = vmatpush.msrb.mxu0 %v3824_v49 }
 0xfb7   : > { %3849 = vmatpush.msrb.mxu0 %v3821_v54 }
 0xfb9   : > { %3850 = vmatpush.msrb.mxu0 %v3818_v5  ;;  %v3669_v5 = vpop.f32.mrf.mxu2 }
 0xfba   : > { %5229 = vst [vmem:[%s7412_s6 + $0x210] sm:$0xff] %v3669_v5  ;;  %v8521_v5 = vld [vmem:[#allocation52_spill] sm:$0xff] }
 0xfbb   : > { %3851 = vmatpush.msrb.mxu0 %v3815_v63 }
 0xfbc   : > { %5261 = vmatmul.msk.f32.vlgmr.msrb.gmra.mxu0 %vm860_vm0, %v7856_v61 }
 0xfbd   : > { %4044 = vmatpush.msra.mxu0 %v7860_v31 }
 0xfbf   : > { %4045 = vmatpush.msra.mxu0 %v7863_v51 }
 0xfc1   : > { %4106 = vmatpush.msrb.mxu0 %v7726_v45  ;;  %v3672_v49 = vpop.f32.mrf.mxu2 }
 0xfc2   : > { %5230 = vst [vmem:[%s7412_s6 + $0x218] sm:$0xff] %v3672_v49  ;;  %v8099_v49 = vld [vmem:[#allocation17 + $0x20] sm:$0xff] }
 0xfc3   : > { %4107 = vmatpush.msrb.mxu0 %v7729_v15 }
 0xfc4   : > { %5262 = vmatmul.msk.f32.gmra.mxu0 %vm860_vm0, %v7868_v50 }
 0xfc5   : > { %4108 = vmatpush.msrb.mxu0 %v7872_v29 }
 0xfc7   : > { %4109 = vmatpush.msrb.mxu0 %v7875_v13 }
 0xfcc   : > { %5263 = vmatmul.msk.f32.gmra.mxu0 %vm860_vm0, %v7878_v24 }
 0xfd4   : > { %5264 = vmatmul.msk.f32.gmra.mxu0 %vm860_vm0, %v7882_v39 }
 0xfdc   : > { %5265 = vmatmul.msk.f32.gmra.mxu0 %vm860_vm0, %v7886_v40 }
 0xfe4   : > { %5266 = vmatmul.msk.f32.gmra.mxu0 %vm860_vm0, %v7890_v16 }
 0xfec   : > { %5267 = vmatmul.msk.f32.gmra.mxu0 %vm860_vm0, %v7894_v4 }
 0xff4   : > { %5268 = vmatmul.msk.f32.gmra.mxu0 %vm860_vm0, %v7898_v6 }
 0xffc   : > { %5309 = vmatmul.msk.f32.vlgmr.msra.gmra.mxu0 %vm2165_vm3, %v8516_v17 }
0x1004   : > { %5310 = vmatmul.msk.f32.gmra.mxu0 %vm2165_vm3, %v8517_v35  ;;  %v3675_v35 = vpop.f32.mrf.mxu2 }
0x1005   : > { %5231 = vst [vmem:[%s7412_s6 + $0x220] sm:$0xff] %v3675_v35  ;;  %v8108_v35 = vld [vmem:[#allocation17 + $0x30] sm:$0xff] }
0x1039   : > { %v3853_v43 = vpop.f32.mrf.mxu0 }
0x103a   : > { %v3854_v60 = vadd.f32 %v5253_v38, %v3853_v43  ;;  %v3678_v38 = vpop.f32.mrf.mxu2 }
0x103b   : > { %5232 = vst [vmem:[%s7412_s6 + $0x228] sm:$0xff] %v3678_v38  ;;  %v8112_v38 = vld [vmem:[#allocation17 + $0x38] sm:$0xff] }
0x103c   : > { %5269 = vmatmul.msk.f32.vlgmr.msra.gmra.mxu1 %vm916_vm1, %v3854_v60 }
0x1041   : > { %v3856_v52 = vpop.f32.mrf.mxu0 }
0x1042   : > { %v3857_v18 = vadd.f32 %v5254_v20, %v3856_v52 }
0x1044   : > { %5270 = vmatmul.msk.f32.gmra.mxu1 %vm916_vm1, %v3857_v18 }
0x1049   : > { %v3859_v57 = vpop.f32.mrf.mxu0 }
0x104a   : > { %v3860_v34 = vadd.f32 %v5255_v46, %v3859_v57 }
0x104c   : > { %5271 = vmatmul.msk.f32.gmra.mxu1 %vm916_vm1, %v3860_v34 }
0x1051   : > { %v3862_v30 = vpop.f32.mrf.mxu0 }
0x1052   : > { %v3863_v28 = vadd.f32 %v5256_v3, %v3862_v30 }
0x1054   : > { %5272 = vmatmul.msk.f32.gmra.mxu1 %vm916_vm1, %v3863_v28 }
0x1059   : > { %v3865_v36 = vpop.f32.mrf.mxu0 }
0x105a   : > { %v3866_v56 = vadd.f32 %v5257_v25, %v3865_v36 }
0x105c   : > { %5273 = vmatmul.msk.f32.gmra.mxu1 %vm916_vm1, %v3866_v56 }
0x1061   : > { %v3868_v59 = vpop.f32.mrf.mxu0 }
0x1062   : > { %v3869_v33 = vadd.f32 %v5258_v12, %v3868_v59  ;;  %v8518_v59 = vld [vmem:[#allocation43_spill] sm:$0xff] }
0x1064   : > { %5274 = vmatmul.msk.f32.gmra.mxu1 %vm916_vm1, %v3869_v33 }
0x1069   : > { %v3871_v23 = vpop.f32.mrf.mxu0 }
0x106a   : > { %v3872_v19 = vadd.f32 %v5259_v7, %v3871_v23  ;;  %v8519_v7 = vld [vmem:[#allocation46_spill] sm:$0xff] }
0x106c   : > { %5275 = vmatmul.msk.f32.gmra.mxu1 %vm916_vm1, %v3872_v19 }
0x1071   : > { %v3874_v42 = vpop.f32.mrf.mxu0 }
0x1072   : > { %v3875_v63 = vadd.f32 %v5260_v32, %v3874_v42  ;;  %v8093_v42 = vld [vmem:[#allocation17 + $0x18] sm:$0xff] }
0x1074   : > { %5276 = vmatmul.msk.f32.gmra.mxu1 %vm916_vm1, %v3875_v63 }
0x1079   : > { %v4047_v54 = vpop.f32.mrf.mxu0 }
0x1081   : > { %v4050_v17 = vpop.f32.mrf.mxu0 }
0x1082   : > { %4067 = vmatpush.msrb.mxu2 %v4050_v17  ;;  %v8104_v17 = vld [vmem:[#allocation17 + $0x28] sm:$0xff] }
0x1084   : > { %4068 = vmatpush.msrb.mxu2 %v4047_v54 }
0x1085   : > { %5311 = vmatmul.msk.f32.vlgmr.msrb.gmra.mxu2 %vm2165_vm3, %v7646_v11  ;;  %v3681_v11 = vpop.f32.mrf.mxu2 }
0x1086   : > { %4205 = vmatpush.msra.mxu2 %v7775_v27  ;;  %5233 = vst [vmem:[%s7412_s6 + $0x230] sm:$0xff] %v3681_v11  ;;  %v8116_v11 = vld [vmem:[#allocation17 + $0x40] sm:$0xff] }
0x1088   : > { %4206 = vmatpush.msra.mxu2 %v7778_v0 }
0x108a   : > { %4207 = vmatpush.msra.mxu2 %v7782_v47 }
0x108c   : > { %4208 = vmatpush.msra.mxu2 %v7785_v62 }
0x108d   : > { %5312 = vmatmul.msk.f32.gmra.mxu2 %vm2165_vm3, %v7655_v14  ;;  %v3684_v14 = vpop.f32.mrf.mxu2 }
0x108e   : > { %4209 = vmatpush.msra.mxu2 %v7790_v22  ;;  %5234 = vst [vmem:[%s7412_s6 + $0x238] sm:$0xff] %v3684_v14  ;;  %v8120_v14 = vld [vmem:[#allocation17 + $0x48] sm:$0xff] }
0x1090   : > { %4210 = vmatpush.msra.mxu2 %v7793_v8 }
0x1092   : > { %4211 = vmatpush.msra.mxu2 %v7797_v26 }
0x1094   : > { %4212 = vmatpush.msra.mxu2 %v7800_v10 }
0x1095   : > { %5313 = vmatmul.msk.f32.gmra.mxu2 %vm2165_vm3, %v7664_v2  ;;  %v3687_v43 = vpop.f32.mrf.mxu2 }
0x1096   : > { %5235 = vst [vmem:[%s7412_s6 + $0x240] sm:$0xff] %v3687_v43  ;;  %v8124_v43 = vld [vmem:[#allocation17 + $0x50] sm:$0xff] }
0x109d   : > { %5314 = vmatmul.msk.f32.gmra.mxu2 %vm2165_vm3, %v7669_v53  ;;  %v3690_v60 = vpop.f32.mrf.mxu2 }
0x109e   : > { %5236 = vst [vmem:[%s7412_s6 + $0x248] sm:$0xff] %v3690_v60  ;;  %v8128_v60 = vld [vmem:[#allocation17 + $0x58] sm:$0xff] }
0x10a5   : > { %v3693_v20 = vpop.f32.mrf.mxu2 }
0x10a6   : > { %5237 = vst [vmem:[%s7412_s6 + $0x250] sm:$0xff] %v3693_v20 }
0x10ad   : > { %v3696_v18 = vpop.f32.mrf.mxu2 }
0x10ae   : > { %5238 = vst [vmem:[%s7412_s6 + $0x258] sm:$0xff] %v3696_v18 }
0x10b5   : > { %v3699_v46 = vpop.f32.mrf.mxu2 }
0x10b6   : > { %5239 = vst [vmem:[%s7412_s6 + $0x260] sm:$0xff] %v3699_v46 }
0x10b9   : > { %v3918_v52 = vpop.f32.mrf.mxu1 }
0x10bd   : > { %v3702_v34 = vpop.f32.mrf.mxu2 }
0x10be   : > { %5240 = vst [vmem:[%s7412_s6 + $0x268] sm:$0xff] %v3702_v34  ;;  %v5321_v34 = vld [vmem:[%s6559_s9 + $0x190] sm:$0xff] }
0x10c1   : > { %v3921_v2 = vpop.f32.mrf.mxu1 }
0x10c5   : > { %v3705_v3 = vpop.f32.mrf.mxu2 }
0x10c6   : > { %5241 = vst [vmem:[%s7412_s6 + $0x270] sm:$0xff] %v3705_v3 }
0x10c9   : > { %v3924_v57 = vpop.f32.mrf.mxu1 }
0x10cd   : > { %v3708_v28 = vpop.f32.mrf.mxu2 }
0x10ce   : > { %5242 = vst [vmem:[%s7412_s6 + $0x278] sm:$0xff] %v3708_v28 }
0x10d1   : > { %v3927_v53 = vpop.f32.mrf.mxu1 }
0x10d9   : > { %v3930_v30 = vpop.f32.mrf.mxu1 }
0x10e1   : > { %v3933_v25 = vpop.f32.mrf.mxu1 }
0x10e9   : > { %v3936_v36 = vpop.f32.mrf.mxu1 }
0x10f1   : > { %v3939_v56 = vpop.f32.mrf.mxu1 }
0x10f2   : > { %3950 = vmatpush.msra.mxu3 %v3939_v56 }
0x10f4   : > { %3951 = vmatpush.msra.mxu3 %v3936_v36  ;;  %v5323_v36 = vld [vmem:[%s6559_s9 + $0x1a0] sm:$0xff] }
0x10f6   : > { %3952 = vmatpush.msra.mxu3 %v3933_v25 }
0x10f8   : > { %3953 = vmatpush.msra.mxu3 %v3930_v30  ;;  %v5322_v30 = vld [vmem:[%s6559_s9 + $0x198] sm:$0xff] }
0x10fa   : > { %3954 = vmatpush.msra.mxu3 %v3927_v53 }
0x10fc   : > { %3955 = vmatpush.msra.mxu3 %v3924_v57 }
0x10fe   : > { %3956 = vmatpush.msra.mxu3 %v3921_v2 }
0x1100   : > { %3957 = vmatpush.msra.mxu3 %v3918_v52 }
0x1101   : > { %5277 = vmatmul.msk.f32.vlgmr.msra.gmra.mxu3 %vm916_vm1, %v7954_v44 }
0x1108   : > { %v4070_v12 = vpop.f32.mrf.mxu2 }
0x1109   : > { %v4071_v33 = vadd.f32 %v4070_v12, %v8518_v59  ;;  %5278 = vmatmul.msk.f32.gmra.mxu3 %vm916_vm1, %v7960_v55  ;;  %v5324_v59 = vld [vmem:[%s6559_s9 + $0x1a8] sm:$0xff] }
0x110b   : > { %5315 = vmatmul.msk.f32.vlgmr.msrb.gmra.mxu0 %vm860_vm0, %v4071_v33 }
0x1110   : > { %v4073_v1 = vpop.f32.mrf.mxu2 }
0x1111   : > { %v4074_v23 = vadd.f32 %v4073_v1, %v8519_v7  ;;  %5279 = vmatmul.msk.f32.gmra.mxu3 %vm916_vm1, %v7966_v9 }
0x1113   : > { %5316 = vmatmul.msk.f32.gmra.mxu0 %vm860_vm0, %v4074_v23  ;;  %v5325_v23 = vld [vmem:[%s6559_s9 + $0x1b0] sm:$0xff] }
0x1118   : > { %v4076_v19 = vpop.f32.mrf.mxu2 }
0x1119   : > { %v4077_v32 = vadd.f32 %v4076_v19, %v8520_v21  ;;  %5280 = vmatmul.msk.f32.gmra.mxu3 %vm916_vm1, %v8093_v42 }
0x111b   : > { %5317 = vmatmul.msk.f32.gmra.mxu0 %vm860_vm0, %v4077_v32 }
0x1120   : > { %v4079_v63 = vpop.f32.mrf.mxu2 }
0x1121   : > { %v4080_v54 = vadd.f32 %v4079_v63, %v8521_v5  ;;  %5281 = vmatmul.msk.f32.gmra.mxu3 %vm916_vm1, %v8099_v49  ;;  %v5326_v63 = vld [vmem:[%s6559_s9 + $0x1b8] sm:$0xff] }
0x1123   : > { %5318 = vmatmul.msk.f32.gmra.mxu0 %vm860_vm0, %v4080_v54 }
0x1129   : > { %5282 = vmatmul.msk.f32.gmra.mxu3 %vm916_vm1, %v8104_v17 }
0x1131   : > { %5283 = vmatmul.msk.f32.gmra.mxu3 %vm916_vm1, %v8108_v35 }
0x1139   : > { %5284 = vmatmul.msk.f32.gmra.mxu3 %vm916_vm1, %v8112_v38 }
0x1141   : > { %5285 = vmatmul.msk.f32.gmra.mxu3 %vm916_vm1, %v8116_v11 }
0x1149   : > { %5286 = vmatmul.msk.f32.gmra.mxu3 %vm916_vm1, %v8120_v14 }
0x1151   : > { %5287 = vmatmul.msk.f32.gmra.mxu3 %vm916_vm1, %v8124_v43 }
0x1159   : > { %5288 = vmatmul.msk.f32.gmra.mxu3 %vm916_vm1, %v8128_v60 }
0x1161   : > { %5289 = vmatmul.msk.f32.gmra.mxu3 %vm916_vm1, %v7992_v41 }
0x1169   : > { %5290 = vmatmul.msk.f32.gmra.mxu3 %vm916_vm1, %v7996_v37 }
0x1171   : > { %5291 = vmatmul.msk.f32.gmra.mxu3 %vm916_vm1, %v8000_v48 }
0x1179   : > { %5292 = vmatmul.msk.f32.gmra.mxu3 %vm916_vm1, %v8004_v58 }
0x1184   : > { %v3959_v7 = vpop.f32.mrf.mxu3 }
0x1185   : > { %5293 = vst [vmem:[%s7412_s6 + $0x280] sm:$0xff] %v3959_v7  ;;  %v8525_v7 = vld [vmem:[#allocation48_spill] sm:$0xff] }
0x1188   : > { %v4111_v20 = vpop.f32.mrf.mxu0 }
0x118c   : > { %v3962_v32 = vpop.f32.mrf.mxu3 }
0x118d   : > { %5294 = vst [vmem:[%s7412_s6 + $0x288] sm:$0xff] %v3962_v32 }
0x1190   : > { %v4114_v52 = vpop.f32.mrf.mxu0 }
0x1198   : > { %v4117_v18 = vpop.f32.mrf.mxu0 }
0x11a0   : > { %v4120_v2 = vpop.f32.mrf.mxu0 }
0x11a1   : > { %4144 = vmatpush.msrb.mxu1 %v4120_v2 }
0x11a3   : > { %4145 = vmatpush.msrb.mxu1 %v4117_v18 }
0x11a5   : > { %4146 = vmatpush.msrb.mxu1 %v4114_v52 }
0x11a7   : > { %4147 = vmatpush.msrb.mxu1 %v4111_v20  ;;  %v3965_v20 = vpop.f32.mrf.mxu3 }
0x11a8   : > { %5327 = vmatmul.msk.f32.vlgmr.msrb.gmra.mxu1 %vm860_vm0, %v7856_v61  ;;  %5295 = vst [vmem:[%s7412_s6 + $0x290] sm:$0xff] %v3965_v20 }
0x11a9   : > { %4340 = vmatpush.msra.mxu1 %v7860_v31  ;;  %v5319_v31 = vld [vmem:[%s6559_s9 + $0x180] sm:$0xff] }
0x11ab   : > { %4341 = vmatpush.msra.mxu1 %v7863_v51 }
0x11ad   : > { %4402 = vmatpush.msrb.mxu1 %v7726_v45  ;;  %v8522_v45 = vld [vmem:[#allocation39_spill] sm:$0xff] }
0x11af   : > { %4403 = vmatpush.msrb.mxu1 %v7729_v15  ;;  %v8523_v15 = vld [vmem:[#allocation42_spill] sm:$0xff]  ;;  %v3968_v18 = vpop.f32.mrf.mxu3 }
0x11b0   : > { %5328 = vmatmul.msk.f32.gmra.mxu1 %vm860_vm0, %v7868_v50  ;;  %5296 = vst [vmem:[%s7412_s6 + $0x298] sm:$0xff] %v3968_v18 }
0x11b1   : > { %4404 = vmatpush.msrb.mxu1 %v7872_v29 }
0x11b3   : > { %4405 = vmatpush.msrb.mxu1 %v7875_v13  ;;  %v5320_v13 = vld [vmem:[%s6559_s9 + $0x188] sm:$0xff] }
0x11b8   : > { %5329 = vmatmul.msk.f32.gmra.mxu1 %vm860_vm0, %v7878_v24 }
0x11c0   : > { %5330 = vmatmul.msk.f32.gmra.mxu1 %vm860_vm0, %v7882_v39 }
0x11c8   : > { %5331 = vmatmul.msk.f32.gmra.mxu1 %vm860_vm0, %v7886_v40 }
0x11d0   : > { %5332 = vmatmul.msk.f32.gmra.mxu1 %vm860_vm0, %v7890_v16 }
0x11d8   : > { %5333 = vmatmul.msk.f32.gmra.mxu1 %vm860_vm0, %v7894_v4 }
0x11e0   : > { %5334 = vmatmul.msk.f32.gmra.mxu1 %vm860_vm0, %v7898_v6 }
0x11e8   : > { %5375 = vmatmul.msk.f32.vlgmr.msra.gmra.mxu1 %vm2165_vm3, %v8522_v45  ;;  %v5729_v45 = vld [vmem:[#allocation11] sm:$0xff] }
0x11f0   : > { %5376 = vmatmul.msk.f32.gmra.mxu1 %vm2165_vm3, %v8523_v15  ;;  %v3971_v15 = vpop.f32.mrf.mxu3 }
0x11f1   : > { %5297 = vst [vmem:[%s7412_s6 + $0x2a0] sm:$0xff] %v3971_v15  ;;  %v5387_v15 = vld [vmem:[%s6559_s9 + $0x1d0] sm:$0xff] }
0x1225   : > { %v4149_v51 = vpop.f32.mrf.mxu1 }
0x1226   : > { %v4150_v29 = vadd.f32 %v5319_v31, %v4149_v51  ;;  %v5730_v31 = vld [vmem:[#allocation11 + $0x8] sm:$0xff]  ;;  %v3974_v51 = vpop.f32.mrf.mxu3 }
0x1227   : > { %5298 = vst [vmem:[%s7412_s6 + $0x2a8] sm:$0xff] %v3974_v51 }
0x1228   : > { %5335 = vmatmul.msk.f32.vlgmr.msra.gmra.mxu2 %vm916_vm1, %v4150_v29 }
0x122d   : > { %v4152_v46 = vpop.f32.mrf.mxu1 }
0x122e   : > { %v4153_v57 = vadd.f32 %v5320_v13, %v4152_v46 }
0x1230   : > { %5336 = vmatmul.msk.f32.gmra.mxu2 %vm916_vm1, %v4153_v57 }
0x1235   : > { %v4155_v53 = vpop.f32.mrf.mxu1 }
0x1236   : > { %v4156_v3 = vadd.f32 %v5321_v34, %v4155_v53 }
0x1238   : > { %5337 = vmatmul.msk.f32.gmra.mxu2 %vm916_vm1, %v4156_v3 }
0x123d   : > { %v4158_v28 = vpop.f32.mrf.mxu1 }
0x123e   : > { %v4159_v25 = vadd.f32 %v5322_v30, %v4158_v28 }
0x1240   : > { %5338 = vmatmul.msk.f32.gmra.mxu2 %vm916_vm1, %v4159_v25 }
0x1245   : > { %v4161_v56 = vpop.f32.mrf.mxu1 }
0x1246   : > { %v4162_v12 = vadd.f32 %v5323_v36, %v4161_v56 }
0x1248   : > { %5339 = vmatmul.msk.f32.gmra.mxu2 %vm916_vm1, %v4162_v12 }
0x124d   : > { %v4164_v33 = vpop.f32.mrf.mxu1 }
0x124e   : > { %v4165_v1 = vadd.f32 %v5324_v59, %v4164_v33  ;;  %v8524_v59 = vld [vmem:[#allocation45_spill] sm:$0xff] }
0x1250   : > { %5340 = vmatmul.msk.f32.gmra.mxu2 %vm916_vm1, %v4165_v1 }
0x1255   : > { %v4167_v19 = vpop.f32.mrf.mxu1 }
0x1256   : > { %v4168_v21 = vadd.f32 %v5325_v23, %v4167_v19 }
0x1258   : > { %5341 = vmatmul.msk.f32.gmra.mxu2 %vm916_vm1, %v4168_v21  ;;  %v8526_v21 = vld [vmem:[#allocation51_spill] sm:$0xff] }
0x125d   : > { %v4170_v5 = vpop.f32.mrf.mxu1 }
0x125e   : > { %v4171_v54 = vadd.f32 %v5326_v63, %v4170_v5  ;;  %v8527_v5 = vld [vmem:[#allocation53_spill] sm:$0xff] }
0x1260   : > { %5342 = vmatmul.msk.f32.gmra.mxu2 %vm916_vm1, %v4171_v54 }
0x1265   : > { %v4343_v52 = vpop.f32.mrf.mxu1 }
0x126d   : > { %v4346_v2 = vpop.f32.mrf.mxu1 }
0x126e   : > { %4363 = vmatpush.msrb.mxu3 %v4346_v2 }
0x1270   : > { %4364 = vmatpush.msrb.mxu3 %v4343_v52 }
0x1271   : > { %5377 = vmatmul.msk.f32.vlgmr.msrb.gmra.mxu3 %vm2165_vm3, %v5729_v45 }
0x1272   : > { %4501 = vmatpush.msra.mxu3 %v7775_v27  ;;  %v5731_v27 = vld [vmem:[#allocation11 + $0x10] sm:$0xff] }
0x1274   : > { %4502 = vmatpush.msra.mxu3 %v7778_v0  ;;  %v3977_v0 = vpop.f32.mrf.mxu3 }
0x1275   : > { %5299 = vst [vmem:[%s7412_s6 + $0x2b0] sm:$0xff] %v3977_v0 }
0x1276   : > { %4503 = vmatpush.msra.mxu3 %v7782_v47  ;;  %v5732_v47 = vld [vmem:[#allocation11 + $0x18] sm:$0xff] }
0x1278   : > { %4504 = vmatpush.msra.mxu3 %v7785_v62 }
0x1279   : > { %5378 = vmatmul.msk.f32.gmra.mxu3 %vm2165_vm3, %v5730_v31 }
0x127a   : > { %4505 = vmatpush.msra.mxu3 %v7790_v22 }
0x127c   : > { %4506 = vmatpush.msra.mxu3 %v7793_v8  ;;  %v3980_v62 = vpop.f32.mrf.mxu3 }
0x127d   : > { %5300 = vst [vmem:[%s7412_s6 + $0x2b8] sm:$0xff] %v3980_v62  ;;  %v5390_v62 = vld [vmem:[%s6559_s9 + $0x1e8] sm:$0xff] }
0x127e   : > { %4507 = vmatpush.msra.mxu3 %v7797_v26 }
0x1280   : > { %4508 = vmatpush.msra.mxu3 %v7800_v10 }
0x1281   : > { %5379 = vmatmul.msk.f32.gmra.mxu3 %vm2165_vm3, %v5731_v27  ;;  %v5389_v27 = vld [vmem:[%s6559_s9 + $0x1e0] sm:$0xff] }
0x1284   : > { %v3983_v22 = vpop.f32.mrf.mxu3 }
0x1285   : > { %5301 = vst [vmem:[%s7412_s6 + $0x2c0] sm:$0xff] %v3983_v22 }
0x1289   : > { %5380 = vmatmul.msk.f32.gmra.mxu3 %vm2165_vm3, %v5732_v47 }
0x128c   : > { %v3986_v8 = vpop.f32.mrf.mxu3 }
0x128d   : > { %5302 = vst [vmem:[%s7412_s6 + $0x2c8] sm:$0xff] %v3986_v8 }
0x1294   : > { %v3989_v26 = vpop.f32.mrf.mxu3 }
0x1295   : > { %5303 = vst [vmem:[%s7412_s6 + $0x2d0] sm:$0xff] %v3989_v26  ;;  %v5391_v26 = vld [vmem:[%s6559_s9 + $0x1f0] sm:$0xff] }
0x129c   : > { %v3992_v29 = vpop.f32.mrf.mxu3 }
0x129d   : > { %5304 = vst [vmem:[%s7412_s6 + $0x2d8] sm:$0xff] %v3992_v29 }
0x12a4   : > { %v3995_v46 = vpop.f32.mrf.mxu3 }
0x12a5   : > { %5305 = vst [vmem:[%s7412_s6 + $0x2e0] sm:$0xff] %v3995_v46 }
0x12ab   : > { %v4214_v10 = vpop.f32.mrf.mxu2 }
0x12ac   : > { %v3998_v34 = vpop.f32.mrf.mxu3 }
0x12ad   : > { %5306 = vst [vmem:[%s7412_s6 + $0x2e8] sm:$0xff] %v3998_v34 }
0x12b3   : > { %v4217_v13 = vpop.f32.mrf.mxu2 }
0x12b4   : > { %v4001_v3 = vpop.f32.mrf.mxu3 }
0x12b5   : > { %5307 = vst [vmem:[%s7412_s6 + $0x2f0] sm:$0xff] %v4001_v3 }
0x12bb   : > { %v4220_v57 = vpop.f32.mrf.mxu2 }
0x12bc   : > { %v4004_v28 = vpop.f32.mrf.mxu3 }
0x12bd   : > { %5308 = vst [vmem:[%s7412_s6 + $0x2f8] sm:$0xff] %v4004_v28 }
0x12c3   : > { %v4223_v53 = vpop.f32.mrf.mxu2 }
0x12cb   : > { %v4226_v30 = vpop.f32.mrf.mxu2 }
0x12d3   : > { %v4229_v25 = vpop.f32.mrf.mxu2 }
0x12db   : > { %v4232_v36 = vpop.f32.mrf.mxu2 }
0x12e3   : > { %v4235_v56 = vpop.f32.mrf.mxu2 }
0x12e4   : > { %4246 = vmatpush.msra.mxu0 %v4235_v56 }
0x12e6   : > { %4247 = vmatpush.msra.mxu0 %v4232_v36 }
0x12e8   : > { %4248 = vmatpush.msra.mxu0 %v4229_v25 }
0x12ea   : > { %4249 = vmatpush.msra.mxu0 %v4226_v30 }
0x12ec   : > { %4250 = vmatpush.msra.mxu0 %v4223_v53 }
0x12ee   : > { %4251 = vmatpush.msra.mxu0 %v4220_v57 }
0x12f0   : > { %4252 = vmatpush.msra.mxu0 %v4217_v13  ;;  %v5392_v13 = vld [vmem:[%s6559_s9 + $0x1f8] sm:$0xff] }
0x12f2   : > { %4253 = vmatpush.msra.mxu0 %v4214_v10 }
0x12f3   : > { %5343 = vmatmul.msk.f32.vlgmr.msra.gmra.mxu0 %vm916_vm1, %v7954_v44 }
0x12f4   : > { %v4366_v12 = vpop.f32.mrf.mxu3 }
0x12f5   : > { %v4367_v33 = vadd.f32 %v4366_v12, %v8524_v59 }
0x12f7   : > { %5381 = vmatmul.msk.f32.vlgmr.msrb.gmra.mxu1 %vm860_vm0, %v4367_v33 }
0x12fb   : > { %5344 = vmatmul.msk.f32.gmra.mxu0 %vm916_vm1, %v7960_v55 }
0x12fc   : > { %v4369_v1 = vpop.f32.mrf.mxu3 }
0x12fd   : > { %v4370_v23 = vadd.f32 %v4369_v1, %v8525_v7 }
0x12ff   : > { %5382 = vmatmul.msk.f32.gmra.mxu1 %vm860_vm0, %v4370_v23 }
0x1303   : > { %5345 = vmatmul.msk.f32.gmra.mxu0 %vm916_vm1, %v7966_v9 }
0x1304   : > { %v4372_v19 = vpop.f32.mrf.mxu3 }
0x1305   : > { %v4373_v32 = vadd.f32 %v4372_v19, %v8526_v21 }
0x1307   : > { %5383 = vmatmul.msk.f32.gmra.mxu1 %vm860_vm0, %v4373_v32 }
0x130b   : > { %5346 = vmatmul.msk.f32.gmra.mxu0 %vm916_vm1, %v8093_v42 }
0x130c   : > { %v4375_v63 = vpop.f32.mrf.mxu3 }
0x130d   : > { %v4376_v54 = vadd.f32 %v4375_v63, %v8527_v5 }
0x130f   : > { %5384 = vmatmul.msk.f32.gmra.mxu1 %vm860_vm0, %v4376_v54 }
0x1313   : > { %5347 = vmatmul.msk.f32.gmra.mxu0 %vm916_vm1, %v8099_v49 }
0x131b   : > { %5348 = vmatmul.msk.f32.gmra.mxu0 %vm916_vm1, %v8104_v17 }
0x1323   : > { %5349 = vmatmul.msk.f32.gmra.mxu0 %vm916_vm1, %v8108_v35 }
0x132b   : > { %5350 = vmatmul.msk.f32.gmra.mxu0 %vm916_vm1, %v8112_v38 }
0x1333   : > { %5351 = vmatmul.msk.f32.gmra.mxu0 %vm916_vm1, %v8116_v11 }
0x133b   : > { %5352 = vmatmul.msk.f32.gmra.mxu0 %vm916_vm1, %v8120_v14 }
0x1343   : > { %5353 = vmatmul.msk.f32.gmra.mxu0 %vm916_vm1, %v8124_v43 }
0x134b   : > { %5354 = vmatmul.msk.f32.gmra.mxu0 %vm916_vm1, %v8128_v60 }
0x1353   : > { %5355 = vmatmul.msk.f32.gmra.mxu0 %vm916_vm1, %v7992_v41 }
0x135b   : > { %5356 = vmatmul.msk.f32.gmra.mxu0 %vm916_vm1, %v7996_v37 }
0x1363   : > { %5357 = vmatmul.msk.f32.gmra.mxu0 %vm916_vm1, %v8000_v48 }
0x136b   : > { %5358 = vmatmul.msk.f32.gmra.mxu0 %vm916_vm1, %v8004_v58 }
0x1374   : > { %v4407_v20 = vpop.f32.mrf.mxu1 }
0x137c   : > { %v4410_v52 = vpop.f32.mrf.mxu1 }
0x1384   : > { %v4413_v18 = vpop.f32.mrf.mxu1 }
0x138c   : > { %v4416_v2 = vpop.f32.mrf.mxu1 }
0x138d   : > { %4440 = vmatpush.msrb.mxu2 %v4416_v2 }
0x138f   : > { %4441 = vmatpush.msrb.mxu2 %v4413_v18 }
0x1391   : > { %4442 = vmatpush.msrb.mxu2 %v4410_v52 }
0x1393   : > { %4443 = vmatpush.msrb.mxu2 %v4407_v20 }
0x1394   : > { %5393 = vmatmul.msk.f32.vlgmr.msrb.gmra.mxu2 %vm860_vm0, %v7856_v61  ;;  %v5385_v61 = vld [vmem:[%s6559_s9 + $0x1c0] sm:$0xff] }
0x139c   : > { %5394 = vmatmul.msk.f32.gmra.mxu2 %vm860_vm0, %v7868_v50 }
0x13a4   : > { %5395 = vmatmul.msk.f32.gmra.mxu2 %vm860_vm0, %v7878_v24 }
0x13ac   : > { %5396 = vmatmul.msk.f32.gmra.mxu2 %vm860_vm0, %v7882_v39  ;;  %v5386_v39 = vld [vmem:[%s6559_s9 + $0x1c8] sm:$0xff] }
0x13b4   : > { %5397 = vmatmul.msk.f32.gmra.mxu2 %vm860_vm0, %v7886_v40 }
0x13bc   : > { %5398 = vmatmul.msk.f32.gmra.mxu2 %vm860_vm0, %v7890_v16 }
0x13c4   : > { %5399 = vmatmul.msk.f32.gmra.mxu2 %vm860_vm0, %v7894_v4  ;;  %v5388_v4 = vld [vmem:[%s6559_s9 + $0x1d8] sm:$0xff]  ;;  %s5452_s9 = sshll.u32 %s8489_s0, 7 }
0x13c5   : > { %s4629_s15 = sadd.s32 %s5452_s9, %s5444_s13 }
0x13c6   : > { %s5445_s23 = sshll.u32 %s4629_s15, 3 }
0x13c7   : > { %s4631_s24 = scalar_lea.hbm %s8528_s22, %s5445_s23 }
0x13c8   : > { %s4634_s8 = sshll.u32 %s4631_s24, 4  ;;  %s4635_s8 = int_to_ptr.hbm [resolvable:$true] %s4634_s8 }
0x13c9   : > { %s6077_s2 = sshra.s32 %s4635_s8, 4  ;;  %s6078_s2 = int_to_ptr.hbm [resolvable:$true] %s6077_s2 }
0x13ca   : > { %s6079_s21 = scalar_lea.hbm %s6078_s2, 1024  ;;  %p6084_p7 = scmp.lt.s32.totalorder %s6078_s2, %s8528_s22 }
0x13cb   : > { %p6080_p0 = scmp.ne.s32.totalorder %s6078_s2, %s6079_s21  ;;  %p6085_p10 = scmp.lt.s32.totalorder %s6083_s10, %s6079_s21 }
0x13cc   : > { %5400 = vmatmul.msk.f32.gmra.mxu2 %vm860_vm0, %v7898_v6 }
0x13cd   : > { %p6081_p5 = pnand %p6080_p0, %p6499_p2  ;;  %p6086_p11 = por %p6085_p10, %p6084_p7 }
0x13cf   : > { %p6082_p6 = pneg %p6081_p5 }
0x13d1   : > { %p6087_p12 = pnand %p6086_p11, %p6082_p6 }
0x1417   : > { %v4445_v50 = vpop.f32.mrf.mxu2 }
0x1418   : > { %v4446_v24 = vadd.f32 %v5385_v61, %v4445_v50 }
0x141a   : > { %5401 = vmatmul.msk.f32.vlgmr.msra.gmra.mxu3 %vm916_vm1, %v4446_v24 }
0x141f   : > { %v4448_v45 = vpop.f32.mrf.mxu2 }
0x1420   : > { %v4449_v40 = vadd.f32 %v5386_v39, %v4448_v45 }
0x1422   : > { %5402 = vmatmul.msk.f32.gmra.mxu3 %vm916_vm1, %v4449_v40 }
0x1427   : > { %v4451_v16 = vpop.f32.mrf.mxu2 }
0x1428   : > { %v4452_v31 = vadd.f32 %v5387_v15, %v4451_v16 }
0x142a   : > { %5403 = vmatmul.msk.f32.gmra.mxu3 %vm916_vm1, %v4452_v31 }
0x142f   : > { %v4454_v6 = vpop.f32.mrf.mxu2 }
0x1430   : > { %v4455_v51 = vadd.f32 %v5388_v4, %v4454_v6 }
0x1432   : > { %5404 = vmatmul.msk.f32.gmra.mxu3 %vm916_vm1, %v4455_v51 }
0x1437   : > { %v4457_v0 = vpop.f32.mrf.mxu2 }
0x1438   : > { %v4458_v47 = vadd.f32 %v5389_v27, %v4457_v0 }
0x143a   : > { %5405 = vmatmul.msk.f32.gmra.mxu3 %vm916_vm1, %v4458_v47 }
0x143f   : > { %v4460_v22 = vpop.f32.mrf.mxu2 }
0x1440   : > { %v4461_v8 = vadd.f32 %v5390_v62, %v4460_v22 }
0x1442   : > { %5406 = vmatmul.msk.f32.gmra.mxu3 %vm916_vm1, %v4461_v8 }
0x1447   : > { %v4463_v10 = vpop.f32.mrf.mxu2 }
0x1448   : > { %v4464_v29 = vadd.f32 %v5391_v26, %v4463_v10 }
0x144a   : > { %5407 = vmatmul.msk.f32.gmra.mxu3 %vm916_vm1, %v4464_v29 }
0x144f   : > { %v4466_v46 = vpop.f32.mrf.mxu2 }
0x1450   : > { %v4467_v57 = vadd.f32 %v5392_v13, %v4466_v46 }
0x1452   : > { %5408 = vmatmul.msk.f32.gmra.mxu3 %vm916_vm1, %v4467_v57 }
0x149d   : > { %v4510_v34 = vpop.f32.mrf.mxu3 }
0x14a5   : > { %v4513_v53 = vpop.f32.mrf.mxu3 }
0x14ad   : > { %v4516_v3 = vpop.f32.mrf.mxu3 }
0x14b5   : > { %v4519_v30 = vpop.f32.mrf.mxu3 }
0x14bd   : > { %v4522_v28 = vpop.f32.mrf.mxu3 }
0x14c5   : > { %v4525_v25 = vpop.f32.mrf.mxu3 }
0x14cd   : > { %v4528_v36 = vpop.f32.mrf.mxu3 }
0x14d5   : > { %v4531_v56 = vpop.f32.mrf.mxu3 }
0x14d6   : > { %4542 = vmatpush.msra.mxu1 %v4531_v56 }
0x14d8   : > { %4543 = vmatpush.msra.mxu1 %v4528_v36 }
0x14da   : > { %4544 = vmatpush.msra.mxu1 %v4525_v25 }
0x14dc   : > { %4545 = vmatpush.msra.mxu1 %v4522_v28 }
0x14de   : > { %4546 = vmatpush.msra.mxu1 %v4519_v30 }
0x14e0   : > { %4547 = vmatpush.msra.mxu1 %v4516_v3 }
0x14e2   : > { %4548 = vmatpush.msra.mxu1 %v4513_v53 }
0x14e4   : > { %4549 = vmatpush.msra.mxu1 %v4510_v34 }
0x14e5   : > { %5409 = vmatmul.msk.f32.vlgmr.msra.gmra.mxu1 %vm916_vm1, %v7954_v44  ;;  %v4255_v44 = vpop.f32.mrf.mxu0 }
0x14e6   : > { %5359 = vst [vmem:[%s7412_s6 + $0x300] sm:$0xff] %v4255_v44 }
0x14ed   : > { %5410 = vmatmul.msk.f32.gmra.mxu1 %vm916_vm1, %v7960_v55  ;;  %v4258_v55 = vpop.f32.mrf.mxu0 }
0x14ee   : > { %5360 = vst [vmem:[%s7412_s6 + $0x308] sm:$0xff] %v4258_v55 }
0x14f5   : > { %5411 = vmatmul.msk.f32.gmra.mxu1 %vm916_vm1, %v7966_v9  ;;  %v4261_v9 = vpop.f32.mrf.mxu0 }
0x14f6   : > { %5361 = vst [vmem:[%s7412_s6 + $0x310] sm:$0xff] %v4261_v9 }
0x14fd   : > { %5412 = vmatmul.msk.f32.gmra.mxu1 %vm916_vm1, %v8093_v42  ;;  %v4264_v42 = vpop.f32.mrf.mxu0 }
0x14fe   : > { %5362 = vst [vmem:[%s7412_s6 + $0x318] sm:$0xff] %v4264_v42 }
0x1505   : > { %5413 = vmatmul.msk.f32.gmra.mxu1 %vm916_vm1, %v8099_v49 }
0x150d   : > { %5414 = vmatmul.msk.f32.gmra.mxu1 %vm916_vm1, %v8104_v17 }
0x1515   : > { %5415 = vmatmul.msk.f32.gmra.mxu1 %vm916_vm1, %v8108_v35 }
0x151d   : > { %5416 = vmatmul.msk.f32.gmra.mxu1 %vm916_vm1, %v8112_v38 }
0x1525   : > { %5417 = vmatmul.msk.f32.gmra.mxu1 %vm916_vm1, %v8116_v11 }
0x152d   : > { %5418 = vmatmul.msk.f32.gmra.mxu1 %vm916_vm1, %v8120_v14 }
0x1535   : > { %5419 = vmatmul.msk.f32.gmra.mxu1 %vm916_vm1, %v8124_v43 }
0x153d   : > { %5420 = vmatmul.msk.f32.gmra.mxu1 %vm916_vm1, %v8128_v60 }
0x1545   : > { %5421 = vmatmul.msk.f32.gmra.mxu1 %vm916_vm1, %v7992_v41  ;;  %v4267_v41 = vpop.f32.mrf.mxu0 }
0x1546   : > { %5363 = vst [vmem:[%s7412_s6 + $0x320] sm:$0xff] %v4267_v41 }
0x154d   : > { %5422 = vmatmul.msk.f32.gmra.mxu1 %vm916_vm1, %v7996_v37  ;;  %v4270_v37 = vpop.f32.mrf.mxu0 }
0x154e   : > { %5364 = vst [vmem:[%s7412_s6 + $0x328] sm:$0xff] %v4270_v37 }
0x1555   : > { %5423 = vmatmul.msk.f32.gmra.mxu1 %vm916_vm1, %v8000_v48  ;;  %v4273_v48 = vpop.f32.mrf.mxu0 }
0x1556   : > { %5365 = vst [vmem:[%s7412_s6 + $0x330] sm:$0xff] %v4273_v48 }
0x155d   : > { %5424 = vmatmul.msk.f32.gmra.mxu1 %vm916_vm1, %v8004_v58  ;;  %v4276_v58 = vpop.f32.mrf.mxu0 }
0x155e   : > { %5366 = vst [vmem:[%s7412_s6 + $0x338] sm:$0xff] %v4276_v58 }
0x1562   : > { %v4551_v49 = vpop.f32.mrf.mxu1 }
0x1563   : > { %5425 = vst [vmem:[%s7412_s6 + $0x380] sm:$0xff] %v4551_v49 }
0x1565   : > { %v4279_v11 = vpop.f32.mrf.mxu0 }
0x1566   : > { %5367 = vst [vmem:[%s7412_s6 + $0x340] sm:$0xff] %v4279_v11 }
0x156a   : > { %v4554_v17 = vpop.f32.mrf.mxu1 }
0x156b   : > { %5426 = vst [vmem:[%s7412_s6 + $0x388] sm:$0xff] %v4554_v17 }
0x156d   : > { %v4282_v43 = vpop.f32.mrf.mxu0 }
0x156e   : > { %5368 = vst [vmem:[%s7412_s6 + $0x348] sm:$0xff] %v4282_v43 }
0x1572   : > { %v4557_v35 = vpop.f32.mrf.mxu1 }
0x1573   : > { %5427 = vst [vmem:[%s7412_s6 + $0x390] sm:$0xff] %v4557_v35 }
0x1575   : > { %v4285_v12 = vpop.f32.mrf.mxu0 }
0x1576   : > { %5369 = vst [vmem:[%s7412_s6 + $0x350] sm:$0xff] %v4285_v12 }
0x157a   : > { %v4560_v38 = vpop.f32.mrf.mxu1 }
0x157b   : > { %5428 = vst [vmem:[%s7412_s6 + $0x398] sm:$0xff] %v4560_v38 }
0x157d   : > { %v4288_v33 = vpop.f32.mrf.mxu0 }
0x157e   : > { %5370 = vst [vmem:[%s7412_s6 + $0x358] sm:$0xff] %v4288_v33 }
0x1582   : > { %v4563_v14 = vpop.f32.mrf.mxu1 }
0x1583   : > { %5429 = vst [vmem:[%s7412_s6 + $0x3a0] sm:$0xff] %v4563_v14 }
0x1585   : > { %v4291_v7 = vpop.f32.mrf.mxu0 }
0x1586   : > { %5371 = vst [vmem:[%s7412_s6 + $0x360] sm:$0xff] %v4291_v7 }
0x158a   : > { %v4566_v60 = vpop.f32.mrf.mxu1 }
0x158b   : > { %5430 = vst [vmem:[%s7412_s6 + $0x3a8] sm:$0xff] %v4566_v60 }
0x158d   : > { %v4294_v19 = vpop.f32.mrf.mxu0 }
0x158e   : > { %5372 = vst [vmem:[%s7412_s6 + $0x368] sm:$0xff] %v4294_v19 }
0x1592   : > { %v4569_v59 = vpop.f32.mrf.mxu1 }
0x1593   : > { %5431 = vst [vmem:[%s7412_s6 + $0x3b0] sm:$0xff] %v4569_v59 }
0x1595   : > { %v4297_v32 = vpop.f32.mrf.mxu0 }
0x1596   : > { %5373 = vst [vmem:[%s7412_s6 + $0x370] sm:$0xff] %v4297_v32 }
0x159a   : > { %v4572_v1 = vpop.f32.mrf.mxu1 }
0x159b   : > { %5432 = vst [vmem:[%s7412_s6 + $0x3b8] sm:$0xff] %v4572_v1 }
0x159d   : > { %v4300_v5 = vpop.f32.mrf.mxu0 }
0x159e   : > { %5374 = vst [vmem:[%s7412_s6 + $0x378] sm:$0xff] %v4300_v5 }
0x15a2   : > { %v4575_v23 = vpop.f32.mrf.mxu1 }
0x15a3   : > { %5433 = vst [vmem:[%s7412_s6 + $0x3c0] sm:$0xff] %v4575_v23 }
0x15aa   : > { %v4578_v21 = vpop.f32.mrf.mxu1 }
0x15ab   : > { %5434 = vst [vmem:[%s7412_s6 + $0x3c8] sm:$0xff] %v4578_v21 }
0x15b2   : > { %v4581_v63 = vpop.f32.mrf.mxu1 }
0x15b3   : > { %5435 = vst [vmem:[%s7412_s6 + $0x3d0] sm:$0xff] %v4581_v63 }
0x15ba   : > { %v4584_v54 = vpop.f32.mrf.mxu1 }
0x15bb   : > { %5436 = vst [vmem:[%s7412_s6 + $0x3d8] sm:$0xff] %v4584_v54 }
0x15c2   : > { %v4587_v20 = vpop.f32.mrf.mxu1 }
0x15c3   : > { %5437 = vst [vmem:[%s7412_s6 + $0x3e0] sm:$0xff] %v4587_v20 }
0x15ca   : > { %v4590_v52 = vpop.f32.mrf.mxu1 }
0x15cb   : > { %5438 = vst [vmem:[%s7412_s6 + $0x3e8] sm:$0xff] %v4590_v52 }
0x15d2   : > { %v4593_v18 = vpop.f32.mrf.mxu1 }
0x15d3   : > { %5439 = vst [vmem:[%s7412_s6 + $0x3f0] sm:$0xff] %v4593_v18 }
0x15da   : > { %v4596_v2 = vpop.f32.mrf.mxu1 }
0x15db   : > { %5440 = vst [vmem:[%s7412_s6 + $0x3f8] sm:$0xff] %v4596_v2 }
0x15dc   : > { %6090 = shalt.err (!%p6087_p12)
}
0x15dd   : > { %s6234_s5 = smov 128   ;;  %s6235_s6 = smov 8  }
0x15de   : > { %5509 = dma.vmem_to_hbm [thread:$0]  (%p6499_p2), %s4633_s4, 16384, %s4635_s8, %s4617_s25, %s6234_s5, %s6234_s5, %s6235_s6  }
0x15df PF: > { %p5569_p9 = scmp.ge.s32.totalorder %s6209_s1, 2  ;;  %s4649_s13 = sand.u32 1, %s6181_s27  }
0x15e0   : > { %s4650_s15 = scalar_lea.sflag [#allocation4], %s4649_s13 }
0x15e1   : > { %p5547_p13 = pnand %p5569_p9, %p6505_p4 }
0x15e3   : > { %p5548_p8 = pneg %p5547_p13 }
0x15e5   : > { %6164 = dma.done.wait (%p5548_p8), %s4650_s15, 16384  }
0x15e6   : > { %6166 = vsyncadd (%p5548_p8), %s4650_s15, 4294950912  ;;  %s40_s1 = sadd.s32 1, %s6209_s1   ;;  %s8529_s24 = sld [smem:[#allocation30_spill]] }
0x15e7   : > { %p37_p3 = scmp.ge.s32.totalorder %s40_s1, 6   ;;  %s8530_s25 = sld [smem:[#allocation31_spill]] }
0x15e8   : > { %s8531_s3 = sld [smem:[#allocation35_spill]]  ;;  %s8533_s26 = smov %s6534_s11 }
0x15e9   : > { %s8532_s23 = sld [smem:[#allocation36_spill]]  ;;  %s8534_s27 = smov %s6185_s28 }
0x15ea   : > { %s8535_s28 = smov %s6189_s29  ;;  %s8536_s29 = smov %s6513_s7 }
0x15eb   : > { %s8537_s0 = smov %s6201_s18  ;;  %s8538_s30 = smov %s6205_s19 }
0x15ec   :  { %39 = sbr.rel (!%p37_p3) target bundleno = 34 (0x22), region = 208 }
0x15ee   : > { %s8539_s18 = smov %s8531_s3 }
0x15ef   : > { %s8540_s19 = smov %s8532_s23 }
0x15f1   :  { %4656 = vsyncpa [#allocation3], 1 }
0x15f2   :  { %4658 = vsyncpa [#allocation3 + $0x1], 1 }
0x15f3   :  { %4659 = vsyncpa [#allocation6], 1 }
0x15f4   :  { %4660 = vsyncpa [#allocation9], 1 }
0x15f5   :  { %4662 = vsyncpa [#allocation9 + $0x1], 1 }
0x15f6   :  { %4663 = vsyncpa [#allocation12], 1 }
0x15f7   :  { %4664 = vsyncpa [#allocation15], 1 }
0x15f8   :  { %4665 = vsyncpa [#allocation18], 1 }
0x15f9   :  { %4666 = vsyncpa [#allocation4], 1 }
0x15fa   :  { %4668 = vsyncpa [#allocation4 + $0x1], 1 }

</bundles_post_ra>
